<compile_context>
chip_gen: v5e
topology: v5e:2x2
jax: 0.10.0
libtpu: 0.0.40
codegen_flags: <defaults>
</compile_context>

<pallas_src>
import functools

import jax
import jax.numpy as jnp
from jax.experimental import pallas as pl
from jax.experimental.pallas import tpu as pltpu


# --------------------------------------------------------------------------
# Fused Pallas kernel: one batch tile per grid step, batch on lanes.
# --------------------------------------------------------------------------
def fused_gru_kernel(x_ref, wih1_ref, whh1_ref, b1_ref, bhh1n_ref,
                     wih2_ref, whh2_ref, b2_ref, bhh2n_ref,
                     fcw_ref, fcb_ref, y_ref,
                     gi1_s, h1_s, gi2_s, h2_s, *, seq_len):
    """Per-grid-step shapes (Bt = batch-tile lanes, T = seq_len):

    x_ref   : (I, T*Bt)         time-major, batch fastest within each t
    wih1_ref: (3H1, I)          whh1_ref: (3H1, H1)
    b1_ref  : (3H1, 1)          r/z rows = b_ih+b_hh folded, n rows = b_ih only
    bhh1n_ref: (H1, 1)          n-gate b_hh1 (scaled by r inside the loop)
    wih2_ref: (3*H2p, H1)       whh2_ref: (3*H2p, H2p)   (8-row padded gates)
    b2_ref  : (3*H2p, 1)        bhh2n_ref: (H2p, 1)
    fcw_ref : (Op, H2p)         fcb_ref : (Op, 1)        (zero-padded)
    y_ref   : (Op, T*Bt)
    scratch : gi1_s (3H1,T*Bt), h1_s (H1,T*Bt), gi2_s (3H2p,T*Bt), h2_s (H2p,T*Bt)
    """
    T = seq_len
    H1 = whh1_ref.shape[-1]
    H2p = whh2_ref.shape[-1]
    Bt = x_ref.shape[-1] // T

    # ---- Phase 0: hoisted layer-1 input projection for ALL time steps ------
    gi1_s[...] = (jnp.dot(wih1_ref[...], x_ref[...],
                          preferred_element_type=jnp.float32)
                  + b1_ref[...])

    whh1 = whh1_ref[...]                                        # (3H1, H1)
    bhh1n = jnp.broadcast_to(bhh1n_ref[...], (H1, Bt))          # small, hoisted

    # ---- Phase A: layer-1 recurrence (only W_hh1 @ h is per-step) ----------
    h1 = jnp.zeros((H1, Bt), jnp.float32)                       # zero h0
    for t in range(T):
        gi1 = gi1_s[:, t * Bt:(t + 1) * Bt]                     # (3H1, Bt)
        gh1 = jnp.dot(whh1, h1, preferred_element_type=jnp.float32)
        rz1 = jax.nn.sigmoid(gi1[0:2 * H1] + gh1[0:2 * H1])     # stacked r,z
        r1 = rz1[0:H1]
        z1 = rz1[H1:2 * H1]
        n1 = jnp.tanh(gi1[2 * H1:] + r1 * (gh1[2 * H1:] + bhh1n))
        h1 = (1.0 - z1) * n1 + z1 * h1
        h1_s[:, t * Bt:(t + 1) * Bt] = h1

    # ---- Phase B: batched layer-2 input projection over ALL time steps -----
    gi2_s[...] = (jnp.dot(wih2_ref[...], h1_s[...],
                          preferred_element_type=jnp.float32)
                  + b2_ref[...])

    whh2 = whh2_ref[...]                                        # (3H2p, H2p)
    bhh2n = jnp.broadcast_to(bhh2n_ref[...], (H2p, Bt))

    # ---- Phase C: layer-2 recurrence on the 8-row padded state -------------
    h2 = jnp.zeros((H2p, Bt), jnp.float32)                      # pad rows stay 0
    for t in range(T):
        gi2 = gi2_s[:, t * Bt:(t + 1) * Bt]                     # (3H2p, Bt)
        gh2 = jnp.dot(whh2, h2, preferred_element_type=jnp.float32)
        rz2 = jax.nn.sigmoid(gi2[0:2 * H2p] + gh2[0:2 * H2p])
        r2 = rz2[0:H2p]
        z2 = rz2[H2p:2 * H2p]
        n2 = jnp.tanh(gi2[2 * H2p:] + r2 * (gh2[2 * H2p:] + bhh2n))
        h2 = (1.0 - z2) * n2 + z2 * h2
        h2_s[:, t * Bt:(t + 1) * Bt] = h2

    # ---- Phase D: batched FC head, one dense lane-major store ---------------
    y_ref[...] = (jnp.dot(fcw_ref[...], h2_s[...],
                          preferred_element_type=jnp.float32)
                  + fcb_ref[...]).astype(y_ref.dtype)


# --------------------------------------------------------------------------
# Wrapper: weight repacking + layout plumbing (batch on lanes) + pallas_call
# --------------------------------------------------------------------------
def _pad_gate_rows(w, h, hp):
    """(3h, K) -> (3hp, K): each h-row gate block zero-padded to hp rows."""
    w3 = w.reshape(3, h, -1)
    w3 = jnp.pad(w3, ((0, 0), (0, hp - h), (0, 0)))
    return w3.reshape(3 * hp, -1)


def gru_model_forward(x, params):
    """Mirrors GRU.forward: gru1 -> gru2 -> fc.  x: (T, B, I) -> (T, B, 2)."""
    T, B, I = x.shape
    H1 = params["w_hh1"].shape[1]          # 16
    H2 = params["w_hh2"].shape[1]          # 4
    O = params["fc_w"].shape[0]            # 2
    H2p = 8                                # layer-2 state padded to 1 sublane tile
    Op = 8                                 # FC rows padded for dense stores

    Bt = 256 if B > 128 else 128           # batch-tile (lanes) per grid step
    Bp = -(-B // Bt) * Bt
    NB = Bp // Bt

    # ---- input: (T, B, I) -> (NB, I, T*Bt), batch on lanes within each tile
    xt = jnp.transpose(x, (2, 0, 1))                       # (I, T, B)
    xt = jnp.pad(xt, ((0, 0), (0, 0), (0, Bp - B)))        # (I, T, Bp)
    xt = (xt.reshape(I, T, NB, Bt)
            .transpose(2, 0, 1, 3)
            .reshape(NB, I, T * Bt))

    # ---- layer-1 weights / folded biases
    wih1 = params["w_ih1"]                                 # (3H1, I)
    whh1 = params["w_hh1"]                                 # (3H1, H1)
    b1 = jnp.concatenate(
        [params["b_ih1"][:2 * H1] + params["b_hh1"][:2 * H1],   # r,z folded
         params["b_ih1"][2 * H1:]]).reshape(3 * H1, 1)          # n: b_ih only
    bhh1n = params["b_hh1"][2 * H1:].reshape(H1, 1)

    # ---- layer-2 weights repacked to 8-row gate blocks (sublane aligned)
    wih2p = _pad_gate_rows(params["w_ih2"], H2, H2p)       # (3H2p, H1)
    whh2p = _pad_gate_rows(params["w_hh2"], H2, H2p)       # (3H2p, H2)
    whh2p = jnp.pad(whh2p, ((0, 0), (0, H2p - H2)))        # (3H2p, H2p)
    b2_raw = jnp.concatenate(
        [params["b_ih2"][:2 * H2] + params["b_hh2"][:2 * H2],
         params["b_ih2"][2 * H2:]]).reshape(3 * H2, 1)
    b2 = _pad_gate_rows(b2_raw, H2, H2p)                   # (3H2p, 1)
    bhh2n = jnp.pad(params["b_hh2"][2 * H2:], (0, H2p - H2)).reshape(H2p, 1)

    # ---- FC head, zero-padded to (Op, H2p) for a single dense matmul/store
    fcwp = jnp.pad(params["fc_w"], ((0, Op - O), (0, H2p - H2)))
    fcbp = jnp.pad(params["fc_b"], (0, Op - O)).reshape(Op, 1)

    kernel = functools.partial(fused_gru_kernel, seq_len=T)
    wmap = lambda b: (0, 0)

    # TODO(synk): on v7x, verify the "parallel" batch-tile axis really lands on
    # both TensorCores (trace); if not, switch this axis to pltpu.CORE_PARALLEL.
    y = pl.pallas_call(
        kernel,
        out_shape=jax.ShapeDtypeStruct((NB, Op, T * Bt), jnp.float32),
        grid=(NB,),
        in_specs=[
            pl.BlockSpec((None, I, T * Bt), lambda b: (b, 0, 0)),   # x tile
            pl.BlockSpec((3 * H1, I), wmap),                        # w_ih1
            pl.BlockSpec((3 * H1, H1), wmap),                       # w_hh1
            pl.BlockSpec((3 * H1, 1), wmap),                        # b1 (folded)
            pl.BlockSpec((H1, 1), wmap),                            # b_hh1 n-gate
            pl.BlockSpec((3 * H2p, H1), wmap),                      # w_ih2 packed
            pl.BlockSpec((3 * H2p, H2p), wmap),                     # w_hh2 packed
            pl.BlockSpec((3 * H2p, 1), wmap),                       # b2 (folded)
            pl.BlockSpec((H2p, 1), wmap),                           # b_hh2 n-gate
            pl.BlockSpec((Op, H2p), wmap),                          # fc_w padded
            pl.BlockSpec((Op, 1), wmap),                            # fc_b padded
        ],
        out_specs=pl.BlockSpec((None, Op, T * Bt), lambda b: (b, 0, 0)),
        scratch_shapes=[
            pltpu.VMEM((3 * H1, T * Bt), jnp.float32),   # gi1, all steps
            pltpu.VMEM((H1, T * Bt), jnp.float32),       # h1,  all steps
            pltpu.VMEM((3 * H2p, T * Bt), jnp.float32),  # gi2, all steps
            pltpu.VMEM((H2p, T * Bt), jnp.float32),      # h2,  all steps
        ],
        compiler_params=pltpu.CompilerParams(
            dimension_semantics=("parallel",)),
    )(xt, wih1, whh1, b1, bhh1n, wih2p, whh2p, b2, bhh2n, fcwp, fcbp)

    # (NB, Op, T*Bt) -> (T, B, O)
    out = (y.reshape(NB, Op, T, Bt)
            .transpose(2, 0, 3, 1)           # (T, NB, Bt, Op)
            .reshape(T, Bp, Op))[:, :B, :O]
    return out


# --------------------------------------------------------------------------
# Pure-JAX reference (correctness check only)
# --------------------------------------------------------------------------
def gru_layer_ref(x, w_ih, w_hh, b_ih, b_hh, h0):
    H = h0.shape[-1]

    def step(h, x_t):
        gi = x_t @ w_ih.T + b_ih
        gh = h @ w_hh.T + b_hh
        r = jax.nn.sigmoid(gi[:, :H] + gh[:, :H])
        z = jax.nn.sigmoid(gi[:, H:2 * H] + gh[:, H:2 * H])
        n = jnp.tanh(gi[:, 2 * H:] + r * gh[:, 2 * H:])
        h_new = (1.0 - z) * n + z * h
        return h_new, h_new

    _, ys = jax.lax.scan(step, h0, x)
    return ys


def model_ref(x, params):
    B = x.shape[1]
    y1 = gru_layer_ref(x, params["w_ih1"], params["w_hh1"],
                       params["b_ih1"], params["b_hh1"],
                       jnp.zeros((B, 16), jnp.float32))
    y2 = gru_layer_ref(y1, params["w_ih2"], params["w_hh2"],
                       params["b_ih2"], params["b_hh2"],
                       jnp.zeros((B, 4), jnp.float32))
    return y2 @ params["fc_w"].T + params["fc_b"]


# --------------------------------------------------------------------------
# Deterministic parameter init (shapes from GRU.__init__ / init_weights;
# GRU biases given small nonzero values so the bias paths are exercised).
# --------------------------------------------------------------------------
def make_params(key):
    ks = jax.random.split(key, 10)
    glorot = jax.nn.initializers.glorot_uniform()
    ortho = jax.nn.initializers.orthogonal()
    return {
        # gru1: input 3, hidden 16  -> weight_ih (48,3), weight_hh (48,16)
        "w_ih1": glorot(ks[0], (48, 3), jnp.float32),
        "w_hh1": ortho(ks[1], (48, 16), jnp.float32),
        "b_ih1": jax.random.uniform(ks[2], (48,), jnp.float32, -0.1, 0.1),
        "b_hh1": jax.random.uniform(ks[3], (48,), jnp.float32, -0.1, 0.1),
        # gru2: input 16, hidden 4  -> weight_ih (12,16), weight_hh (12,4)
        "w_ih2": glorot(ks[4], (12, 16), jnp.float32),
        "w_hh2": ortho(ks[5], (12, 4), jnp.float32),
        "b_ih2": jax.random.uniform(ks[6], (12,), jnp.float32, -0.1, 0.1),
        "b_hh2": jax.random.uniform(ks[7], (12,), jnp.float32, -0.1, 0.1),
        # fc: Linear(4, 2)
        "fc_w": jax.random.uniform(ks[8], (2, 4), jnp.float32, -0.5, 0.5),
        "fc_b": jax.random.uniform(ks[9], (2,), jnp.float32, -0.5, 0.5),
    }


# --------------------------------------------------------------------------
if __name__ == "__main__":
    key = jax.random.PRNGKey(0)
    kx, kp = jax.random.split(key)

    T, B, I = 8, 1000, 3              # batch fixed at 1000 by self.h1/self.h2
    x = jax.random.normal(kx, (T, B, I), jnp.float32)
    params = make_params(kp)

    out = jax.block_until_ready(jax.jit(gru_model_forward)(x, params))
    ref = jax.block_until_ready(model_ref(x, params))

    assert out.shape == (T, B, 2), out.shape
    err = float(jnp.max(jnp.abs(out - ref)))
    assert jnp.allclose(out, ref, atol=2e-3, rtol=2e-3), err

    print("KERNEL_OK")
</pallas_src>

<mosaic_0001>
module attributes {stable_mosaic.version = 11 : i64} {
  func.func @fused_gru_kernel(%arg0: i32, %arg1: memref<1x3x2048xf32, #tpu.memory_space<vmem>>, %arg2: memref<48x3xf32, #tpu.memory_space<vmem>>, %arg3: memref<48x16xf32, #tpu.memory_space<vmem>>, %arg4: memref<48x1xf32, #tpu.memory_space<vmem>>, %arg5: memref<16x1xf32, #tpu.memory_space<vmem>>, %arg6: memref<24x16xf32, #tpu.memory_space<vmem>>, %arg7: memref<24x8xf32, #tpu.memory_space<vmem>>, %arg8: memref<24x1xf32, #tpu.memory_space<vmem>>, %arg9: memref<8x1xf32, #tpu.memory_space<vmem>>, %arg10: memref<8x8xf32, #tpu.memory_space<vmem>>, %arg11: memref<8x1xf32, #tpu.memory_space<vmem>>, %arg12: memref<1x8x2048xf32, #tpu.memory_space<vmem>>, %arg13: memref<48x2048xf32, #tpu.memory_space<vmem>>, %arg14: memref<16x2048xf32, #tpu.memory_space<vmem>>, %arg15: memref<24x2048xf32, #tpu.memory_space<vmem>>, %arg16: memref<8x2048xf32, #tpu.memory_space<vmem>>) attributes {dimension_semantics = [#tpu.dimension_semantics<parallel>], iteration_bounds = array<i64: 4>, scalar_prefetch = 0 : i64, scratch_operands = 4 : i64, tpu.core_type = #tpu.core_type<tc>, window_params = [{transform_indices = @transform_0, window_bounds = array<i64: 1, 3, 2048>}, {pipeline_mode = #tpu.pipeline_mode<synchronous>, transform_indices = @transform_1, window_bounds = array<i64: 48, 3>}, {pipeline_mode = #tpu.pipeline_mode<synchronous>, transform_indices = @transform_2, window_bounds = array<i64: 48, 16>}, {pipeline_mode = #tpu.pipeline_mode<synchronous>, transform_indices = @transform_3, window_bounds = array<i64: 48, 1>}, {pipeline_mode = #tpu.pipeline_mode<synchronous>, transform_indices = @transform_4, window_bounds = array<i64: 16, 1>}, {pipeline_mode = #tpu.pipeline_mode<synchronous>, transform_indices = @transform_5, window_bounds = array<i64: 24, 16>}, {pipeline_mode = #tpu.pipeline_mode<synchronous>, transform_indices = @transform_6, window_bounds = array<i64: 24, 8>}, {pipeline_mode = #tpu.pipeline_mode<synchronous>, transform_indices = @transform_7, window_bounds = array<i64: 24, 1>}, {pipeline_mode = #tpu.pipeline_mode<synchronous>, transform_indices = @transform_8, window_bounds = array<i64: 8, 1>}, {pipeline_mode = #tpu.pipeline_mode<synchronous>, transform_indices = @transform_9, window_bounds = array<i64: 8, 8>}, {pipeline_mode = #tpu.pipeline_mode<synchronous>, transform_indices = @transform_10, window_bounds = array<i64: 8, 1>}, {transform_indices = @transform_11, window_bounds = array<i64: 1, 8, 2048>}]} {
    %c0 = arith.constant 0 : index
    %c0_0 = arith.constant 0 : index
    %0 = vector.load %arg2[%c0, %c0_0] : memref<48x3xf32, #tpu.memory_space<vmem>>, vector<48x3xf32>
    %c0_1 = arith.constant 0 : index
    %c0_2 = arith.constant 0 : index
    %c0_3 = arith.constant 0 : index
    %1 = vector.load %arg1[%c0_1, %c0_2, %c0_3] : memref<1x3x2048xf32, #tpu.memory_space<vmem>>, vector<1x3x2048xf32>
    %2 = vector.shape_cast %1 : vector<1x3x2048xf32> to vector<3x2048xf32>
    %cst = arith.constant dense<0.000000e+00> : vector<48x2048xf32>
    %3 = tpu.matmul %0, %2, %cst {dimension_numbers = #tpu.dot_dimension_numbers<[1], [0], [0], [1], [0, 0, 1, 1], [], []>} : vector<48x3xf32>, vector<3x2048xf32>, vector<48x2048xf32> -> vector<48x2048xf32>
    %c0_4 = arith.constant 0 : index
    %c0_5 = arith.constant 0 : index
    %4 = vector.load %arg4[%c0_4, %c0_5] : memref<48x1xf32, #tpu.memory_space<vmem>>, vector<48x1xf32>
    %5 = vector.broadcast %4 : vector<48x1xf32> to vector<48x2048xf32>
    %6 = arith.addf %3, %5 : vector<48x2048xf32>
    %c0_6 = arith.constant 0 : index
    %c0_7 = arith.constant 0 : index
    %7 = vector.load %arg13[%c0_6, %c0_7] : memref<48x2048xf32, #tpu.memory_space<vmem>>, vector<48x2048xf32>
    tpu.vector_store %arg13[%c0_6, %c0_7], %6 {strides = array<i32>} : memref<48x2048xf32, #tpu.memory_space<vmem>>, vector<48x2048xf32>,
    %c0_8 = arith.constant 0 : index
    %c0_9 = arith.constant 0 : index
    %8 = vector.load %arg3[%c0_8, %c0_9] : memref<48x16xf32, #tpu.memory_space<vmem>>, vector<48x16xf32>
    %c0_10 = arith.constant 0 : index
    %c0_11 = arith.constant 0 : index
    %9 = vector.load %arg5[%c0_10, %c0_11] : memref<16x1xf32, #tpu.memory_space<vmem>>, vector<16x1xf32>
    %10 = vector.shape_cast %9 : vector<16x1xf32> to vector<16x1xf32>
    %11 = vector.broadcast %10 : vector<16x1xf32> to vector<16x256xf32>
    %cst_12 = arith.constant 0.000000e+00 : f32
    %12 = vector.broadcast %cst_12 : f32 to vector<16x256xf32>
    %c0_13 = arith.constant 0 : index
    %c0_14 = arith.constant 0 : index
    %13 = vector.load %arg13[%c0_13, %c0_14] : memref<48x2048xf32, #tpu.memory_space<vmem>>, vector<48x256xf32>
    %cst_15 = arith.constant dense<0.000000e+00> : vector<48x256xf32>
    %14 = tpu.matmul %8, %12, %cst_15 {dimension_numbers = #tpu.dot_dimension_numbers<[1], [0], [0], [1], [0, 0, 1, 1], [], []>} : vector<48x16xf32>, vector<16x256xf32>, vector<48x256xf32> -> vector<48x256xf32>
    %15 = vector.extract_strided_slice %13 {offsets = [0, 0], sizes = [32, 256], strides = [1, 1]} : vector<48x256xf32> to vector<32x256xf32>
    %16 = vector.extract_strided_slice %14 {offsets = [0, 0], sizes = [32, 256], strides = [1, 1]} : vector<48x256xf32> to vector<32x256xf32>
    %17 = arith.addf %15, %16 : vector<32x256xf32>
    %18 = arith.negf %17 : vector<32x256xf32>
    %19 = math.exp %18 : vector<32x256xf32>
    %cst_16 = arith.constant 1.000000e+00 : f32
    %20 = vector.broadcast %cst_16 : f32 to vector<32x256xf32>
    %21 = arith.addf %20, %19 : vector<32x256xf32>
    %22 = arith.divf %20, %21 : vector<32x256xf32>
    %23 = vector.extract_strided_slice %22 {offsets = [0, 0], sizes = [16, 256], strides = [1, 1]} : vector<32x256xf32> to vector<16x256xf32>
    %24 = vector.extract_strided_slice %22 {offsets = [16, 0], sizes = [16, 256], strides = [1, 1]} : vector<32x256xf32> to vector<16x256xf32>
    %25 = vector.extract_strided_slice %13 {offsets = [32, 0], sizes = [16, 256], strides = [1, 1]} : vector<48x256xf32> to vector<16x256xf32>
    %26 = vector.extract_strided_slice %14 {offsets = [32, 0], sizes = [16, 256], strides = [1, 1]} : vector<48x256xf32> to vector<16x256xf32>
    %27 = arith.addf %26, %11 : vector<16x256xf32>
    %28 = arith.mulf %23, %27 : vector<16x256xf32>
    %29 = arith.addf %25, %28 : vector<16x256xf32>
    %30 = math.tanh %29 : vector<16x256xf32>
    %cst_17 = arith.constant 1.000000e+00 : f32
    %31 = vector.broadcast %cst_17 : f32 to vector<16x256xf32>
    %32 = arith.subf %31, %24 : vector<16x256xf32>
    %33 = arith.mulf %32, %30 : vector<16x256xf32>
    %34 = arith.mulf %24, %12 : vector<16x256xf32>
    %35 = arith.addf %33, %34 : vector<16x256xf32>
    %c0_18 = arith.constant 0 : index
    %c0_19 = arith.constant 0 : index
    %36 = vector.load %arg14[%c0_18, %c0_19] : memref<16x2048xf32, #tpu.memory_space<vmem>>, vector<16x256xf32>
    tpu.vector_store %arg14[%c0_18, %c0_19], %35 {strides = array<i32>} : memref<16x2048xf32, #tpu.memory_space<vmem>>, vector<16x256xf32>,
    %c0_20 = arith.constant 0 : index
    %c256 = arith.constant 256 : index
    %37 = vector.load %arg13[%c0_20, %c256] : memref<48x2048xf32, #tpu.memory_space<vmem>>, vector<48x256xf32>
    %cst_21 = arith.constant dense<0.000000e+00> : vector<48x256xf32>
    %38 = tpu.matmul %8, %35, %cst_21 {dimension_numbers = #tpu.dot_dimension_numbers<[1], [0], [0], [1], [0, 0, 1, 1], [], []>} : vector<48x16xf32>, vector<16x256xf32>, vector<48x256xf32> -> vector<48x256xf32>
    %39 = vector.extract_strided_slice %37 {offsets = [0, 0], sizes = [32, 256], strides = [1, 1]} : vector<48x256xf32> to vector<32x256xf32>
    %40 = vector.extract_strided_slice %38 {offsets = [0, 0], sizes = [32, 256], strides = [1, 1]} : vector<48x256xf32> to vector<32x256xf32>
    %41 = arith.addf %39, %40 : vector<32x256xf32>
    %42 = arith.negf %41 : vector<32x256xf32>
    %43 = math.exp %42 : vector<32x256xf32>
    %cst_22 = arith.constant 1.000000e+00 : f32
    %44 = vector.broadcast %cst_22 : f32 to vector<32x256xf32>
    %45 = arith.addf %44, %43 : vector<32x256xf32>
    %46 = arith.divf %44, %45 : vector<32x256xf32>
    %47 = vector.extract_strided_slice %46 {offsets = [0, 0], sizes = [16, 256], strides = [1, 1]} : vector<32x256xf32> to vector<16x256xf32>
    %48 = vector.extract_strided_slice %46 {offsets = [16, 0], sizes = [16, 256], strides = [1, 1]} : vector<32x256xf32> to vector<16x256xf32>
    %49 = vector.extract_strided_slice %37 {offsets = [32, 0], sizes = [16, 256], strides = [1, 1]} : vector<48x256xf32> to vector<16x256xf32>
    %50 = vector.extract_strided_slice %38 {offsets = [32, 0], sizes = [16, 256], strides = [1, 1]} : vector<48x256xf32> to vector<16x256xf32>
    %51 = arith.addf %50, %11 : vector<16x256xf32>
    %52 = arith.mulf %47, %51 : vector<16x256xf32>
    %53 = arith.addf %49, %52 : vector<16x256xf32>
    %54 = math.tanh %53 : vector<16x256xf32>
    %cst_23 = arith.constant 1.000000e+00 : f32
    %55 = vector.broadcast %cst_23 : f32 to vector<16x256xf32>
    %56 = arith.subf %55, %48 : vector<16x256xf32>
    %57 = arith.mulf %56, %54 : vector<16x256xf32>
    %58 = arith.mulf %48, %35 : vector<16x256xf32>
    %59 = arith.addf %57, %58 : vector<16x256xf32>
    %c0_24 = arith.constant 0 : index
    %c256_25 = arith.constant 256 : index
    %60 = vector.load %arg14[%c0_24, %c256_25] : memref<16x2048xf32, #tpu.memory_space<vmem>>, vector<16x256xf32>
    tpu.vector_store %arg14[%c0_24, %c256_25], %59 {strides = array<i32>} : memref<16x2048xf32, #tpu.memory_space<vmem>>, vector<16x256xf32>,
    %c0_26 = arith.constant 0 : index
    %c512 = arith.constant 512 : index
    %61 = vector.load %arg13[%c0_26, %c512] : memref<48x2048xf32, #tpu.memory_space<vmem>>, vector<48x256xf32>
    %cst_27 = arith.constant dense<0.000000e+00> : vector<48x256xf32>
    %62 = tpu.matmul %8, %59, %cst_27 {dimension_numbers = #tpu.dot_dimension_numbers<[1], [0], [0], [1], [0, 0, 1, 1], [], []>} : vector<48x16xf32>, vector<16x256xf32>, vector<48x256xf32> -> vector<48x256xf32>
    %63 = vector.extract_strided_slice %61 {offsets = [0, 0], sizes = [32, 256], strides = [1, 1]} : vector<48x256xf32> to vector<32x256xf32>
    %64 = vector.extract_strided_slice %62 {offsets = [0, 0], sizes = [32, 256], strides = [1, 1]} : vector<48x256xf32> to vector<32x256xf32>
    %65 = arith.addf %63, %64 : vector<32x256xf32>
    %66 = arith.negf %65 : vector<32x256xf32>
    %67 = math.exp %66 : vector<32x256xf32>
    %cst_28 = arith.constant 1.000000e+00 : f32
    %68 = vector.broadcast %cst_28 : f32 to vector<32x256xf32>
    %69 = arith.addf %68, %67 : vector<32x256xf32>
    %70 = arith.divf %68, %69 : vector<32x256xf32>
    %71 = vector.extract_strided_slice %70 {offsets = [0, 0], sizes = [16, 256], strides = [1, 1]} : vector<32x256xf32> to vector<16x256xf32>
    %72 = vector.extract_strided_slice %70 {offsets = [16, 0], sizes = [16, 256], strides = [1, 1]} : vector<32x256xf32> to vector<16x256xf32>
    %73 = vector.extract_strided_slice %61 {offsets = [32, 0], sizes = [16, 256], strides = [1, 1]} : vector<48x256xf32> to vector<16x256xf32>
    %74 = vector.extract_strided_slice %62 {offsets = [32, 0], sizes = [16, 256], strides = [1, 1]} : vector<48x256xf32> to vector<16x256xf32>
    %75 = arith.addf %74, %11 : vector<16x256xf32>
    %76 = arith.mulf %71, %75 : vector<16x256xf32>
    %77 = arith.addf %73, %76 : vector<16x256xf32>
    %78 = math.tanh %77 : vector<16x256xf32>
    %cst_29 = arith.constant 1.000000e+00 : f32
    %79 = vector.broadcast %cst_29 : f32 to vector<16x256xf32>
    %80 = arith.subf %79, %72 : vector<16x256xf32>
    %81 = arith.mulf %80, %78 : vector<16x256xf32>
    %82 = arith.mulf %72, %59 : vector<16x256xf32>
    %83 = arith.addf %81, %82 : vector<16x256xf32>
    %c0_30 = arith.constant 0 : index
    %c512_31 = arith.constant 512 : index
    %84 = vector.load %arg14[%c0_30, %c512_31] : memref<16x2048xf32, #tpu.memory_space<vmem>>, vector<16x256xf32>
    tpu.vector_store %arg14[%c0_30, %c512_31], %83 {strides = array<i32>} : memref<16x2048xf32, #tpu.memory_space<vmem>>, vector<16x256xf32>,
    %c0_32 = arith.constant 0 : index
    %c768 = arith.constant 768 : index
    %85 = vector.load %arg13[%c0_32, %c768] : memref<48x2048xf32, #tpu.memory_space<vmem>>, vector<48x256xf32>
    %cst_33 = arith.constant dense<0.000000e+00> : vector<48x256xf32>
    %86 = tpu.matmul %8, %83, %cst_33 {dimension_numbers = #tpu.dot_dimension_numbers<[1], [0], [0], [1], [0, 0, 1, 1], [], []>} : vector<48x16xf32>, vector<16x256xf32>, vector<48x256xf32> -> vector<48x256xf32>
    %87 = vector.extract_strided_slice %85 {offsets = [0, 0], sizes = [32, 256], strides = [1, 1]} : vector<48x256xf32> to vector<32x256xf32>
    %88 = vector.extract_strided_slice %86 {offsets = [0, 0], sizes = [32, 256], strides = [1, 1]} : vector<48x256xf32> to vector<32x256xf32>
    %89 = arith.addf %87, %88 : vector<32x256xf32>
    %90 = arith.negf %89 : vector<32x256xf32>
    %91 = math.exp %90 : vector<32x256xf32>
    %cst_34 = arith.constant 1.000000e+00 : f32
    %92 = vector.broadcast %cst_34 : f32 to vector<32x256xf32>
    %93 = arith.addf %92, %91 : vector<32x256xf32>
    %94 = arith.divf %92, %93 : vector<32x256xf32>
    %95 = vector.extract_strided_slice %94 {offsets = [0, 0], sizes = [16, 256], strides = [1, 1]} : vector<32x256xf32> to vector<16x256xf32>
    %96 = vector.extract_strided_slice %94 {offsets = [16, 0], sizes = [16, 256], strides = [1, 1]} : vector<32x256xf32> to vector<16x256xf32>
    %97 = vector.extract_strided_slice %85 {offsets = [32, 0], sizes = [16, 256], strides = [1, 1]} : vector<48x256xf32> to vector<16x256xf32>
    %98 = vector.extract_strided_slice %86 {offsets = [32, 0], sizes = [16, 256], strides = [1, 1]} : vector<48x256xf32> to vector<16x256xf32>
    %99 = arith.addf %98, %11 : vector<16x256xf32>
    %100 = arith.mulf %95, %99 : vector<16x256xf32>
    %101 = arith.addf %97, %100 : vector<16x256xf32>
    %102 = math.tanh %101 : vector<16x256xf32>
    %cst_35 = arith.constant 1.000000e+00 : f32
    %103 = vector.broadcast %cst_35 : f32 to vector<16x256xf32>
    %104 = arith.subf %103, %96 : vector<16x256xf32>
    %105 = arith.mulf %104, %102 : vector<16x256xf32>
    %106 = arith.mulf %96, %83 : vector<16x256xf32>
    %107 = arith.addf %105, %106 : vector<16x256xf32>
    %c0_36 = arith.constant 0 : index
    %c768_37 = arith.constant 768 : index
    %108 = vector.load %arg14[%c0_36, %c768_37] : memref<16x2048xf32, #tpu.memory_space<vmem>>, vector<16x256xf32>
    tpu.vector_store %arg14[%c0_36, %c768_37], %107 {strides = array<i32>} : memref<16x2048xf32, #tpu.memory_space<vmem>>, vector<16x256xf32>,
    %c0_38 = arith.constant 0 : index
    %c1024 = arith.constant 1024 : index
    %109 = vector.load %arg13[%c0_38, %c1024] : memref<48x2048xf32, #tpu.memory_space<vmem>>, vector<48x256xf32>
    %cst_39 = arith.constant dense<0.000000e+00> : vector<48x256xf32>
    %110 = tpu.matmul %8, %107, %cst_39 {dimension_numbers = #tpu.dot_dimension_numbers<[1], [0], [0], [1], [0, 0, 1, 1], [], []>} : vector<48x16xf32>, vector<16x256xf32>, vector<48x256xf32> -> vector<48x256xf32>
    %111 = vector.extract_strided_slice %109 {offsets = [0, 0], sizes = [32, 256], strides = [1, 1]} : vector<48x256xf32> to vector<32x256xf32>
    %112 = vector.extract_strided_slice %110 {offsets = [0, 0], sizes = [32, 256], strides = [1, 1]} : vector<48x256xf32> to vector<32x256xf32>
    %113 = arith.addf %111, %112 : vector<32x256xf32>
    %114 = arith.negf %113 : vector<32x256xf32>
    %115 = math.exp %114 : vector<32x256xf32>
    %cst_40 = arith.constant 1.000000e+00 : f32
    %116 = vector.broadcast %cst_40 : f32 to vector<32x256xf32>
    %117 = arith.addf %116, %115 : vector<32x256xf32>
    %118 = arith.divf %116, %117 : vector<32x256xf32>
    %119 = vector.extract_strided_slice %118 {offsets = [0, 0], sizes = [16, 256], strides = [1, 1]} : vector<32x256xf32> to vector<16x256xf32>
    %120 = vector.extract_strided_slice %118 {offsets = [16, 0], sizes = [16, 256], strides = [1, 1]} : vector<32x256xf32> to vector<16x256xf32>
    %121 = vector.extract_strided_slice %109 {offsets = [32, 0], sizes = [16, 256], strides = [1, 1]} : vector<48x256xf32> to vector<16x256xf32>
    %122 = vector.extract_strided_slice %110 {offsets = [32, 0], sizes = [16, 256], strides = [1, 1]} : vector<48x256xf32> to vector<16x256xf32>
    %123 = arith.addf %122, %11 : vector<16x256xf32>
    %124 = arith.mulf %119, %123 : vector<16x256xf32>
    %125 = arith.addf %121, %124 : vector<16x256xf32>
    %126 = math.tanh %125 : vector<16x256xf32>
    %cst_41 = arith.constant 1.000000e+00 : f32
    %127 = vector.broadcast %cst_41 : f32 to vector<16x256xf32>
    %128 = arith.subf %127, %120 : vector<16x256xf32>
    %129 = arith.mulf %128, %126 : vector<16x256xf32>
    %130 = arith.mulf %120, %107 : vector<16x256xf32>
    %131 = arith.addf %129, %130 : vector<16x256xf32>
    %c0_42 = arith.constant 0 : index
    %c1024_43 = arith.constant 1024 : index
    %132 = vector.load %arg14[%c0_42, %c1024_43] : memref<16x2048xf32, #tpu.memory_space<vmem>>, vector<16x256xf32>
    tpu.vector_store %arg14[%c0_42, %c1024_43], %131 {strides = array<i32>} : memref<16x2048xf32, #tpu.memory_space<vmem>>, vector<16x256xf32>,
    %c0_44 = arith.constant 0 : index
    %c1280 = arith.constant 1280 : index
    %133 = vector.load %arg13[%c0_44, %c1280] : memref<48x2048xf32, #tpu.memory_space<vmem>>, vector<48x256xf32>
    %cst_45 = arith.constant dense<0.000000e+00> : vector<48x256xf32>
    %134 = tpu.matmul %8, %131, %cst_45 {dimension_numbers = #tpu.dot_dimension_numbers<[1], [0], [0], [1], [0, 0, 1, 1], [], []>} : vector<48x16xf32>, vector<16x256xf32>, vector<48x256xf32> -> vector<48x256xf32>
    %135 = vector.extract_strided_slice %133 {offsets = [0, 0], sizes = [32, 256], strides = [1, 1]} : vector<48x256xf32> to vector<32x256xf32>
    %136 = vector.extract_strided_slice %134 {offsets = [0, 0], sizes = [32, 256], strides = [1, 1]} : vector<48x256xf32> to vector<32x256xf32>
    %137 = arith.addf %135, %136 : vector<32x256xf32>
    %138 = arith.negf %137 : vector<32x256xf32>
    %139 = math.exp %138 : vector<32x256xf32>
    %cst_46 = arith.constant 1.000000e+00 : f32
    %140 = vector.broadcast %cst_46 : f32 to vector<32x256xf32>
    %141 = arith.addf %140, %139 : vector<32x256xf32>
    %142 = arith.divf %140, %141 : vector<32x256xf32>
    %143 = vector.extract_strided_slice %142 {offsets = [0, 0], sizes = [16, 256], strides = [1, 1]} : vector<32x256xf32> to vector<16x256xf32>
    %144 = vector.extract_strided_slice %142 {offsets = [16, 0], sizes = [16, 256], strides = [1, 1]} : vector<32x256xf32> to vector<16x256xf32>
    %145 = vector.extract_strided_slice %133 {offsets = [32, 0], sizes = [16, 256], strides = [1, 1]} : vector<48x256xf32> to vector<16x256xf32>
    %146 = vector.extract_strided_slice %134 {offsets = [32, 0], sizes = [16, 256], strides = [1, 1]} : vector<48x256xf32> to vector<16x256xf32>
    %147 = arith.addf %146, %11 : vector<16x256xf32>
    %148 = arith.mulf %143, %147 : vector<16x256xf32>
    %149 = arith.addf %145, %148 : vector<16x256xf32>
    %150 = math.tanh %149 : vector<16x256xf32>
    %cst_47 = arith.constant 1.000000e+00 : f32
    %151 = vector.broadcast %cst_47 : f32 to vector<16x256xf32>
    %152 = arith.subf %151, %144 : vector<16x256xf32>
    %153 = arith.mulf %152, %150 : vector<16x256xf32>
    %154 = arith.mulf %144, %131 : vector<16x256xf32>
    %155 = arith.addf %153, %154 : vector<16x256xf32>
    %c0_48 = arith.constant 0 : index
    %c1280_49 = arith.constant 1280 : index
    %156 = vector.load %arg14[%c0_48, %c1280_49] : memref<16x2048xf32, #tpu.memory_space<vmem>>, vector<16x256xf32>
    tpu.vector_store %arg14[%c0_48, %c1280_49], %155 {strides = array<i32>} : memref<16x2048xf32, #tpu.memory_space<vmem>>, vector<16x256xf32>,
    %c0_50 = arith.constant 0 : index
    %c1536 = arith.constant 1536 : index
    %157 = vector.load %arg13[%c0_50, %c1536] : memref<48x2048xf32, #tpu.memory_space<vmem>>, vector<48x256xf32>
    %cst_51 = arith.constant dense<0.000000e+00> : vector<48x256xf32>
    %158 = tpu.matmul %8, %155, %cst_51 {dimension_numbers = #tpu.dot_dimension_numbers<[1], [0], [0], [1], [0, 0, 1, 1], [], []>} : vector<48x16xf32>, vector<16x256xf32>, vector<48x256xf32> -> vector<48x256xf32>
    %159 = vector.extract_strided_slice %157 {offsets = [0, 0], sizes = [32, 256], strides = [1, 1]} : vector<48x256xf32> to vector<32x256xf32>
    %160 = vector.extract_strided_slice %158 {offsets = [0, 0], sizes = [32, 256], strides = [1, 1]} : vector<48x256xf32> to vector<32x256xf32>
    %161 = arith.addf %159, %160 : vector<32x256xf32>
    %162 = arith.negf %161 : vector<32x256xf32>
    %163 = math.exp %162 : vector<32x256xf32>
    %cst_52 = arith.constant 1.000000e+00 : f32
    %164 = vector.broadcast %cst_52 : f32 to vector<32x256xf32>
    %165 = arith.addf %164, %163 : vector<32x256xf32>
    %166 = arith.divf %164, %165 : vector<32x256xf32>
    %167 = vector.extract_strided_slice %166 {offsets = [0, 0], sizes = [16, 256], strides = [1, 1]} : vector<32x256xf32> to vector<16x256xf32>
    %168 = vector.extract_strided_slice %166 {offsets = [16, 0], sizes = [16, 256], strides = [1, 1]} : vector<32x256xf32> to vector<16x256xf32>
    %169 = vector.extract_strided_slice %157 {offsets = [32, 0], sizes = [16, 256], strides = [1, 1]} : vector<48x256xf32> to vector<16x256xf32>
    %170 = vector.extract_strided_slice %158 {offsets = [32, 0], sizes = [16, 256], strides = [1, 1]} : vector<48x256xf32> to vector<16x256xf32>
    %171 = arith.addf %170, %11 : vector<16x256xf32>
    %172 = arith.mulf %167, %171 : vector<16x256xf32>
    %173 = arith.addf %169, %172 : vector<16x256xf32>
    %174 = math.tanh %173 : vector<16x256xf32>
    %cst_53 = arith.constant 1.000000e+00 : f32
    %175 = vector.broadcast %cst_53 : f32 to vector<16x256xf32>
    %176 = arith.subf %175, %168 : vector<16x256xf32>
    %177 = arith.mulf %176, %174 : vector<16x256xf32>
    %178 = arith.mulf %168, %155 : vector<16x256xf32>
    %179 = arith.addf %177, %178 : vector<16x256xf32>
    %c0_54 = arith.constant 0 : index
    %c1536_55 = arith.constant 1536 : index
    %180 = vector.load %arg14[%c0_54, %c1536_55] : memref<16x2048xf32, #tpu.memory_space<vmem>>, vector<16x256xf32>
    tpu.vector_store %arg14[%c0_54, %c1536_55], %179 {strides = array<i32>} : memref<16x2048xf32, #tpu.memory_space<vmem>>, vector<16x256xf32>,
    %c0_56 = arith.constant 0 : index
    %c1792 = arith.constant 1792 : index
    %181 = vector.load %arg13[%c0_56, %c1792] : memref<48x2048xf32, #tpu.memory_space<vmem>>, vector<48x256xf32>
    %cst_57 = arith.constant dense<0.000000e+00> : vector<48x256xf32>
    %182 = tpu.matmul %8, %179, %cst_57 {dimension_numbers = #tpu.dot_dimension_numbers<[1], [0], [0], [1], [0, 0, 1, 1], [], []>} : vector<48x16xf32>, vector<16x256xf32>, vector<48x256xf32> -> vector<48x256xf32>
    %183 = vector.extract_strided_slice %181 {offsets = [0, 0], sizes = [32, 256], strides = [1, 1]} : vector<48x256xf32> to vector<32x256xf32>
    %184 = vector.extract_strided_slice %182 {offsets = [0, 0], sizes = [32, 256], strides = [1, 1]} : vector<48x256xf32> to vector<32x256xf32>
    %185 = arith.addf %183, %184 : vector<32x256xf32>
    %186 = arith.negf %185 : vector<32x256xf32>
    %187 = math.exp %186 : vector<32x256xf32>
    %cst_58 = arith.constant 1.000000e+00 : f32
    %188 = vector.broadcast %cst_58 : f32 to vector<32x256xf32>
    %189 = arith.addf %188, %187 : vector<32x256xf32>
    %190 = arith.divf %188, %189 : vector<32x256xf32>
    %191 = vector.extract_strided_slice %190 {offsets = [0, 0], sizes = [16, 256], strides = [1, 1]} : vector<32x256xf32> to vector<16x256xf32>
    %192 = vector.extract_strided_slice %190 {offsets = [16, 0], sizes = [16, 256], strides = [1, 1]} : vector<32x256xf32> to vector<16x256xf32>
    %193 = vector.extract_strided_slice %181 {offsets = [32, 0], sizes = [16, 256], strides = [1, 1]} : vector<48x256xf32> to vector<16x256xf32>
    %194 = vector.extract_strided_slice %182 {offsets = [32, 0], sizes = [16, 256], strides = [1, 1]} : vector<48x256xf32> to vector<16x256xf32>
    %195 = arith.addf %194, %11 : vector<16x256xf32>
    %196 = arith.mulf %191, %195 : vector<16x256xf32>
    %197 = arith.addf %193, %196 : vector<16x256xf32>
    %198 = math.tanh %197 : vector<16x256xf32>
    %cst_59 = arith.constant 1.000000e+00 : f32
    %199 = vector.broadcast %cst_59 : f32 to vector<16x256xf32>
    %200 = arith.subf %199, %192 : vector<16x256xf32>
    %201 = arith.mulf %200, %198 : vector<16x256xf32>
    %202 = arith.mulf %192, %179 : vector<16x256xf32>
    %203 = arith.addf %201, %202 : vector<16x256xf32>
    %c0_60 = arith.constant 0 : index
    %c1792_61 = arith.constant 1792 : index
    %204 = vector.load %arg14[%c0_60, %c1792_61] : memref<16x2048xf32, #tpu.memory_space<vmem>>, vector<16x256xf32>
    tpu.vector_store %arg14[%c0_60, %c1792_61], %203 {strides = array<i32>} : memref<16x2048xf32, #tpu.memory_space<vmem>>, vector<16x256xf32>,
    %c0_62 = arith.constant 0 : index
    %c0_63 = arith.constant 0 : index
    %205 = vector.load %arg6[%c0_62, %c0_63] : memref<24x16xf32, #tpu.memory_space<vmem>>, vector<24x16xf32>
    %c0_64 = arith.constant 0 : index
    %c0_65 = arith.constant 0 : index
    %206 = vector.load %arg14[%c0_64, %c0_65] : memref<16x2048xf32, #tpu.memory_space<vmem>>, vector<16x2048xf32>
    %cst_66 = arith.constant dense<0.000000e+00> : vector<24x2048xf32>
    %207 = tpu.matmul %205, %206, %cst_66 {dimension_numbers = #tpu.dot_dimension_numbers<[1], [0], [0], [1], [0, 0, 1, 1], [], []>} : vector<24x16xf32>, vector<16x2048xf32>, vector<24x2048xf32> -> vector<24x2048xf32>
    %c0_67 = arith.constant 0 : index
    %c0_68 = arith.constant 0 : index
    %208 = vector.load %arg8[%c0_67, %c0_68] : memref<24x1xf32, #tpu.memory_space<vmem>>, vector<24x1xf32>
    %209 = vector.broadcast %208 : vector<24x1xf32> to vector<24x2048xf32>
    %210 = arith.addf %207, %209 : vector<24x2048xf32>
    %c0_69 = arith.constant 0 : index
    %c0_70 = arith.constant 0 : index
    %211 = vector.load %arg15[%c0_69, %c0_70] : memref<24x2048xf32, #tpu.memory_space<vmem>>, vector<24x2048xf32>
    tpu.vector_store %arg15[%c0_69, %c0_70], %210 {strides = array<i32>} : memref<24x2048xf32, #tpu.memory_space<vmem>>, vector<24x2048xf32>,
    %c0_71 = arith.constant 0 : index
    %c0_72 = arith.constant 0 : index
    %212 = vector.load %arg7[%c0_71, %c0_72] : memref<24x8xf32, #tpu.memory_space<vmem>>, vector<24x8xf32>
    %c0_73 = arith.constant 0 : index
    %c0_74 = arith.constant 0 : index
    %213 = vector.load %arg9[%c0_73, %c0_74] : memref<8x1xf32, #tpu.memory_space<vmem>>, vector<8x1xf32>
    %214 = vector.shape_cast %213 : vector<8x1xf32> to vector<8x1xf32>
    %215 = vector.broadcast %214 : vector<8x1xf32> to vector<8x256xf32>
    %cst_75 = arith.constant 0.000000e+00 : f32
    %216 = vector.broadcast %cst_75 : f32 to vector<8x256xf32>
    %c0_76 = arith.constant 0 : index
    %c0_77 = arith.constant 0 : index
    %217 = vector.load %arg15[%c0_76, %c0_77] : memref<24x2048xf32, #tpu.memory_space<vmem>>, vector<24x256xf32>
    %cst_78 = arith.constant dense<0.000000e+00> : vector<24x256xf32>
    %218 = tpu.matmul %212, %216, %cst_78 {dimension_numbers = #tpu.dot_dimension_numbers<[1], [0], [0], [1], [0, 0, 1, 1], [], []>} : vector<24x8xf32>, vector<8x256xf32>, vector<24x256xf32> -> vector<24x256xf32>
    %219 = vector.extract_strided_slice %217 {offsets = [0, 0], sizes = [16, 256], strides = [1, 1]} : vector<24x256xf32> to vector<16x256xf32>
    %220 = vector.extract_strided_slice %218 {offsets = [0, 0], sizes = [16, 256], strides = [1, 1]} : vector<24x256xf32> to vector<16x256xf32>
    %221 = arith.addf %219, %220 : vector<16x256xf32>
    %222 = arith.negf %221 : vector<16x256xf32>
    %223 = math.exp %222 : vector<16x256xf32>
    %cst_79 = arith.constant 1.000000e+00 : f32
    %224 = vector.broadcast %cst_79 : f32 to vector<16x256xf32>
    %225 = arith.addf %224, %223 : vector<16x256xf32>
    %226 = arith.divf %224, %225 : vector<16x256xf32>
    %227 = vector.extract_strided_slice %226 {offsets = [0, 0], sizes = [8, 256], strides = [1, 1]} : vector<16x256xf32> to vector<8x256xf32>
    %228 = vector.extract_strided_slice %226 {offsets = [8, 0], sizes = [8, 256], strides = [1, 1]} : vector<16x256xf32> to vector<8x256xf32>
    %229 = vector.extract_strided_slice %217 {offsets = [16, 0], sizes = [8, 256], strides = [1, 1]} : vector<24x256xf32> to vector<8x256xf32>
    %230 = vector.extract_strided_slice %218 {offsets = [16, 0], sizes = [8, 256], strides = [1, 1]} : vector<24x256xf32> to vector<8x256xf32>
    %231 = arith.addf %230, %215 : vector<8x256xf32>
    %232 = arith.mulf %227, %231 : vector<8x256xf32>
    %233 = arith.addf %229, %232 : vector<8x256xf32>
    %234 = math.tanh %233 : vector<8x256xf32>
    %cst_80 = arith.constant 1.000000e+00 : f32
    %235 = vector.broadcast %cst_80 : f32 to vector<8x256xf32>
    %236 = arith.subf %235, %228 : vector<8x256xf32>
    %237 = arith.mulf %236, %234 : vector<8x256xf32>
    %238 = arith.mulf %228, %216 : vector<8x256xf32>
    %239 = arith.addf %237, %238 : vector<8x256xf32>
    %c0_81 = arith.constant 0 : index
    %c0_82 = arith.constant 0 : index
    %240 = vector.load %arg16[%c0_81, %c0_82] : memref<8x2048xf32, #tpu.memory_space<vmem>>, vector<8x256xf32>
    tpu.vector_store %arg16[%c0_81, %c0_82], %239 {strides = array<i32>} : memref<8x2048xf32, #tpu.memory_space<vmem>>, vector<8x256xf32>,
    %c0_83 = arith.constant 0 : index
    %c256_84 = arith.constant 256 : index
    %241 = vector.load %arg15[%c0_83, %c256_84] : memref<24x2048xf32, #tpu.memory_space<vmem>>, vector<24x256xf32>
    %cst_85 = arith.constant dense<0.000000e+00> : vector<24x256xf32>
    %242 = tpu.matmul %212, %239, %cst_85 {dimension_numbers = #tpu.dot_dimension_numbers<[1], [0], [0], [1], [0, 0, 1, 1], [], []>} : vector<24x8xf32>, vector<8x256xf32>, vector<24x256xf32> -> vector<24x256xf32>
    %243 = vector.extract_strided_slice %241 {offsets = [0, 0], sizes = [16, 256], strides = [1, 1]} : vector<24x256xf32> to vector<16x256xf32>
    %244 = vector.extract_strided_slice %242 {offsets = [0, 0], sizes = [16, 256], strides = [1, 1]} : vector<24x256xf32> to vector<16x256xf32>
    %245 = arith.addf %243, %244 : vector<16x256xf32>
    %246 = arith.negf %245 : vector<16x256xf32>
    %247 = math.exp %246 : vector<16x256xf32>
    %cst_86 = arith.constant 1.000000e+00 : f32
    %248 = vector.broadcast %cst_86 : f32 to vector<16x256xf32>
    %249 = arith.addf %248, %247 : vector<16x256xf32>
    %250 = arith.divf %248, %249 : vector<16x256xf32>
    %251 = vector.extract_strided_slice %250 {offsets = [0, 0], sizes = [8, 256], strides = [1, 1]} : vector<16x256xf32> to vector<8x256xf32>
    %252 = vector.extract_strided_slice %250 {offsets = [8, 0], sizes = [8, 256], strides = [1, 1]} : vector<16x256xf32> to vector<8x256xf32>
    %253 = vector.extract_strided_slice %241 {offsets = [16, 0], sizes = [8, 256], strides = [1, 1]} : vector<24x256xf32> to vector<8x256xf32>
    %254 = vector.extract_strided_slice %242 {offsets = [16, 0], sizes = [8, 256], strides = [1, 1]} : vector<24x256xf32> to vector<8x256xf32>
    %255 = arith.addf %254, %215 : vector<8x256xf32>
    %256 = arith.mulf %251, %255 : vector<8x256xf32>
    %257 = arith.addf %253, %256 : vector<8x256xf32>
    %258 = math.tanh %257 : vector<8x256xf32>
    %cst_87 = arith.constant 1.000000e+00 : f32
    %259 = vector.broadcast %cst_87 : f32 to vector<8x256xf32>
    %260 = arith.subf %259, %252 : vector<8x256xf32>
    %261 = arith.mulf %260, %258 : vector<8x256xf32>
    %262 = arith.mulf %252, %239 : vector<8x256xf32>
    %263 = arith.addf %261, %262 : vector<8x256xf32>
    %c0_88 = arith.constant 0 : index
    %c256_89 = arith.constant 256 : index
    %264 = vector.load %arg16[%c0_88, %c256_89] : memref<8x2048xf32, #tpu.memory_space<vmem>>, vector<8x256xf32>
    tpu.vector_store %arg16[%c0_88, %c256_89], %263 {strides = array<i32>} : memref<8x2048xf32, #tpu.memory_space<vmem>>, vector<8x256xf32>,
    %c0_90 = arith.constant 0 : index
    %c512_91 = arith.constant 512 : index
    %265 = vector.load %arg15[%c0_90, %c512_91] : memref<24x2048xf32, #tpu.memory_space<vmem>>, vector<24x256xf32>
    %cst_92 = arith.constant dense<0.000000e+00> : vector<24x256xf32>
    %266 = tpu.matmul %212, %263, %cst_92 {dimension_numbers = #tpu.dot_dimension_numbers<[1], [0], [0], [1], [0, 0, 1, 1], [], []>} : vector<24x8xf32>, vector<8x256xf32>, vector<24x256xf32> -> vector<24x256xf32>
    %267 = vector.extract_strided_slice %265 {offsets = [0, 0], sizes = [16, 256], strides = [1, 1]} : vector<24x256xf32> to vector<16x256xf32>
    %268 = vector.extract_strided_slice %266 {offsets = [0, 0], sizes = [16, 256], strides = [1, 1]} : vector<24x256xf32> to vector<16x256xf32>
    %269 = arith.addf %267, %268 : vector<16x256xf32>
    %270 = arith.negf %269 : vector<16x256xf32>
    %271 = math.exp %270 : vector<16x256xf32>
    %cst_93 = arith.constant 1.000000e+00 : f32
    %272 = vector.broadcast %cst_93 : f32 to vector<16x256xf32>
    %273 = arith.addf %272, %271 : vector<16x256xf32>
    %274 = arith.divf %272, %273 : vector<16x256xf32>
    %275 = vector.extract_strided_slice %274 {offsets = [0, 0], sizes = [8, 256], strides = [1, 1]} : vector<16x256xf32> to vector<8x256xf32>
    %276 = vector.extract_strided_slice %274 {offsets = [8, 0], sizes = [8, 256], strides = [1, 1]} : vector<16x256xf32> to vector<8x256xf32>
    %277 = vector.extract_strided_slice %265 {offsets = [16, 0], sizes = [8, 256], strides = [1, 1]} : vector<24x256xf32> to vector<8x256xf32>
    %278 = vector.extract_strided_slice %266 {offsets = [16, 0], sizes = [8, 256], strides = [1, 1]} : vector<24x256xf32> to vector<8x256xf32>
    %279 = arith.addf %278, %215 : vector<8x256xf32>
    %280 = arith.mulf %275, %279 : vector<8x256xf32>
    %281 = arith.addf %277, %280 : vector<8x256xf32>
    %282 = math.tanh %281 : vector<8x256xf32>
    %cst_94 = arith.constant 1.000000e+00 : f32
    %283 = vector.broadcast %cst_94 : f32 to vector<8x256xf32>
    %284 = arith.subf %283, %276 : vector<8x256xf32>
    %285 = arith.mulf %284, %282 : vector<8x256xf32>
    %286 = arith.mulf %276, %263 : vector<8x256xf32>
    %287 = arith.addf %285, %286 : vector<8x256xf32>
    %c0_95 = arith.constant 0 : index
    %c512_96 = arith.constant 512 : index
    %288 = vector.load %arg16[%c0_95, %c512_96] : memref<8x2048xf32, #tpu.memory_space<vmem>>, vector<8x256xf32>
    tpu.vector_store %arg16[%c0_95, %c512_96], %287 {strides = array<i32>} : memref<8x2048xf32, #tpu.memory_space<vmem>>, vector<8x256xf32>,
    %c0_97 = arith.constant 0 : index
    %c768_98 = arith.constant 768 : index
    %289 = vector.load %arg15[%c0_97, %c768_98] : memref<24x2048xf32, #tpu.memory_space<vmem>>, vector<24x256xf32>
    %cst_99 = arith.constant dense<0.000000e+00> : vector<24x256xf32>
    %290 = tpu.matmul %212, %287, %cst_99 {dimension_numbers = #tpu.dot_dimension_numbers<[1], [0], [0], [1], [0, 0, 1, 1], [], []>} : vector<24x8xf32>, vector<8x256xf32>, vector<24x256xf32> -> vector<24x256xf32>
    %291 = vector.extract_strided_slice %289 {offsets = [0, 0], sizes = [16, 256], strides = [1, 1]} : vector<24x256xf32> to vector<16x256xf32>
    %292 = vector.extract_strided_slice %290 {offsets = [0, 0], sizes = [16, 256], strides = [1, 1]} : vector<24x256xf32> to vector<16x256xf32>
    %293 = arith.addf %291, %292 : vector<16x256xf32>
    %294 = arith.negf %293 : vector<16x256xf32>
    %295 = math.exp %294 : vector<16x256xf32>
    %cst_100 = arith.constant 1.000000e+00 : f32
    %296 = vector.broadcast %cst_100 : f32 to vector<16x256xf32>
    %297 = arith.addf %296, %295 : vector<16x256xf32>
    %298 = arith.divf %296, %297 : vector<16x256xf32>
    %299 = vector.extract_strided_slice %298 {offsets = [0, 0], sizes = [8, 256], strides = [1, 1]} : vector<16x256xf32> to vector<8x256xf32>
    %300 = vector.extract_strided_slice %298 {offsets = [8, 0], sizes = [8, 256], strides = [1, 1]} : vector<16x256xf32> to vector<8x256xf32>
    %301 = vector.extract_strided_slice %289 {offsets = [16, 0], sizes = [8, 256], strides = [1, 1]} : vector<24x256xf32> to vector<8x256xf32>
    %302 = vector.extract_strided_slice %290 {offsets = [16, 0], sizes = [8, 256], strides = [1, 1]} : vector<24x256xf32> to vector<8x256xf32>
    %303 = arith.addf %302, %215 : vector<8x256xf32>
    %304 = arith.mulf %299, %303 : vector<8x256xf32>
    %305 = arith.addf %301, %304 : vector<8x256xf32>
    %306 = math.tanh %305 : vector<8x256xf32>
    %cst_101 = arith.constant 1.000000e+00 : f32
    %307 = vector.broadcast %cst_101 : f32 to vector<8x256xf32>
    %308 = arith.subf %307, %300 : vector<8x256xf32>
    %309 = arith.mulf %308, %306 : vector<8x256xf32>
    %310 = arith.mulf %300, %287 : vector<8x256xf32>
    %311 = arith.addf %309, %310 : vector<8x256xf32>
    %c0_102 = arith.constant 0 : index
    %c768_103 = arith.constant 768 : index
    %312 = vector.load %arg16[%c0_102, %c768_103] : memref<8x2048xf32, #tpu.memory_space<vmem>>, vector<8x256xf32>
    tpu.vector_store %arg16[%c0_102, %c768_103], %311 {strides = array<i32>} : memref<8x2048xf32, #tpu.memory_space<vmem>>, vector<8x256xf32>,
    %c0_104 = arith.constant 0 : index
    %c1024_105 = arith.constant 1024 : index
    %313 = vector.load %arg15[%c0_104, %c1024_105] : memref<24x2048xf32, #tpu.memory_space<vmem>>, vector<24x256xf32>
    %cst_106 = arith.constant dense<0.000000e+00> : vector<24x256xf32>
    %314 = tpu.matmul %212, %311, %cst_106 {dimension_numbers = #tpu.dot_dimension_numbers<[1], [0], [0], [1], [0, 0, 1, 1], [], []>} : vector<24x8xf32>, vector<8x256xf32>, vector<24x256xf32> -> vector<24x256xf32>
    %315 = vector.extract_strided_slice %313 {offsets = [0, 0], sizes = [16, 256], strides = [1, 1]} : vector<24x256xf32> to vector<16x256xf32>
    %316 = vector.extract_strided_slice %314 {offsets = [0, 0], sizes = [16, 256], strides = [1, 1]} : vector<24x256xf32> to vector<16x256xf32>
    %317 = arith.addf %315, %316 : vector<16x256xf32>
    %318 = arith.negf %317 : vector<16x256xf32>
    %319 = math.exp %318 : vector<16x256xf32>
    %cst_107 = arith.constant 1.000000e+00 : f32
    %320 = vector.broadcast %cst_107 : f32 to vector<16x256xf32>
    %321 = arith.addf %320, %319 : vector<16x256xf32>
    %322 = arith.divf %320, %321 : vector<16x256xf32>
    %323 = vector.extract_strided_slice %322 {offsets = [0, 0], sizes = [8, 256], strides = [1, 1]} : vector<16x256xf32> to vector<8x256xf32>
    %324 = vector.extract_strided_slice %322 {offsets = [8, 0], sizes = [8, 256], strides = [1, 1]} : vector<16x256xf32> to vector<8x256xf32>
    %325 = vector.extract_strided_slice %313 {offsets = [16, 0], sizes = [8, 256], strides = [1, 1]} : vector<24x256xf32> to vector<8x256xf32>
    %326 = vector.extract_strided_slice %314 {offsets = [16, 0], sizes = [8, 256], strides = [1, 1]} : vector<24x256xf32> to vector<8x256xf32>
    %327 = arith.addf %326, %215 : vector<8x256xf32>
    %328 = arith.mulf %323, %327 : vector<8x256xf32>
    %329 = arith.addf %325, %328 : vector<8x256xf32>
    %330 = math.tanh %329 : vector<8x256xf32>
    %cst_108 = arith.constant 1.000000e+00 : f32
    %331 = vector.broadcast %cst_108 : f32 to vector<8x256xf32>
    %332 = arith.subf %331, %324 : vector<8x256xf32>
    %333 = arith.mulf %332, %330 : vector<8x256xf32>
    %334 = arith.mulf %324, %311 : vector<8x256xf32>
    %335 = arith.addf %333, %334 : vector<8x256xf32>
    %c0_109 = arith.constant 0 : index
    %c1024_110 = arith.constant 1024 : index
    %336 = vector.load %arg16[%c0_109, %c1024_110] : memref<8x2048xf32, #tpu.memory_space<vmem>>, vector<8x256xf32>
    tpu.vector_store %arg16[%c0_109, %c1024_110], %335 {strides = array<i32>} : memref<8x2048xf32, #tpu.memory_space<vmem>>, vector<8x256xf32>,
    %c0_111 = arith.constant 0 : index
    %c1280_112 = arith.constant 1280 : index
    %337 = vector.load %arg15[%c0_111, %c1280_112] : memref<24x2048xf32, #tpu.memory_space<vmem>>, vector<24x256xf32>
    %cst_113 = arith.constant dense<0.000000e+00> : vector<24x256xf32>
    %338 = tpu.matmul %212, %335, %cst_113 {dimension_numbers = #tpu.dot_dimension_numbers<[1], [0], [0], [1], [0, 0, 1, 1], [], []>} : vector<24x8xf32>, vector<8x256xf32>, vector<24x256xf32> -> vector<24x256xf32>
    %339 = vector.extract_strided_slice %337 {offsets = [0, 0], sizes = [16, 256], strides = [1, 1]} : vector<24x256xf32> to vector<16x256xf32>
    %340 = vector.extract_strided_slice %338 {offsets = [0, 0], sizes = [16, 256], strides = [1, 1]} : vector<24x256xf32> to vector<16x256xf32>
    %341 = arith.addf %339, %340 : vector<16x256xf32>
    %342 = arith.negf %341 : vector<16x256xf32>
    %343 = math.exp %342 : vector<16x256xf32>
    %cst_114 = arith.constant 1.000000e+00 : f32
    %344 = vector.broadcast %cst_114 : f32 to vector<16x256xf32>
    %345 = arith.addf %344, %343 : vector<16x256xf32>
    %346 = arith.divf %344, %345 : vector<16x256xf32>
    %347 = vector.extract_strided_slice %346 {offsets = [0, 0], sizes = [8, 256], strides = [1, 1]} : vector<16x256xf32> to vector<8x256xf32>
    %348 = vector.extract_strided_slice %346 {offsets = [8, 0], sizes = [8, 256], strides = [1, 1]} : vector<16x256xf32> to vector<8x256xf32>
    %349 = vector.extract_strided_slice %337 {offsets = [16, 0], sizes = [8, 256], strides = [1, 1]} : vector<24x256xf32> to vector<8x256xf32>
    %350 = vector.extract_strided_slice %338 {offsets = [16, 0], sizes = [8, 256], strides = [1, 1]} : vector<24x256xf32> to vector<8x256xf32>
    %351 = arith.addf %350, %215 : vector<8x256xf32>
    %352 = arith.mulf %347, %351 : vector<8x256xf32>
    %353 = arith.addf %349, %352 : vector<8x256xf32>
    %354 = math.tanh %353 : vector<8x256xf32>
    %cst_115 = arith.constant 1.000000e+00 : f32
    %355 = vector.broadcast %cst_115 : f32 to vector<8x256xf32>
    %356 = arith.subf %355, %348 : vector<8x256xf32>
    %357 = arith.mulf %356, %354 : vector<8x256xf32>
    %358 = arith.mulf %348, %335 : vector<8x256xf32>
    %359 = arith.addf %357, %358 : vector<8x256xf32>
    %c0_116 = arith.constant 0 : index
    %c1280_117 = arith.constant 1280 : index
    %360 = vector.load %arg16[%c0_116, %c1280_117] : memref<8x2048xf32, #tpu.memory_space<vmem>>, vector<8x256xf32>
    tpu.vector_store %arg16[%c0_116, %c1280_117], %359 {strides = array<i32>} : memref<8x2048xf32, #tpu.memory_space<vmem>>, vector<8x256xf32>,
    %c0_118 = arith.constant 0 : index
    %c1536_119 = arith.constant 1536 : index
    %361 = vector.load %arg15[%c0_118, %c1536_119] : memref<24x2048xf32, #tpu.memory_space<vmem>>, vector<24x256xf32>
    %cst_120 = arith.constant dense<0.000000e+00> : vector<24x256xf32>
    %362 = tpu.matmul %212, %359, %cst_120 {dimension_numbers = #tpu.dot_dimension_numbers<[1], [0], [0], [1], [0, 0, 1, 1], [], []>} : vector<24x8xf32>, vector<8x256xf32>, vector<24x256xf32> -> vector<24x256xf32>
    %363 = vector.extract_strided_slice %361 {offsets = [0, 0], sizes = [16, 256], strides = [1, 1]} : vector<24x256xf32> to vector<16x256xf32>
    %364 = vector.extract_strided_slice %362 {offsets = [0, 0], sizes = [16, 256], strides = [1, 1]} : vector<24x256xf32> to vector<16x256xf32>
    %365 = arith.addf %363, %364 : vector<16x256xf32>
    %366 = arith.negf %365 : vector<16x256xf32>
    %367 = math.exp %366 : vector<16x256xf32>
    %cst_121 = arith.constant 1.000000e+00 : f32
    %368 = vector.broadcast %cst_121 : f32 to vector<16x256xf32>
    %369 = arith.addf %368, %367 : vector<16x256xf32>
    %370 = arith.divf %368, %369 : vector<16x256xf32>
    %371 = vector.extract_strided_slice %370 {offsets = [0, 0], sizes = [8, 256], strides = [1, 1]} : vector<16x256xf32> to vector<8x256xf32>
    %372 = vector.extract_strided_slice %370 {offsets = [8, 0], sizes = [8, 256], strides = [1, 1]} : vector<16x256xf32> to vector<8x256xf32>
    %373 = vector.extract_strided_slice %361 {offsets = [16, 0], sizes = [8, 256], strides = [1, 1]} : vector<24x256xf32> to vector<8x256xf32>
    %374 = vector.extract_strided_slice %362 {offsets = [16, 0], sizes = [8, 256], strides = [1, 1]} : vector<24x256xf32> to vector<8x256xf32>
    %375 = arith.addf %374, %215 : vector<8x256xf32>
    %376 = arith.mulf %371, %375 : vector<8x256xf32>
    %377 = arith.addf %373, %376 : vector<8x256xf32>
    %378 = math.tanh %377 : vector<8x256xf32>
    %cst_122 = arith.constant 1.000000e+00 : f32
    %379 = vector.broadcast %cst_122 : f32 to vector<8x256xf32>
    %380 = arith.subf %379, %372 : vector<8x256xf32>
    %381 = arith.mulf %380, %378 : vector<8x256xf32>
    %382 = arith.mulf %372, %359 : vector<8x256xf32>
    %383 = arith.addf %381, %382 : vector<8x256xf32>
    %c0_123 = arith.constant 0 : index
    %c1536_124 = arith.constant 1536 : index
    %384 = vector.load %arg16[%c0_123, %c1536_124] : memref<8x2048xf32, #tpu.memory_space<vmem>>, vector<8x256xf32>
    tpu.vector_store %arg16[%c0_123, %c1536_124], %383 {strides = array<i32>} : memref<8x2048xf32, #tpu.memory_space<vmem>>, vector<8x256xf32>,
    %c0_125 = arith.constant 0 : index
    %c1792_126 = arith.constant 1792 : index
    %385 = vector.load %arg15[%c0_125, %c1792_126] : memref<24x2048xf32, #tpu.memory_space<vmem>>, vector<24x256xf32>
    %cst_127 = arith.constant dense<0.000000e+00> : vector<24x256xf32>
    %386 = tpu.matmul %212, %383, %cst_127 {dimension_numbers = #tpu.dot_dimension_numbers<[1], [0], [0], [1], [0, 0, 1, 1], [], []>} : vector<24x8xf32>, vector<8x256xf32>, vector<24x256xf32> -> vector<24x256xf32>
    %387 = vector.extract_strided_slice %385 {offsets = [0, 0], sizes = [16, 256], strides = [1, 1]} : vector<24x256xf32> to vector<16x256xf32>
    %388 = vector.extract_strided_slice %386 {offsets = [0, 0], sizes = [16, 256], strides = [1, 1]} : vector<24x256xf32> to vector<16x256xf32>
    %389 = arith.addf %387, %388 : vector<16x256xf32>
    %390 = arith.negf %389 : vector<16x256xf32>
    %391 = math.exp %390 : vector<16x256xf32>
    %cst_128 = arith.constant 1.000000e+00 : f32
    %392 = vector.broadcast %cst_128 : f32 to vector<16x256xf32>
    %393 = arith.addf %392, %391 : vector<16x256xf32>
    %394 = arith.divf %392, %393 : vector<16x256xf32>
    %395 = vector.extract_strided_slice %394 {offsets = [0, 0], sizes = [8, 256], strides = [1, 1]} : vector<16x256xf32> to vector<8x256xf32>
    %396 = vector.extract_strided_slice %394 {offsets = [8, 0], sizes = [8, 256], strides = [1, 1]} : vector<16x256xf32> to vector<8x256xf32>
    %397 = vector.extract_strided_slice %385 {offsets = [16, 0], sizes = [8, 256], strides = [1, 1]} : vector<24x256xf32> to vector<8x256xf32>
    %398 = vector.extract_strided_slice %386 {offsets = [16, 0], sizes = [8, 256], strides = [1, 1]} : vector<24x256xf32> to vector<8x256xf32>
    %399 = arith.addf %398, %215 : vector<8x256xf32>
    %400 = arith.mulf %395, %399 : vector<8x256xf32>
    %401 = arith.addf %397, %400 : vector<8x256xf32>
    %402 = math.tanh %401 : vector<8x256xf32>
    %cst_129 = arith.constant 1.000000e+00 : f32
    %403 = vector.broadcast %cst_129 : f32 to vector<8x256xf32>
    %404 = arith.subf %403, %396 : vector<8x256xf32>
    %405 = arith.mulf %404, %402 : vector<8x256xf32>
    %406 = arith.mulf %396, %383 : vector<8x256xf32>
    %407 = arith.addf %405, %406 : vector<8x256xf32>
    %c0_130 = arith.constant 0 : index
    %c1792_131 = arith.constant 1792 : index
    %408 = vector.load %arg16[%c0_130, %c1792_131] : memref<8x2048xf32, #tpu.memory_space<vmem>>, vector<8x256xf32>
    tpu.vector_store %arg16[%c0_130, %c1792_131], %407 {strides = array<i32>} : memref<8x2048xf32, #tpu.memory_space<vmem>>, vector<8x256xf32>,
    %c0_132 = arith.constant 0 : index
    %c0_133 = arith.constant 0 : index
    %409 = vector.load %arg10[%c0_132, %c0_133] : memref<8x8xf32, #tpu.memory_space<vmem>>, vector<8x8xf32>
    %c0_134 = arith.constant 0 : index
    %c0_135 = arith.constant 0 : index
    %410 = vector.load %arg16[%c0_134, %c0_135] : memref<8x2048xf32, #tpu.memory_space<vmem>>, vector<8x2048xf32>
    %cst_136 = arith.constant dense<0.000000e+00> : vector<8x2048xf32>
    %411 = tpu.matmul %409, %410, %cst_136 {dimension_numbers = #tpu.dot_dimension_numbers<[1], [0], [0], [1], [0, 0, 1, 1], [], []>} : vector<8x8xf32>, vector<8x2048xf32>, vector<8x2048xf32> -> vector<8x2048xf32>
    %c0_137 = arith.constant 0 : index
    %c0_138 = arith.constant 0 : index
    %412 = vector.load %arg11[%c0_137, %c0_138] : memref<8x1xf32, #tpu.memory_space<vmem>>, vector<8x1xf32>
    %413 = vector.broadcast %412 : vector<8x1xf32> to vector<8x2048xf32>
    %414 = arith.addf %411, %413 : vector<8x2048xf32>
    %c0_139 = arith.constant 0 : index
    %c0_140 = arith.constant 0 : index
    %c0_141 = arith.constant 0 : index
    %415 = vector.load %arg12[%c0_139, %c0_140, %c0_141] : memref<1x8x2048xf32, #tpu.memory_space<vmem>>, vector<1x8x2048xf32>
    %416 = vector.shape_cast %415 : vector<1x8x2048xf32> to vector<8x2048xf32>
    %417 = vector.shape_cast %414 : vector<8x2048xf32> to vector<1x8x2048xf32>
    tpu.vector_store %arg12[%c0_139, %c0_140, %c0_141], %417 {strides = array<i32>} : memref<1x8x2048xf32, #tpu.memory_space<vmem>>, vector<1x8x2048xf32>,
    return
  }
  func.func @transform_0(%arg0: i32) -> (i32, i32, i32) {
    %c0_i32 = arith.constant 0 : i32
    %c0_i32_0 = arith.constant 0 : i32
    %c0_i32_1 = arith.constant 0 : i32
    return %arg0, %c0_i32, %c0_i32_0 : i32, i32, i32
  }
  func.func @transform_1(%arg0: i32) -> (i32, i32) {
    %c0_i32 = arith.constant 0 : i32
    %c0_i32_0 = arith.constant 0 : i32
    %c0_i32_1 = arith.constant 0 : i32
    return %c0_i32, %c0_i32_0 : i32, i32
  }
  func.func @transform_2(%arg0: i32) -> (i32, i32) {
    %c0_i32 = arith.constant 0 : i32
    %c0_i32_0 = arith.constant 0 : i32
    %c0_i32_1 = arith.constant 0 : i32
    return %c0_i32, %c0_i32_0 : i32, i32
  }
  func.func @transform_3(%arg0: i32) -> (i32, i32) {
    %c0_i32 = arith.constant 0 : i32
    %c0_i32_0 = arith.constant 0 : i32
    %c0_i32_1 = arith.constant 0 : i32
    return %c0_i32, %c0_i32_0 : i32, i32
  }
  func.func @transform_4(%arg0: i32) -> (i32, i32) {
    %c0_i32 = arith.constant 0 : i32
    %c0_i32_0 = arith.constant 0 : i32
    %c0_i32_1 = arith.constant 0 : i32
    return %c0_i32, %c0_i32_0 : i32, i32
  }
  func.func @transform_5(%arg0: i32) -> (i32, i32) {
    %c0_i32 = arith.constant 0 : i32
    %c0_i32_0 = arith.constant 0 : i32
    %c0_i32_1 = arith.constant 0 : i32
    return %c0_i32, %c0_i32_0 : i32, i32
  }
  func.func @transform_6(%arg0: i32) -> (i32, i32) {
    %c0_i32 = arith.constant 0 : i32
    %c0_i32_0 = arith.constant 0 : i32
    %c0_i32_1 = arith.constant 0 : i32
    return %c0_i32, %c0_i32_0 : i32, i32
  }
  func.func @transform_7(%arg0: i32) -> (i32, i32) {
    %c0_i32 = arith.constant 0 : i32
    %c0_i32_0 = arith.constant 0 : i32
    %c0_i32_1 = arith.constant 0 : i32
    return %c0_i32, %c0_i32_0 : i32, i32
  }
  func.func @transform_8(%arg0: i32) -> (i32, i32) {
    %c0_i32 = arith.constant 0 : i32
    %c0_i32_0 = arith.constant 0 : i32
    %c0_i32_1 = arith.constant 0 : i32
    return %c0_i32, %c0_i32_0 : i32, i32
  }
  func.func @transform_9(%arg0: i32) -> (i32, i32) {
    %c0_i32 = arith.constant 0 : i32
    %c0_i32_0 = arith.constant 0 : i32
    %c0_i32_1 = arith.constant 0 : i32
    return %c0_i32, %c0_i32_0 : i32, i32
  }
  func.func @transform_10(%arg0: i32) -> (i32, i32) {
    %c0_i32 = arith.constant 0 : i32
    %c0_i32_0 = arith.constant 0 : i32
    %c0_i32_1 = arith.constant 0 : i32
    return %c0_i32, %c0_i32_0 : i32, i32
  }
  func.func @transform_11(%arg0: i32) -> (i32, i32, i32) {
    %c0_i32 = arith.constant 0 : i32
    %c0_i32_0 = arith.constant 0 : i32
    %c0_i32_1 = arith.constant 0 : i32
    return %arg0, %c0_i32, %c0_i32_0 : i32, i32, i32
  }
}

</mosaic_0001>

<bundles_post_ra>
// kernel: gru_model_forward.1
= control target key start
LH: loop header
LB: loop body
LE: loop exit
PB: predicated region body
PF: predicated region fallthrough
CT: control target
= control target key end

     0   :  { %s6597_s17 = smov 0   ;;  %s9949_s0 = inlined_call_operand.vmem [shape: f32[4,3,2048], index: 0, kind: input, shape index: {}]   ;;  %s9950_s1 = inlined_call_operand.vmem [shape: f32[48,3], index: 1, kind: input, shape index: {}]   ;;  %s9951_s2 = inlined_call_operand.vmem [shape: f32[48,16], index: 2, kind: input, shape index: {}]   ;;  %s9952_s3 = inlined_call_operand.vmem [shape: f32[48,1], index: 3, kind: input, shape index: {}]   ;;  %s9953_s4 = inlined_call_operand.vmem [shape: f32[16,1], index: 4, kind: input, shape index: {}]   ;;  %s9954_s5 = inlined_call_operand.vmem [shape: f32[24,16], index: 5, kind: input, shape index: {}]   ;;  %s9955_s6 = inlined_call_operand.vmem [shape: f32[24,8], index: 6, kind: input, shape index: {}]   ;;  %s9956_s7 = inlined_call_operand.vmem [shape: f32[24,1], index: 7, kind: input, shape index: {}]   ;;  %s9957_s8 = inlined_call_operand.vmem [shape: f32[8,1], index: 8, kind: input, shape index: {}]   ;;  %s9958_s9 = inlined_call_operand.vmem [shape: f32[8,8], index: 9, kind: input, shape index: {}]   ;;  %s9959_s10 = inlined_call_operand.vmem [shape: f32[8,1], index: 10, kind: input, shape index: {}]   ;;  %s9960_s11 = inlined_call_operand.vmem [shape: f32[4,8,2048], index: 11, kind: output, shape index: {}]  }
   0x1 LB: > { %s5587_s18 = sadd.s32 4294967295, %s6533_s17   ;;  %p5591_p0 = scmp.ge.s32.totalorder %s6533_s17, 1  ;;  %s6533_s17 = sphi %s6597_s17, %s21_s17  }
   0x2   : > { %p337_p1 = scmp.lt.s32.totalorder %s6533_s17, 5 }
   0x4   : > { %p338_p2 = pnand %p5591_p0, %p337_p1 }
   0x6   : > { %341 = sbr.rel (%p338_p2) target bundleno = 3224 (0xc98), region = 64 }
   0xb   : > { %p377_p3 = scmp.lt.s32.totalorder %s5587_s18, 3  ;;  %v402_v0 = vld [vmem:[%s9952_s3 + $0x8] sm:$0xff]  ;;  %v6535_v1 = vmov 0   ;;  %v404_v2 = vld [vmem:[%s9952_s3 + $0x18] sm:$0xff]  ;;  %v401_v5 = vld [vmem:[%s9952_s3] sm:$0xff]  ;;  %vm491_vm0 = vcmask 1042432  }
   0xc   : > { %6017 = vset.pattern.permute.xlu0 %v6535_v1  ;;  %6018 = vset.pattern.permute.xlu1 %v6535_v1  ;;  %v403_v6 = vld [vmem:[%s9952_s3 + $0x10] sm:$0xff]  ;;  %v6630_v7 = vld [vmem:[%s9950_s1] sm:$0xff]  ;;  %vm472_vm1 = vcmask 23552   ;;  %v6649_v14 = vld [vmem:[%s9950_s1 + $0x8] sm:$0xff]  ;;  %v9961_v43 = vmov 0.0   ;;  %vm1210_vm2 = vcmask 130048  }
   0xd   : > { %s10261_s18 = smov (!%p377_p3, %s5587_s18), 3  ;;  %414 = vperm.xlu0 %6017, %v402_v0   ;;  %6019 = vset.pattern.permute.xlu2 %v6535_v1  ;;  %v405_v16 = vld [vmem:[%s9952_s3 + $0x20] sm:$0xff]  ;;  %v6666_v17 = vld [vmem:[%s9950_s1 + $0x10] sm:$0xff]  ;;  %v6680_v19 = vld [vmem:[%s9950_s1 + $0x18] sm:$0xff] }
   0xe   : > { %424 = vperm.xlu1 %6018, %v404_v2   ;;  %s6005_s23 = sshll.u32 %s10261_s18, 6  ;;  %v6693_v20 = vld [vmem:[%s9950_s1 + $0x20] sm:$0xff]  ;;  %v1187_v21 = vld [vmem:[%s9953_s4 + $0x8] sm:$0xff]  ;;  %v6932_v56 = vld [vmem:[%s9951_s2 + $0x10] sm:$0xff]  ;;  %s6006_s14 = sshll.u32 %s10261_s18, 7 }
   0xf   : > { %s6617_s26 = scalar_lea.vmem %s9949_s0, %s6005_s23  ;;  %1195 = vperm.xlu2 %6019, %v1187_v21   ;;  %v6710_v23 = vld [vmem:[%s9950_s1 + $0x28] sm:$0xff]  ;;  %v1186_v44 = vld [vmem:[%s9953_s4] sm:$0xff]  ;;  %v6941_v58 = vld [vmem:[%s9951_s2 + $0x18] sm:$0xff]  ;;  %s9802_s19 = scalar_lea.vmem %s9960_s11, %s6006_s14 }
  0x10   : > { %v393_v3 = vld [vmem:[%s6617_s26] sm:$0x77]  ;;  %v394_v4 = vld [vmem:[%s6617_s26 + $0x8] sm:$0x77]  ;;  %v395_v15 = vld [vmem:[%s6617_s26 + $0x10] sm:$0x77] }
  0x11   : > { %445 = vst [vmem:[#allocation1] ss:$2 sm:$0xff] %v393_v3  ;;  %v398_v8 = vld [vmem:[%s6617_s26 + $0x28] sm:$0x77]  ;;  %v397_v9 = vld [vmem:[%s6617_s26 + $0x20] sm:$0x77] }
  0x12   : > { %447 = vst [vmem:[#allocation1 + $0x10] ss:$2 sm:$0xff] %v394_v4  ;;  %v396_v22 = vld [vmem:[%s6617_s26 + $0x18] sm:$0x77]  ;;  %v406_v26 = vld [vmem:[%s9952_s3 + $0x28] sm:$0xff]  ;;  %v5187_v48 = vld [vmem:[%s9959_s10] sm:$0xff] }
  0x13   : > { %449 = vst [vmem:[#allocation1 + $0x20] ss:$2 sm:$0xff] %v395_v15  ;;  %v400_v25 = vld [vmem:[%s6617_s26 + $0x38] sm:$0x77]  ;;  %v399_v28 = vld [vmem:[%s6617_s26 + $0x30] sm:$0x77] }
  0x14   : > { %451 = vst [vmem:[#allocation1 + $0x30] ss:$2 sm:$0xff] %v396_v22  ;;  %v3440_v46 = vld [vmem:[%s9956_s7 + $0x8] sm:$0xff]  ;;  %v3933_v50 = vld [vmem:[%s9957_s8] sm:$0xff]  ;;  %v3441_v0 = vld [vmem:[%s9956_s7 + $0x10] sm:$0xff] }
  0x15   : > { %409 = vperm.xlu0 %6017, %v401_v5   ;;  %v6914_v52 = vld [vmem:[%s9951_s2] sm:$0xff]  ;;  %v6923_v54 = vld [vmem:[%s9951_s2 + $0x8] sm:$0xff] }
  0x16   : > { %419 = vperm.xlu1 %6018, %v403_v6   ;;  %v6950_v60 = vld [vmem:[%s9951_s2 + $0x20] sm:$0xff]  ;;  %v6962_v63 = vld [vmem:[%s9951_s2 + $0x28] sm:$0xff] }
  0x17   : > { %434 = vperm.xlu2 %6019, %v406_v26   ;;  %v3439_v61 = vld [vmem:[%s9956_s7] sm:$0xff] }
  0x18   : > { %v452_v10 = vld.sshfl [vmem:[#allocation1] sm:$0xff pattern:$0x75316420]  ;;  %v453_v11 = vld.sshfl [vmem:[#allocation1 + $0x8] sm:$0xff pattern:$0x75316420] }
  0x19   : > { %5596 = vmatpush.msk.msra.mxu0 %vm491_vm0, %v452_v10  ;;  %v454_v12 = vld.sshfl [vmem:[#allocation1 + $0x10] sm:$0xff pattern:$0x75316420]  ;;  %v455_v13 = vld.sshfl [vmem:[#allocation1 + $0x18] sm:$0xff pattern:$0x75316420]  ;;  %5603 = vmatpush.msk.msra.mxu1 %vm491_vm0, %v453_v11 }
  0x1a   : > { %5597 = vmatmul.msk.f32.vlgmr.msra.gmra.mxu0 %vm472_vm1, %v6630_v7  ;;  %5610 = vmatpush.msk.msra.mxu2 %vm491_vm0, %v454_v12  ;;  %461 = vst [vmem:[#allocation1 + $0x10] ss:$2 sm:$0xff] %v398_v8  ;;  %v456_v18 = vld.sshfl [vmem:[#allocation1 + $0x20] sm:$0xff pattern:$0x75316420] }
  0x1b   : > { %5617 = vmatpush.msk.msra.mxu3 %vm491_vm0, %v455_v13  ;;  %5611 = vmatmul.msk.f32.vlgmr.msra.gmra.mxu2 %vm472_vm1, %v6630_v7  ;;  %460 = vst [vmem:[#allocation1] ss:$2 sm:$0xff] %v397_v9  ;;  %v458_v24 = vld.sshfl [vmem:[#allocation1 + $0x30] sm:$0xff pattern:$0x75316420] }
  0x1c   : > { %5618 = vmatmul.msk.f32.vlgmr.msra.gmra.mxu3 %vm472_vm1, %v6630_v7  ;;  %5604 = vmatmul.msk.f32.vlgmr.msra.gmra.mxu1 %vm472_vm1, %v6630_v7  ;;  %v459_v27 = vld.sshfl [vmem:[#allocation1 + $0x38] sm:$0xff pattern:$0x75316420]  ;;  %v457_v29 = vld.sshfl [vmem:[#allocation1 + $0x28] sm:$0xff pattern:$0x75316420] }
  0x1d   : > { %5624 = vmatpush.msk.msrb.mxu0 %vm491_vm0, %v456_v18  ;;  %463 = vst [vmem:[#allocation1 + $0x30] ss:$2 sm:$0xff] %v400_v25  ;;  %5638 = vmatpush.msk.msrb.mxu2 %vm491_vm0, %v458_v24 }
  0x1e   : > { %429 = vperm.xlu1 %6018, %v405_v16   ;;  %5645 = vmatpush.msk.msrb.mxu3 %vm491_vm0, %v459_v27  ;;  %462 = vst [vmem:[#allocation1 + $0x20] ss:$2 sm:$0xff] %v399_v28 }
  0x1f   : > { %5631 = vmatpush.msk.msrb.mxu1 %vm491_vm0, %v457_v29  ;;  %1190 = vperm.xlu0 %6017, %v1186_v44  }
  0x20   : > { %3444 = vperm.xlu2 %6019, %v3439_v61  }
  0x21   : > { %v466_v31 = vld.sshfl [vmem:[#allocation1 + $0x10] sm:$0xff pattern:$0x75316420]  ;;  %v467_v32 = vld.sshfl [vmem:[#allocation1 + $0x18] sm:$0xff pattern:$0x75316420] }
  0x22   : > { %5598 = vmatmul.msk.f32.gmra.mxu0 %vm472_vm1, %v6649_v14  ;;  %v464_v30 = vld.sshfl [vmem:[#allocation1] sm:$0xff pattern:$0x75316420]  ;;  %5673 = vmatpush.msk.msra.mxu3 %vm491_vm0, %v467_v32  ;;  %v465_v33 = vld.sshfl [vmem:[#allocation1 + $0x8] sm:$0xff pattern:$0x75316420] }
  0x23   : > { %5612 = vmatmul.msk.f32.gmra.mxu2 %vm472_vm1, %v6649_v14  ;;  %5652 = vmatpush.msk.msra.mxu0 %vm491_vm0, %v464_v30 }
  0x24   : > { %5619 = vmatmul.msk.f32.gmra.mxu3 %vm472_vm1, %v6649_v14  ;;  %5605 = vmatmul.msk.f32.gmra.mxu1 %vm472_vm1, %v6649_v14  ;;  %v470_v37 = vld.sshfl [vmem:[#allocation1 + $0x30] sm:$0xff pattern:$0x75316420]  ;;  %v471_v38 = vld.sshfl [vmem:[#allocation1 + $0x38] sm:$0xff pattern:$0x75316420] }
  0x25   : > { %5666 = vmatpush.msk.msra.mxu2 %vm491_vm0, %v466_v31  ;;  %5659 = vmatpush.msk.msra.mxu1 %vm491_vm0, %v465_v33  ;;  %v468_v34 = vld.sshfl [vmem:[#allocation1 + $0x20] sm:$0xff pattern:$0x75316420]  ;;  %v469_v40 = vld.sshfl [vmem:[#allocation1 + $0x28] sm:$0xff pattern:$0x75316420] }
  0x26   : > { %3936 = vperm.xlu1 %6018, %v3933_v50  }
  0x27   : > { %3449 = vperm.xlu0 %6017, %v3440_v46  }
  0x28   : > { %3454 = vperm.xlu2 %6019, %v3441_v0  }
  0x2a   : > { %5599 = vmatmul.msk.f32.gmra.mxu0 %vm472_vm1, %v6666_v17 }
  0x2b   : > { %5613 = vmatmul.msk.f32.gmra.mxu2 %vm472_vm1, %v6666_v17 }
  0x2c   : > { %5620 = vmatmul.msk.f32.gmra.mxu3 %vm472_vm1, %v6666_v17  ;;  %5606 = vmatmul.msk.f32.gmra.mxu1 %vm472_vm1, %v6666_v17 }
  0x2f   : > { %5190 = vperm.xlu0 %6017, %v5187_v48  }
  0x32   : > { %5600 = vmatmul.msk.f32.gmra.mxu0 %vm472_vm1, %v6680_v19 }
  0x33   : > { %5614 = vmatmul.msk.f32.gmra.mxu2 %vm472_vm1, %v6680_v19 }
  0x34   : > { %5621 = vmatmul.msk.f32.gmra.mxu3 %vm472_vm1, %v6680_v19  ;;  %5607 = vmatmul.msk.f32.gmra.mxu1 %vm472_vm1, %v6680_v19 }
  0x3a   : > { %5601 = vmatmul.msk.f32.gmra.mxu0 %vm472_vm1, %v6693_v20 }
  0x3b   : > { %5615 = vmatmul.msk.f32.gmra.mxu2 %vm472_vm1, %v6693_v20 }
  0x3c   : > { %5622 = vmatmul.msk.f32.gmra.mxu3 %vm472_vm1, %v6693_v20  ;;  %5608 = vmatmul.msk.f32.gmra.mxu1 %vm472_vm1, %v6693_v20 }
  0x42   : > { %5602 = vmatmul.msk.f32.gmra.mxu0 %vm472_vm1, %v6710_v23 }
  0x43   : > { %5616 = vmatmul.msk.f32.gmra.mxu2 %vm472_vm1, %v6710_v23 }
  0x44   : > { %5623 = vmatmul.msk.f32.gmra.mxu3 %vm472_vm1, %v6710_v23  ;;  %5609 = vmatmul.msk.f32.gmra.mxu1 %vm472_vm1, %v6710_v23 }
  0x4a   : > { %5625 = vmatmul.msk.f32.vlgmr.msrb.gmra.mxu0 %vm472_vm1, %v6630_v7 }
  0x4b   : > { %5639 = vmatmul.msk.f32.vlgmr.msrb.gmra.mxu2 %vm472_vm1, %v6630_v7  ;;  %5680 = vmatpush.msk.msrb.mxu0 %vm491_vm0, %v468_v34 }
  0x4c   : > { %5646 = vmatmul.msk.f32.vlgmr.msrb.gmra.mxu3 %vm472_vm1, %v6630_v7  ;;  %5632 = vmatmul.msk.f32.vlgmr.msrb.gmra.mxu1 %vm472_vm1, %v6630_v7 }
  0x4d   : > { %5701 = vmatpush.msk.msrb.mxu3 %vm491_vm0, %v471_v38  ;;  %5694 = vmatpush.msk.msrb.mxu2 %vm491_vm0, %v470_v37 }
  0x4e   : > { %5687 = vmatpush.msk.msrb.mxu1 %vm491_vm0, %v469_v40 }
  0x52   : > { %5626 = vmatmul.msk.f32.gmra.mxu0 %vm472_vm1, %v6649_v14 }
  0x53   : > { %5640 = vmatmul.msk.f32.gmra.mxu2 %vm472_vm1, %v6649_v14 }
  0x54   : > { %5647 = vmatmul.msk.f32.gmra.mxu3 %vm472_vm1, %v6649_v14  ;;  %5633 = vmatmul.msk.f32.gmra.mxu1 %vm472_vm1, %v6649_v14 }
  0x5a   : > { %5627 = vmatmul.msk.f32.gmra.mxu0 %vm472_vm1, %v6666_v17 }
  0x5b   : > { %5641 = vmatmul.msk.f32.gmra.mxu2 %vm472_vm1, %v6666_v17 }
  0x5c   : > { %5648 = vmatmul.msk.f32.gmra.mxu3 %vm472_vm1, %v6666_v17  ;;  %5634 = vmatmul.msk.f32.gmra.mxu1 %vm472_vm1, %v6666_v17 }
  0x62   : > { %5628 = vmatmul.msk.f32.gmra.mxu0 %vm472_vm1, %v6680_v19 }
  0x63   : > { %5642 = vmatmul.msk.f32.gmra.mxu2 %vm472_vm1, %v6680_v19 }
  0x64   : > { %5649 = vmatmul.msk.f32.gmra.mxu3 %vm472_vm1, %v6680_v19  ;;  %5635 = vmatmul.msk.f32.gmra.mxu1 %vm472_vm1, %v6680_v19 }
  0x69   : > { %v7017_v0 = vpop.permute.xlu2 %1195 }
  0x6a   : > { %5629 = vmatmul.msk.f32.gmra.mxu0 %vm472_vm1, %v6693_v20 }
  0x6b   : > { %5643 = vmatmul.msk.f32.gmra.mxu2 %vm472_vm1, %v6693_v20 }
  0x6c   : > { %5650 = vmatmul.msk.f32.gmra.mxu3 %vm472_vm1, %v6693_v20  ;;  %5636 = vmatmul.msk.f32.gmra.mxu1 %vm472_vm1, %v6693_v20 }
  0x72   : > { %5630 = vmatmul.msk.f32.gmra.mxu0 %vm472_vm1, %v6710_v23 }
  0x73   : > { %5644 = vmatmul.msk.f32.gmra.mxu2 %vm472_vm1, %v6710_v23 }
  0x74   : > { %5651 = vmatmul.msk.f32.gmra.mxu3 %vm472_vm1, %v6710_v23  ;;  %5637 = vmatmul.msk.f32.gmra.mxu1 %vm472_vm1, %v6710_v23 }
  0x7a   : > { %5653 = vmatmul.msk.f32.vlgmr.msra.gmra.mxu0 %vm472_vm1, %v6630_v7 }
  0x7b   : > { %5667 = vmatmul.msk.f32.vlgmr.msra.gmra.mxu2 %vm472_vm1, %v6630_v7  ;;  %1244 = vmatpush.msra.mxu0 %v9961_v43 }
  0x7c   : > { %5674 = vmatmul.msk.f32.vlgmr.msra.gmra.mxu3 %vm472_vm1, %v6630_v7  ;;  %5660 = vmatmul.msk.f32.vlgmr.msra.gmra.mxu1 %vm472_vm1, %v6630_v7 }
  0x80   : > { %v7006_v28 = vpop.permute.xlu1 %424 }
  0x82   : > { %5654 = vmatmul.msk.f32.gmra.mxu0 %vm472_vm1, %v6649_v14 }
  0x83   : > { %5668 = vmatmul.msk.f32.gmra.mxu2 %vm472_vm1, %v6649_v14 }
  0x84   : > { %5675 = vmatmul.msk.f32.gmra.mxu3 %vm472_vm1, %v6649_v14  ;;  %5661 = vmatmul.msk.f32.gmra.mxu1 %vm472_vm1, %v6649_v14 }
  0x88   : > { %v7013_v48 = vpop.permute.xlu1 %419 }
  0x8a   : > { %5655 = vmatmul.msk.f32.gmra.mxu0 %vm472_vm1, %v6666_v17 }
  0x8b   : > { %5669 = vmatmul.msk.f32.gmra.mxu2 %vm472_vm1, %v6666_v17 }
  0x8c   : > { %5676 = vmatmul.msk.f32.gmra.mxu3 %vm472_vm1, %v6666_v17  ;;  %5662 = vmatmul.msk.f32.gmra.mxu1 %vm472_vm1, %v6666_v17 }
  0x92   : > { %5656 = vmatmul.msk.f32.gmra.mxu0 %vm472_vm1, %v6680_v19 }
  0x93   : > { %5670 = vmatmul.msk.f32.gmra.mxu2 %vm472_vm1, %v6680_v19 }
  0x94   : > { %5677 = vmatmul.msk.f32.gmra.mxu3 %vm472_vm1, %v6680_v19  ;;  %5663 = vmatmul.msk.f32.gmra.mxu1 %vm472_vm1, %v6680_v19 }
  0x97   : > { %v6813_v35 = vpop.f32.mrf.mxu0 }
  0x99   : > { %v576_v6 = vpop.f32.mrf.mxu1 }
  0x9a   : > { %5657 = vmatmul.msk.f32.gmra.mxu0 %vm472_vm1, %v6693_v20 }
  0x9b   : > { %5671 = vmatmul.msk.f32.gmra.mxu2 %vm472_vm1, %v6693_v20 }
  0x9c   : > { %5678 = vmatmul.msk.f32.gmra.mxu3 %vm472_vm1, %v6693_v20  ;;  %5664 = vmatmul.msk.f32.gmra.mxu1 %vm472_vm1, %v6693_v20 }
  0x9e   : > { %v6981_v8 = vpop.f32.mrf.mxu2 }
  0x9f   : > { %v6823_v36 = vpop.f32.mrf.mxu0 }
  0xa1   : > { %v579_v9 = vpop.f32.mrf.mxu1 }
  0xa2   : > { %5658 = vmatmul.msk.f32.gmra.mxu0 %vm472_vm1, %v6710_v23 }
  0xa3   : > { %5672 = vmatmul.msk.f32.gmra.mxu2 %vm472_vm1, %v6710_v23 }
  0xa4   : > { %5679 = vmatmul.msk.f32.gmra.mxu3 %vm472_vm1, %v6710_v23  ;;  %5665 = vmatmul.msk.f32.gmra.mxu1 %vm472_vm1, %v6710_v23 }
  0xa6   : > { %v6985_v11 = vpop.f32.mrf.mxu2 }
  0xa7   : > { %v6835_v39 = vpop.f32.mrf.mxu0 }
  0xa9   : > { %v582_v12 = vpop.f32.mrf.mxu1 }
  0xaa   : > { %5681 = vmatmul.msk.f32.vlgmr.msrb.gmra.mxu0 %vm472_vm1, %v6630_v7 }
  0xab   : > { %5695 = vmatmul.msk.f32.vlgmr.msrb.gmra.mxu2 %vm472_vm1, %v6630_v7 }
  0xac   : > { %5702 = vmatmul.msk.f32.vlgmr.msrb.gmra.mxu3 %vm472_vm1, %v6630_v7  ;;  %5688 = vmatmul.msk.f32.vlgmr.msrb.gmra.mxu1 %vm472_vm1, %v6630_v7 }
  0xaf   : > { %v6846_v41 = vpop.f32.mrf.mxu0 }
  0xb1   : > { %v585_v15 = vpop.f32.mrf.mxu1 }
  0xb2   : > { %5682 = vmatmul.msk.f32.gmra.mxu0 %vm472_vm1, %v6649_v14 }
  0xb3   : > { %5696 = vmatmul.msk.f32.gmra.mxu2 %vm472_vm1, %v6649_v14 }
  0xb4   : > { %5703 = vmatmul.msk.f32.gmra.mxu3 %vm472_vm1, %v6649_v14  ;;  %5689 = vmatmul.msk.f32.gmra.mxu1 %vm472_vm1, %v6649_v14  ;;  %v6989_v14 = vpop.f32.mrf.mxu2 }
  0xb7   : > { %v6856_v42 = vpop.f32.mrf.mxu0 }
  0xba   : > { %5683 = vmatmul.msk.f32.gmra.mxu0 %vm472_vm1, %v6666_v17 }
  0xbb   : > { %5697 = vmatmul.msk.f32.gmra.mxu2 %vm472_vm1, %v6666_v17 }
  0xbc   : > { %5704 = vmatmul.msk.f32.gmra.mxu3 %vm472_vm1, %v6666_v17  ;;  %5690 = vmatmul.msk.f32.gmra.mxu1 %vm472_vm1, %v6666_v17  ;;  %v6993_v17 = vpop.permute.xlu0 %414  ;;  %v6995_v18 = vpop.f32.mrf.mxu2 }
  0xbd   : > { %v580_v32 = vadd.f32 %v579_v9, %v6993_v17  ;;  %v545_v33 = vadd.f32 %v6823_v36, %v6993_v17 }
  0xbf   : > { %v6870_v45 = vpop.f32.mrf.mxu0 }
  0xc2   : > { %5684 = vmatmul.msk.f32.gmra.mxu0 %vm472_vm1, %v6680_v19 }
  0xc3   : > { %5698 = vmatmul.msk.f32.gmra.mxu2 %vm472_vm1, %v6680_v19 }
  0xc4   : > { %5705 = vmatmul.msk.f32.gmra.mxu3 %vm472_vm1, %v6680_v19  ;;  %5691 = vmatmul.msk.f32.gmra.mxu1 %vm472_vm1, %v6680_v19  ;;  %v6999_v21 = vpop.permute.xlu0 %409  ;;  %v7004_v25 = vpop.f32.mrf.mxu2 }
  0xc5   : > { %v577_v22 = vadd.f32 %v576_v6, %v6999_v21  ;;  %v583_v6 = vadd.f32 %v582_v12, %v7013_v48 }
  0xc7   : > { %v6883_v47 = vpop.f32.mrf.mxu0 }
  0xca   : > { %5685 = vmatmul.msk.f32.gmra.mxu0 %vm472_vm1, %v6693_v20 }
  0xcb   : > { %5699 = vmatmul.msk.f32.gmra.mxu2 %vm472_vm1, %v6693_v20 }
  0xcc   : > { %5706 = vmatmul.msk.f32.gmra.mxu3 %vm472_vm1, %v6693_v20  ;;  %5692 = vmatmul.msk.f32.gmra.mxu1 %vm472_vm1, %v6693_v20  ;;  %v588_v20 = vpop.f32.mrf.mxu1  ;;  %v7011_v40 = vpop.f32.mrf.mxu2 }
  0xcf   : > { %v6896_v49 = vpop.f32.mrf.mxu0 }
  0xd2   : > { %5686 = vmatmul.msk.f32.gmra.mxu0 %vm472_vm1, %v6710_v23 }
  0xd3   : > { %5700 = vmatmul.msk.f32.gmra.mxu2 %vm472_vm1, %v6710_v23 }
  0xd4   : > { %5707 = vmatmul.msk.f32.gmra.mxu3 %vm472_vm1, %v6710_v23  ;;  %5693 = vmatmul.msk.f32.gmra.mxu1 %vm472_vm1, %v6710_v23  ;;  %v542_v23 = vadd.f32 %v6813_v35, %v6999_v21  ;;  %v591_v29 = vpop.f32.mrf.mxu1 }
  0xd7   : > { %v6909_v51 = vpop.f32.mrf.mxu0 }
  0xda   : > { %5708 = vmatmul.msk.f32.vlgmr.msra.gmra.mxu0 %vm1210_vm2, %v6914_v52 }
  0xdc   : > { %v7020_v9 = vpop.f32.mrf.mxu1 }
  0xdf   : > { %v6918_v53 = vpop.f32.mrf.mxu0 }
  0xe2   : > { %5709 = vmatmul.msk.f32.gmra.mxu0 %vm1210_vm2, %v6923_v54 }
  0xe7   : > { %v6927_v55 = vpop.f32.mrf.mxu0 }
  0xea   : > { %5710 = vmatmul.msk.f32.gmra.mxu0 %vm1210_vm2, %v6932_v56 }
  0xef   : > { %v6936_v57 = vpop.f32.mrf.mxu0 }
  0xf2   : > { %5711 = vmatmul.msk.f32.gmra.mxu0 %vm1210_vm2, %v6941_v58 }
  0xf7   : > { %v6945_v59 = vpop.f32.mrf.mxu0 }
  0xf8   : > { %9967 = vst [vmem:[#allocation6_spill] sm:$0xff] %v6945_v59 }
  0xfa   : > { %5712 = vmatmul.msk.f32.gmra.mxu0 %vm1210_vm2, %v6950_v60 }
  0xff   : > { %v6957_v62 = vpop.f32.mrf.mxu0 }
 0x100   : > { %9968 = vst [vmem:[#allocation7_spill] sm:$0xff] %v6957_v62 }
 0x102   : > { %5713 = vmatmul.msk.f32.gmra.mxu0 %vm1210_vm2, %v6962_v63 }
 0x107   : > { %v6969_v1 = vpop.f32.mrf.mxu0 }
 0x108   : > { %9969 = vst [vmem:[#allocation8_spill] sm:$0xff] %v6969_v1 }
 0x10f   : > { %v6971_v2 = vpop.f32.mrf.mxu0 }
 0x110   : > { %9970 = vst [vmem:[#allocation9_spill] sm:$0xff] %v6971_v2 }
 0x117   : > { %v6973_v3 = vpop.f32.mrf.mxu0 }
 0x118   : > { %9971 = vst [vmem:[#allocation10_spill] sm:$0xff] %v6973_v3 }
 0x11f   : > { %v6975_v4 = vpop.f32.mrf.mxu0 }
 0x120   : > { %9972 = vst [vmem:[#allocation11_spill] sm:$0xff] %v6975_v4 }
 0x127   : > { %v6977_v5 = vpop.f32.mrf.mxu0 }
 0x128   : > { %9973 = vst [vmem:[#allocation12_spill] sm:$0xff] %v6977_v5 }
 0x12f   : > { %v6979_v7 = vpop.f32.mrf.mxu0 }
 0x130   : > { %9974 = vst [vmem:[#allocation13_spill] sm:$0xff] %v6979_v7 }
 0x137   : > { %v6983_v10 = vpop.f32.mrf.mxu0 }
 0x138   : > { %9975 = vst [vmem:[#allocation14_spill] sm:$0xff] %v6983_v10 }
 0x13f   : > { %v6987_v13 = vpop.f32.mrf.mxu0 }
 0x140   : > { %9976 = vst [vmem:[#allocation15_spill] sm:$0xff] %v6987_v13 }
 0x147   : > { %v6991_v16 = vpop.f32.mrf.mxu0 }
 0x148   : > { %9977 = vst [vmem:[#allocation16_spill] sm:$0xff] %v6991_v16 }
 0x14f   : > { %v6997_v19 = vpop.f32.mrf.mxu0 }
 0x150   : > { %9978 = vst [vmem:[#allocation17_spill] sm:$0xff] %v6997_v19 }
 0x157   : > { %v1246_v24 = vpop.f32.mrf.mxu0 }
 0x158   : > { %v1264_v26 = vadd.f32 %v1246_v24, %v542_v23  ;;  %v1265_v27 = vadd.f32 %v1246_v24, %v577_v22  ;;  %v548_v22 = vadd.f32 %v6835_v39, %v7013_v48 }
 0x15a   : > { %v5714_v30 = vmul.f32 -1.442695, %v1264_v26  ;;  %v5715_v31 = vmul.f32 -1.442695, %v1265_v27 }
 0x15c   : > { %6020 = vpow2.f32 %v5714_v30 }
 0x15d   : > { %6022 = vpow2.f32 %v5715_v31 }
 0x15f   : > { %v1249_v34 = vpop.f32.mrf.mxu0 }
 0x160   : > { %v1266_v37 = vadd.f32 %v1249_v34, %v545_v33  ;;  %v1267_v35 = vadd.f32 %v1249_v34, %v580_v32  ;;  %v7034_v34 = vpop.permute.xlu1 %429 }
 0x162   : > { %v6021_v38 = vpop.eup %6020  ;;  %v5716_v44 = vmul.f32 -1.442695, %v1266_v37  ;;  %v5717_v61 = vmul.f32 -1.442695, %v1267_v35  ;;  %v7036_v37 = vpop.f32.mrf.mxu2 }
 0x163   : > { %v6023_v46 = vpop.eup %6022  ;;  %v7015_v50 = vadd.f32 1.0, %v6021_v38  ;;  %v551_v38 = vadd.f32 %v6846_v41, %v7006_v28  ;;  %v7057_v41 = vadd.f32 %v588_v20, %v7034_v34 }
 0x164   : > { %v7022_v36 = vadd.f32 1.0, %v6023_v46  ;;  %6024 = vpow2.f32 %v5716_v44  ;;  %v7045_v46 = vpop.permute.xlu2 %434 }
 0x165   : > { %6026 = vrcp.f32 %v7015_v50  ;;  %v1315_v20 = vand.u32 2147483648, %v7015_v50  ;;  %vm1309_vm3 = vweird.f32 %v7015_v50 }
 0x166   : > { %6028 = vrcp.f32 %v7022_v36  ;;  %vm1324_vm6 = vweird.f32 %v7022_v36 }
 0x167   : > { %6030 = vpow2.f32 %v5717_v61  ;;  %v1252_v23 = vpop.f32.mrf.mxu0  ;;  %v586_v61 = vadd.f32 %v585_v15, %v7006_v28  ;;  %v1316_v13 = vor.u32 1.1754944e-38, %v1315_v20 }
 0x168   : > { %v1268_v24 = vadd.f32 %v1252_v23, %v548_v22  ;;  %v1269_v26 = vadd.f32 %v1252_v23, %v583_v6  ;;  %v7048_v6 = vpop.f32.mrf.mxu1 }
 0x16a   : > { %v6025_v27 = vpop.eup %6024  ;;  %v5718_v30 = vmul.f32 -1.442695, %v1268_v24  ;;  %v5719_v31 = vmul.f32 -1.442695, %v1269_v26  ;;  %v7054_v24 = vadd.f32 %v6856_v42, %v7034_v34  ;;  %v7067_v42 = vadd.f32 %v591_v29, %v7045_v46 }
 0x16b   : > { %v7028_v12 = vpop.eup %6026  ;;  %v7030_v32 = vadd.f32 1.0, %v6025_v27  ;;  %v1313_v27 = vand.u32 2147483647, %v7015_v50  ;;  %v1330_v29 = vand.u32 2147483648, %v7022_v36 }
 0x16c   : > { %v7032_v33 = vpop.eup %6028  ;;  %6032 = vpow2.f32 %v5718_v30  ;;  %v1305_v39 = vmul.f32 %v7028_v12, %v7015_v50  ;;  %vm1310_vm4 = vweird.f32 %v7028_v12 }
 0x16d   : > { %v6031_v35 = vpop.eup %6030  ;;  %6034 = vrcp.f32 %v7030_v32  ;;  %v1320_v44 = vmul.f32 %v7032_v33, %v7022_v36  ;;  %vm7080_vm5 = vcmp.eq.f32.partialorder %v1313_v27, 8.507059e+37  ;;  %vm1325_vm7 = vweird.f32 %v7032_v33  ;;  %vm7098_vm8 = vmor %vm1309_vm3, %vm1310_vm4 }
 0x16e   : > { %v7050_v22 = vadd.f32 1.0, %v6031_v35  ;;  %6036 = vpow2.f32 %v5719_v31  ;;  %v1306_v23 = vsub.f32 1.0, %v1305_v39  ;;  %v7064_v31 = vadd.f32 %v6870_v45, %v7045_v46  ;;  %vm7120_vm11 = vmor %vm1324_vm6, %vm1325_vm7 }
 0x16f   : > { %v1255_v26 = vpop.f32.mrf.mxu0  ;;  %v1321_v30 = vsub.f32 1.0, %v1320_v44  ;;  %vm1339_vm10 = vweird.f32 %v7030_v32 }
 0x170   : > { %6038 = vrcp.f32 %v7050_v22  ;;  %v1270_v15 = vadd.f32 %v1255_v26, %v551_v38  ;;  %v1271_v43 = vadd.f32 %v1255_v26, %v586_v61  ;;  %v1307_v35 = vmul.f32 %v7028_v12, %v1306_v23  ;;  %v7114_v4 = vpop.f32.mrf.mxu1 }
 0x171   : > { %v1322_v39 = vmul.f32 %v7032_v33, %v1321_v30  ;;  %v1328_v38 = vand.u32 2147483647, %v7022_v36  ;;  %vm1354_vm12 = vweird.f32 %v7050_v22 }
 0x172   : > { %v6033_v19 = vpop.eup %6032  ;;  %v5720_v16 = vmul.f32 -1.442695, %v1270_v15  ;;  %v5721_v44 = vmul.f32 -1.442695, %v1271_v43  ;;  %v1308_v45 = vadd.f32 %v7028_v12, %v1307_v35 }
 0x173   : > { %v7073_v61 = vpop.eup %6034  ;;  %v7075_v23 = vadd.f32 1.0, %v6033_v19  ;;  %v1323_v19 = vadd.f32 %v7032_v33, %v1322_v39  ;;  %vm7102_vm9 = vcmp.eq.f32.partialorder %v1328_v38, 8.507059e+37  ;;  %v7106_v39 = vpop.permute.xlu0 %1190 }
 0x174   : > { %v6037_v26 = vpop.eup %6036  ;;  %6040 = vpow2.f32 %v5720_v16  ;;  %v1335_v43 = vmul.f32 %v7073_v61, %v7030_v32  ;;  %v7094_v16 = vpop.f32.mrf.mxu2  ;;  %v1312_v5 = vsel %vm7098_vm8, %v7028_v12, %v1308_v45  ;;  %v1343_v45 = vand.u32 2147483647, %v7030_v32 }
 0x175   : > { %v7087_v15 = vadd.f32 1.0, %v6037_v26  ;;  %6042 = vrcp.f32 %v7075_v23  ;;  %v1317_v3 = vsel %vm7080_vm5, %v1316_v13, %v1312_v5  ;;  %vm1340_vm13 = vweird.f32 %v7073_v61 }
 0x176   : > { %v7092_v35 = vpop.eup %6038  ;;  %6044 = vpow2.f32 %v5721_v44  ;;  %v1336_v10 = vsub.f32 1.0, %v1335_v43  ;;  %v1331_v44 = vor.u32 1.1754944e-38, %v1330_v29  ;;  %v1345_v29 = vand.u32 2147483648, %v7030_v32  ;;  %vm7154_vm15 = vmor %vm1339_vm10, %vm1340_vm13 }
 0x177   : > { %v1258_v7 = vpop.f32.mrf.mxu0  ;;  %v1350_v50 = vmul.f32 %v7092_v35, %v7050_v22  ;;  %6046 = vrcp.f32 %v7087_v15  ;;  %v1327_v43 = vsel %vm7120_vm11, %v7032_v33, %v1323_v19  ;;  %vm1355_vm14 = vweird.f32 %v7092_v35 }
 0x178   : > { %v1424_v38 = vadd.f32 %v1258_v7, %v7106_v39  ;;  %v1337_v12 = vmul.f32 %v7073_v61, %v1336_v10  ;;  %v1358_v10 = vand.u32 2147483647, %v7050_v22  ;;  %v1332_v30 = vsel %vm7102_vm9, %v1331_v44, %v1327_v43  ;;  %vm7168_vm1 = vmor %vm1354_vm12, %vm1355_vm14 }
 0x179   : > { %v1351_v27 = vsub.f32 1.0, %v1350_v50  ;;  %v1360_v5 = vand.u32 2147483648, %v7050_v22  ;;  %v1373_v13 = vand.u32 2147483647, %v7075_v23  ;;  %v1375_v50 = vand.u32 2147483648, %v7075_v23 }
 0x17a   : > { %v6041_v36 = vpop.eup %6040  ;;  %v1338_v7 = vadd.f32 %v7073_v61, %v1337_v12  ;;  %v1426_v62 = vmul.f32 %v1424_v38, %v1317_v3  ;;  %v1427_v44 = vmul.f32 %v1424_v38, %v1332_v30  ;;  %vm1344_vm0 = vcmp.eq.f32.partialorder %v1343_v45, 8.507059e+37 }
 0x17b   : > { %v7138_v2 = vpop.eup %6042  ;;  %v7140_v1 = vadd.f32 1.0, %v6041_v36  ;;  %v1352_v33 = vmul.f32 %v7092_v35, %v1351_v27  ;;  %v1346_v27 = vor.u32 1.1754944e-38, %v1345_v29  ;;  %v1388_v45 = vand.u32 2147483647, %v7087_v15 }
 0x17c   : > { %v6045_v19 = vpop.eup %6044  ;;  %v1365_v26 = vmul.f32 %v7138_v2, %v7075_v23  ;;  %v1342_v43 = vsel %vm7154_vm15, %v7073_v61, %v1338_v7  ;;  %v1430_v38 = vadd.f32 %v1426_v62, %v7054_v24  ;;  %v7180_v29 = vpop.f32.mrf.mxu2  ;;  %vm1359_vm3 = vcmp.eq.f32.partialorder %v1358_v10, 8.507059e+37 }
 0x17d   : > { %v7149_v20 = vadd.f32 1.0, %v6045_v19  ;;  %6048 = vrcp.f32 %v7140_v1  ;;  %v1353_v12 = vadd.f32 %v7092_v35, %v1352_v33  ;;  %v7172_v36 = vpop.eup %6046  ;;  %v1361_v22 = vor.u32 1.1754944e-38, %v1360_v5  ;;  %v7189_v24 = vpop.f32.mrf.mxu1 }
 0x17e   : > { %vm1369_vm4 = vweird.f32 %v7075_v23  ;;  %v1347_v19 = vsel %vm1344_vm0, %v1346_v27, %v1342_v43  ;;  %v1366_v30 = vsub.f32 1.0, %v1365_v26  ;;  %vm7184_vm5 = vcmp.eq.f32.partialorder %v1373_v13, 8.507059e+37 }
 0x17f   : > { %6050 = vrcp.f32 %v7149_v20  ;;  %v1261_v33 = vpop.f32.mrf.mxu0  ;;  %v1357_v61 = vsel %vm7168_vm1, %v7092_v35, %v1353_v12  ;;  %v1376_v62 = vor.u32 1.1754944e-38, %v1375_v50  ;;  %vm1384_vm6 = vweird.f32 %v7087_v15 }
 0x180   : > { %v1425_v7 = vadd.f32 %v1261_v33, %v7017_v0  ;;  %v1431_v35 = vadd.f32 %v1427_v44, %v7057_v41  ;;  %v1362_v12 = vsel %vm1359_vm3, %v1361_v22, %v1357_v61  ;;  %v1380_v5 = vmul.f32 %v7172_v36, %v7087_v15 }
 0x181   : > { %6052 = vtanh.f32 %v1430_v38  ;;  %v1367_v13 = vmul.f32 %v7138_v2, %v1366_v30  ;;  %vm1370_vm7 = vweird.f32 %v7138_v2  ;;  %vm7196_vm8 = vcmp.eq.f32.partialorder %v1388_v45, 8.507059e+37 }
 0x182   : > { %v1428_v10 = vmul.f32 %v1425_v7, %v1347_v19  ;;  %v1429_v43 = vmul.f32 %v1425_v7, %v1362_v12  ;;  %vm1399_vm9 = vweird.f32 %v7140_v1  ;;  %v1403_v41 = vand.u32 2147483647, %v7140_v1  ;;  %vm1371_vm11 = vmor %vm1369_vm4, %vm1370_vm7 }
 0x183   : > { %v6049_v32 = vpop.eup %6048  ;;  %v1405_v44 = vand.u32 2147483648, %v7140_v1  ;;  %vm1414_vm10 = vweird.f32 %v7149_v20  ;;  %v1368_v33 = vadd.f32 %v7138_v2, %v1367_v13  ;;  %v1381_v61 = vsub.f32 1.0, %v1380_v5 }
 0x184   : > { %v1395_v26 = vmul.f32 %v6049_v32, %v7140_v1  ;;  %v1432_v38 = vadd.f32 %v1428_v10, %v7064_v31  ;;  %v1418_v7 = vand.u32 2147483647, %v7149_v20  ;;  %v1390_v19 = vand.u32 2147483648, %v7087_v15 }
 0x185   : > { %v6051_v27 = vpop.eup %6050  ;;  %v1433_v30 = vadd.f32 %v1429_v43, %v7067_v42  ;;  %v1372_v12 = vsel %vm1371_vm11, %v7138_v2, %v1368_v33  ;;  %v1382_v31 = vmul.f32 %v7172_v36, %v1381_v61  ;;  %vm1385_vm12 = vweird.f32 %v7172_v36  ;;  %v7220_v42 = vpop.f32.mrf.mxu2 }
 0x186   : > { %v1396_v45 = vsub.f32 1.0, %v1395_v26  ;;  %v1410_v22 = vmul.f32 %v6051_v27, %v7149_v20  ;;  %6054 = vtanh.f32 %v1431_v35  ;;  %vm1400_vm13 = vweird.f32 %v6049_v32  ;;  %9995 = vst [vmem:[#allocation18_spill] sm:$0xff] %v7220_v42  ;;  %vm1386_vm15 = vmor %vm1384_vm6, %vm1385_vm12 }
 0x187   : > { %v6053_v13 = vpop.eup %6052  ;;  %6056 = vtanh.f32 %v1432_v38  ;;  %v1420_v26 = vand.u32 2147483648, %v7149_v20  ;;  %v1377_v23 = vsel %vm7184_vm5, %v1376_v62, %v1372_v12  ;;  %v1383_v59 = vadd.f32 %v7172_v36, %v1382_v31  ;;  %vm1401_vm0 = vmor %vm1399_vm9, %vm1400_vm13  ;;  %v7227_v62 = vpop.f32.mrf.mxu1 }
 0x188   : > { %v1411_v10 = vsub.f32 1.0, %v1410_v22  ;;  %v1397_v5 = vmul.f32 %v6049_v32, %v1396_v45  ;;  %vm1415_vm14 = vweird.f32 %v6051_v27  ;;  %v1391_v35 = vor.u32 1.1754944e-38, %v1390_v19 }
 0x189   : > { %6058 = vtanh.f32 %v1433_v30  ;;  %vm1404_vm1 = vcmp.eq.f32.partialorder %v1403_v41, 8.507059e+37  ;;  %v1406_v38 = vor.u32 1.1754944e-38, %v1405_v44  ;;  %v1387_v3 = vsel %vm1386_vm15, %v7172_v36, %v1383_v59  ;;  %vm1416_vm3 = vmor %vm1414_vm10, %vm1415_vm14 }
 0x18a   : > { %v1398_v2 = vadd.f32 %v6049_v32, %v1397_v5  ;;  %v1412_v43 = vmul.f32 %v6051_v27, %v1411_v10  ;;  %v1438_v45 = vsub.f32 1.0, %v1377_v23  ;;  %v1392_v22 = vsel %vm7196_vm8, %v1391_v35, %v1387_v3 }
 0x18b   : > { %v1421_v15 = vor.u32 1.1754944e-38, %v1420_v26  ;;  %vm1419_vm4 = vcmp.eq.f32.partialorder %v1418_v7, 8.507059e+37  ;;  %v1439_v41 = vsub.f32 1.0, %v1392_v22  ;;  %v1447_v26 = vmul.f32 0.0, %v1392_v22 }
 0x18c   : > { %v1402_v33 = vsel %vm1401_vm0, %v6049_v32, %v1398_v2  ;;  %v1413_v61 = vadd.f32 %v6051_v27, %v1412_v43  ;;  %v6055_v19 = vpop.eup %6054  ;;  %v1442_v10 = vmul.f32 %v6053_v13, %v1438_v45  ;;  %v1446_v2 = vmul.f32 0.0, %v1377_v23 }
 0x18d   : > { %v1407_v12 = vsel %vm1404_vm1, %v1406_v38, %v1402_v33  ;;  %v6057_v44 = vpop.eup %6056  ;;  %v1443_v20 = vmul.f32 %v6055_v19, %v1439_v41  ;;  %v7235_v38 = vpop.f32.mrf.mxu2 }
 0x18e   : > { %v1440_v1 = vsub.f32 1.0, %v1407_v12  ;;  %v1417_v30 = vsel %vm1416_vm3, %v6051_v27, %v1413_v61  ;;  %v1448_v31 = vmul.f32 0.0, %v1407_v12  ;;  %9997 = vst [vmem:[#allocation20_spill] sm:$0xff] %v7235_v38  ;;  %v7240_v7 = vadd.f32 %v1446_v2, %v1442_v10 }
 0x18f   : > { %v1422_v59 = vsel %vm1419_vm4, %v1421_v15, %v1417_v30  ;;  %v6059_v5 = vpop.eup %6058  ;;  %v7242_v3 = vpop.f32.mrf.mxu1  ;;  %v7246_v13 = vadd.f32 %v1447_v26, %v1443_v20  ;;  %v612_v26 = vadd.f32 %v6981_v8, %v6999_v21 }
 0x190   : > { %v1444_v36 = vmul.f32 %v6057_v44, %v1440_v1  ;;  %v1441_v32 = vsub.f32 1.0, %v1422_v59  ;;  %v1449_v35 = vmul.f32 0.0, %v1422_v59  ;;  %9999 = vst [vmem:[#allocation22_spill] sm:$0xff] %v7240_v7  ;;  %v646_v44 = vpop.f32.mrf.mxu3 }
 0x191   : > { %10000 = vst [vmem:[#allocation23_spill] sm:$0xff] %v7246_v13 }
 0x192   : > { %v7233_v50 = vadd.f32 %v1448_v31, %v1444_v36  ;;  %v1445_v43 = vmul.f32 %v6059_v5, %v1441_v32 }
 0x194   : > { %9996 = vst [vmem:[#allocation19_spill] sm:$0xff] %v7233_v50  ;;  %1484 = vmatpush.msra.mxu1 %v7233_v50  ;;  %v7238_v27 = vadd.f32 %v1449_v35, %v1445_v43 }
 0x195   : > { %v7253_v23 = vpop.f32.mrf.mxu2 }
 0x196   : > { %9998 = vst [vmem:[#allocation21_spill] sm:$0xff] %v7238_v27  ;;  %1519 = vmatpush.msra.mxu2 %v7238_v27  ;;  %1485 = vmatpush.msra.mxu1 %v7240_v7 }
 0x197   : > { %5722 = vmatmul.msk.f32.vlgmr.msra.gmra.mxu1 %vm1210_vm2, %v6914_v52  ;;  %10001 = vst [vmem:[#allocation24_spill] sm:$0xff] %v7253_v23  ;;  %v7257_v33 = vpop.f32.mrf.mxu1 }
 0x198   : > { %1520 = vmatpush.msra.mxu2 %v7246_v13  ;;  %10002 = vst [vmem:[#allocation25_spill] sm:$0xff] %v7257_v33  ;;  %v649_v36 = vpop.f32.mrf.mxu3 }
 0x199   : > { %5728 = vmatmul.msk.f32.vlgmr.msra.gmra.mxu2 %vm1210_vm2, %v6914_v52 }
 0x19d   : > { %v7263_v61 = vpop.f32.mrf.mxu2 }
 0x19e   : > { %10003 = vst [vmem:[#allocation26_spill] sm:$0xff] %v7263_v61 }
 0x19f   : > { %5723 = vmatmul.msk.f32.gmra.mxu1 %vm1210_vm2, %v6923_v54  ;;  %v7267_v45 = vpop.f32.mrf.mxu1 }
 0x1a0   : > { %10004 = vst [vmem:[#allocation27_spill] sm:$0xff] %v7267_v45  ;;  %v652_v10 = vpop.f32.mrf.mxu3 }
 0x1a1   : > { %5729 = vmatmul.msk.f32.gmra.mxu2 %vm1210_vm2, %v6923_v54 }
 0x1a5   : > { %v7273_v52 = vpop.f32.mrf.mxu2 }
 0x1a6   : > { %10005 = vst [vmem:[#allocation28_spill] sm:$0xff] %v7273_v52 }
 0x1a7   : > { %5724 = vmatmul.msk.f32.gmra.mxu1 %vm1210_vm2, %v6932_v56  ;;  %v7275_v22 = vpop.f32.mrf.mxu1 }
 0x1a8   : > { %10006 = vst [vmem:[#allocation29_spill] sm:$0xff] %v7275_v22  ;;  %v655_v43 = vpop.f32.mrf.mxu3 }
 0x1a9   : > { %5730 = vmatmul.msk.f32.gmra.mxu2 %vm1210_vm2, %v6932_v56 }
 0x1ad   : > { %v7281_v54 = vpop.f32.mrf.mxu2 }
 0x1ae   : > { %10007 = vst [vmem:[#allocation30_spill] sm:$0xff] %v7281_v54 }
 0x1af   : > { %5725 = vmatmul.msk.f32.gmra.mxu1 %vm1210_vm2, %v6941_v58  ;;  %v7283_v56 = vpop.f32.mrf.mxu1 }
 0x1b0   : > { %10008 = vst [vmem:[#allocation31_spill] sm:$0xff] %v7283_v56 }
 0x1b1   : > { %5731 = vmatmul.msk.f32.gmra.mxu2 %vm1210_vm2, %v6941_v58 }
 0x1b5   : > { %v7289_v58 = vpop.f32.mrf.mxu2 }
 0x1b6   : > { %10009 = vst [vmem:[#allocation32_spill] sm:$0xff] %v7289_v58 }
 0x1b7   : > { %5726 = vmatmul.msk.f32.gmra.mxu1 %vm1210_vm2, %v6950_v60  ;;  %v7291_v12 = vpop.f32.mrf.mxu1 }
 0x1b8   : > { %10010 = vst [vmem:[#allocation33_spill] sm:$0xff] %v7291_v12 }
 0x1b9   : > { %5732 = vmatmul.msk.f32.gmra.mxu2 %vm1210_vm2, %v6950_v60 }
 0x1bd   : > { %v7293_v15 = vpop.f32.mrf.mxu2 }
 0x1be   : > { %10011 = vst [vmem:[#allocation34_spill] sm:$0xff] %v7293_v15 }
 0x1bf   : > { %5727 = vmatmul.msk.f32.gmra.mxu1 %vm1210_vm2, %v6962_v63  ;;  %v7295_v19 = vpop.f32.mrf.mxu1 }
 0x1c0   : > { %10012 = vst [vmem:[#allocation35_spill] sm:$0xff] %v7295_v19 }
 0x1c1   : > { %5733 = vmatmul.msk.f32.gmra.mxu2 %vm1210_vm2, %v6962_v63 }
 0x1c5   : > { %v7297_v1 = vpop.f32.mrf.mxu2 }
 0x1c6   : > { %10013 = vst [vmem:[#allocation36_spill] sm:$0xff] %v7297_v1 }
 0x1c7   : > { %v7299_v60 = vpop.f32.mrf.mxu1 }
 0x1c8   : > { %10014 = vst [vmem:[#allocation37_spill] sm:$0xff] %v7299_v60 }
 0x1cd   : > { %v7301_v30 = vpop.f32.mrf.mxu2 }
 0x1ce   : > { %10015 = vst [vmem:[#allocation38_spill] sm:$0xff] %v7301_v30 }
 0x1cf   : > { %v7303_v41 = vpop.f32.mrf.mxu1 }
 0x1d0   : > { %10016 = vst [vmem:[#allocation39_spill] sm:$0xff] %v7303_v41 }
 0x1d5   : > { %v7305_v59 = vpop.f32.mrf.mxu2 }
 0x1d6   : > { %10017 = vst [vmem:[#allocation40_spill] sm:$0xff] %v7305_v59 }
 0x1d7   : > { %v7307_v63 = vpop.f32.mrf.mxu1 }
 0x1d8   : > { %10018 = vst [vmem:[#allocation41_spill] sm:$0xff] %v7307_v63  ;;  %v658_v63 = vpop.f32.mrf.mxu3 }
 0x1dd   : > { %v7309_v31 = vpop.f32.mrf.mxu2 }
 0x1de   : > { %10019 = vst [vmem:[#allocation42_spill] sm:$0xff] %v7309_v31 }
 0x1df   : > { %v7311_v32 = vpop.f32.mrf.mxu1 }
 0x1e0   : > { %10020 = vst [vmem:[#allocation43_spill] sm:$0xff] %v7311_v32  ;;  %v647_v32 = vadd.f32 %v646_v44, %v6999_v21  ;;  %v661_v15 = vpop.f32.mrf.mxu3 }
 0x1e5   : > { %v7313_v5 = vpop.f32.mrf.mxu2 }
 0x1e6   : > { %10021 = vst [vmem:[#allocation44_spill] sm:$0xff] %v7313_v5  ;;  %v615_v5 = vadd.f32 %v6985_v11, %v6993_v17 }
 0x1e7   : > { %v7315_v2 = vpop.f32.mrf.mxu1 }
 0x1e8   : > { %10022 = vst [vmem:[#allocation45_spill] sm:$0xff] %v7315_v2 }
 0x1ed   : > { %v7317_v35 = vpop.f32.mrf.mxu2 }
 0x1ee   : > { %10023 = vst [vmem:[#allocation46_spill] sm:$0xff] %v7317_v35 }
 0x1ef   : > { %v7319_v20 = vpop.f32.mrf.mxu1 }
 0x1f0   : > { %10024 = vst [vmem:[#allocation47_spill] sm:$0xff] %v7319_v20 }
 0x1f5   : > { %v7323_v59 = vpop.f32.mrf.mxu2 }
 0x1f6   : > { %10025 = vst [vmem:[#allocation48_spill] sm:$0xff] %v7323_v59  ;;  %v7361_v59 = vadd.f32 %v7011_v40, %v7045_v46 }
 0x214   : > { %v1487_v30 = vpop.f32.mrf.mxu1 }
 0x215   : > { %v1540_v31 = vadd.f32 %v1487_v30, %v612_v26  ;;  %v650_v30 = vadd.f32 %v649_v36, %v6993_v17  ;;  %v653_v26 = vadd.f32 %v652_v10, %v7013_v48  ;;  %v7355_v10 = vadd.f32 %v658_v63, %v7034_v34 }
 0x217   : > { %v5734_v41 = vmul.f32 -1.442695, %v1540_v31 }
 0x219   : > { %6060 = vpow2.f32 %v5734_v41  ;;  %v618_v41 = vadd.f32 %v6989_v14, %v7013_v48 }
 0x21c   : > { %v1522_v2 = vpop.f32.mrf.mxu2  ;;  %v1490_v60 = vpop.f32.mrf.mxu1 }
 0x21d   : > { %v1541_v35 = vadd.f32 %v1522_v2, %v647_v32  ;;  %v1542_v1 = vadd.f32 %v1490_v60, %v615_v5 }
 0x21f   : > { %v6061_v20 = vpop.eup %6060  ;;  %v5735_v58 = vmul.f32 -1.442695, %v1541_v35  ;;  %v5736_v8 = vmul.f32 -1.442695, %v1542_v1 }
 0x220   : > { %v7328_v54 = vadd.f32 1.0, %v6061_v20  ;;  %v7338_v20 = vpop.f32.mrf.mxu3 }
 0x221   : > { %6062 = vpow2.f32 %v5735_v58 }
 0x222   : > { %6064 = vrcp.f32 %v7328_v54  ;;  %vm1585_vm5 = vweird.f32 %v7328_v54 }
 0x223   : > { %6066 = vpow2.f32 %v5736_v8  ;;  %v621_v8 = vadd.f32 %v6995_v18, %v7006_v28 }
 0x224   : > { %v1525_v11 = vpop.f32.mrf.mxu2  ;;  %v1493_v44 = vpop.f32.mrf.mxu1 }
 0x225   : > { %v1543_v31 = vadd.f32 %v1525_v11, %v650_v30  ;;  %v1544_v32 = vadd.f32 %v1493_v44, %v618_v41 }
 0x227   : > { %v6063_v60 = vpop.eup %6062  ;;  %v5737_v5 = vmul.f32 -1.442695, %v1543_v31  ;;  %v5738_v2 = vmul.f32 -1.442695, %v1544_v32  ;;  %v656_v32 = vadd.f32 %v655_v43, %v7006_v28 }
 0x228   : > { %v7334_v35 = vpop.eup %6064  ;;  %v7336_v1 = vadd.f32 1.0, %v6063_v60 }
 0x229   : > { %v6067_v58 = vpop.eup %6066  ;;  %6068 = vpow2.f32 %v5737_v5  ;;  %v1581_v36 = vmul.f32 %v7334_v35, %v7328_v54  ;;  %v7352_v5 = vadd.f32 %v7004_v25, %v7034_v34  ;;  %v7368_v25 = vadd.f32 %v661_v15, %v7045_v46 }
 0x22a   : > { %6070 = vrcp.f32 %v7336_v1  ;;  %v7343_v14 = vadd.f32 1.0, %v6067_v58  ;;  %vm1586_vm6 = vweird.f32 %v7334_v35  ;;  %vm1600_vm8 = vweird.f32 %v7336_v1 }
 0x22b   : > { %6072 = vpow2.f32 %v5738_v2  ;;  %v1582_v11 = vsub.f32 1.0, %v1581_v36  ;;  %vm7399_vm10 = vmor %vm1585_vm5, %vm1586_vm6 }
 0x22c   : > { %6074 = vrcp.f32 %v7343_v14  ;;  %v1528_v30 = vpop.f32.mrf.mxu2  ;;  %v1496_v41 = vpop.f32.mrf.mxu1  ;;  %v1621_v12 = vand.u32 2147483648, %v7343_v14  ;;  %vm1615_vm9 = vweird.f32 %v7343_v14 }
 0x22d   : > { %v1545_v44 = vadd.f32 %v1528_v30, %v653_v26  ;;  %v1546_v31 = vadd.f32 %v1496_v41, %v621_v8  ;;  %v1583_v43 = vmul.f32 %v7334_v35, %v1582_v11  ;;  %v1589_v26 = vand.u32 2147483647, %v7328_v54 }
 0x22e   : > { %v1591_v41 = vand.u32 2147483648, %v7328_v54  ;;  %v1606_v11 = vand.u32 2147483648, %v7336_v1 }
 0x22f   : > { %v6069_v60 = vpop.eup %6068  ;;  %v5739_v58 = vmul.f32 -1.442695, %v1545_v44  ;;  %v5740_v18 = vmul.f32 -1.442695, %v1546_v31  ;;  %v7380_v44 = vpop.f32.mrf.mxu3  ;;  %vm7388_vm7 = vcmp.eq.f32.partialorder %v1589_v26, 8.507059e+37 }
 0x230   : > { %v7357_v2 = vpop.eup %6070  ;;  %v7363_v36 = vadd.f32 1.0, %v6069_v60  ;;  %v1619_v60 = vand.u32 2147483647, %v7343_v14  ;;  %v1592_v56 = vor.u32 1.1754944e-38, %v1591_v41 }
 0x231   : > { %v6073_v8 = vpop.eup %6072  ;;  %6076 = vpow2.f32 %v5739_v58  ;;  %v1596_v63 = vmul.f32 %v7357_v2, %v7336_v1  ;;  %vm1601_vm13 = vweird.f32 %v7357_v2 }
 0x232   : > { %v7373_v30 = vpop.eup %6074  ;;  %6078 = vrcp.f32 %v7363_v36  ;;  %v7376_v40 = vadd.f32 1.0, %v6073_v8  ;;  %v1584_v8 = vadd.f32 %v7334_v35, %v1583_v43  ;;  %vm7404_vm11 = vcmp.eq.f32.partialorder %v1619_v60, 8.507059e+37  ;;  %vm7453_vm1 = vmor %vm1600_vm8, %vm1601_vm13 }
 0x233   : > { %6080 = vpow2.f32 %v5740_v18  ;;  %v1597_v15 = vsub.f32 1.0, %v1596_v63  ;;  %v1611_v31 = vmul.f32 %v7373_v30, %v7343_v14  ;;  %v1604_v18 = vand.u32 2147483647, %v7336_v1 }
 0x234   : > { %6082 = vrcp.f32 %v7376_v40  ;;  %v1531_v58 = vpop.f32.mrf.mxu2  ;;  %v1499_v52 = vpop.f32.mrf.mxu1  ;;  %vm1616_vm12 = vweird.f32 %v7373_v30  ;;  %vm1630_vm0 = vweird.f32 %v7363_v36  ;;  %vm1645_vm3 = vweird.f32 %v7376_v40 }
 0x235   : > { %v1547_v19 = vadd.f32 %v1531_v58, %v656_v32  ;;  %v1612_v63 = vsub.f32 1.0, %v1611_v31  ;;  %v1598_v22 = vmul.f32 %v7357_v2, %v1597_v15  ;;  %v1607_v32 = vor.u32 1.1754944e-38, %v1606_v11  ;;  %vm7437_vm15 = vmor %vm1615_vm9, %vm1616_vm12 }
 0x236   : > { %v1700_v54 = vadd.f32 %v1499_v52, %v7106_v39  ;;  %vm7418_vm14 = vcmp.eq.f32.partialorder %v1604_v18, 8.507059e+37  ;;  %v1651_v1 = vand.u32 2147483648, %v7376_v40 }
 0x237   : > { %v6077_v43 = vpop.eup %6076  ;;  %v5741_v45 = vmul.f32 -1.442695, %v1547_v19  ;;  %v1613_v31 = vmul.f32 %v7373_v30, %v1612_v63  ;;  %v1588_v19 = vsel %vm7399_vm10, %v7334_v35, %v1584_v8  ;;  %v1622_v63 = vor.u32 1.1754944e-38, %v1621_v12 }
 0x238   : > { %v7408_v41 = vpop.eup %6078  ;;  %v7410_v15 = vadd.f32 1.0, %v6077_v43  ;;  %v1599_v52 = vadd.f32 %v7357_v2, %v1598_v22  ;;  %v1593_v18 = vsel %vm7388_vm7, %v1592_v56, %v1588_v19  ;;  %v7447_v19 = vpop.f32.mrf.mxu3 }
 0x239   : > { %v6081_v33 = vpop.eup %6080  ;;  %6084 = vpow2.f32 %v5741_v45  ;;  %v1614_v60 = vadd.f32 %v7373_v30, %v1613_v31  ;;  %v1626_v45 = vmul.f32 %v7408_v41, %v7363_v36  ;;  %v1704_v22 = vmul.f32 %v1700_v54, %v1593_v18  ;;  %10036 = vst [vmem:[#allocation49_spill] sm:$0xff] %v7447_v19 }
 0x23a   : > { %v7423_v43 = vpop.eup %6082  ;;  %6086 = vrcp.f32 %v7410_v15  ;;  %v7426_v35 = vadd.f32 1.0, %v6081_v33  ;;  %v1634_v33 = vand.u32 2147483647, %v7363_v36  ;;  %v1636_v18 = vand.u32 2147483648, %v7363_v36 }
 0x23b   : > { %v1641_v8 = vmul.f32 %v7423_v43, %v7376_v40  ;;  %v1618_v61 = vsel %vm7437_vm15, %v7373_v30, %v1614_v60  ;;  %v1627_v56 = vsub.f32 1.0, %v1626_v45  ;;  %v1603_v30 = vsel %vm7453_vm1, %v7357_v2, %v1599_v52 }
 0x23c   : > { %6088 = vrcp.f32 %v7426_v35  ;;  %v1534_v26 = vpop.f32.mrf.mxu2  ;;  %v1502_v31 = vpop.f32.mrf.mxu1  ;;  %v1649_v45 = vand.u32 2147483647, %v7376_v40  ;;  %vm1631_vm4 = vweird.f32 %v7408_v41  ;;  %v1708_v2 = vadd.f32 %v1704_v22, %v7352_v5 }
 0x23d   : > { %v1642_v14 = vsub.f32 1.0, %v1641_v8  ;;  %v1702_v54 = vadd.f32 %v1502_v31, %v7017_v0  ;;  %v1628_v60 = vmul.f32 %v7408_v41, %v1627_v56  ;;  %v1701_v12 = vadd.f32 %v1534_v26, %v7106_v39  ;;  %vm7490_vm7 = vmor %vm1630_vm0, %vm1631_vm4 }
 0x23e   : > { %v1623_v31 = vsel %vm7404_vm11, %v1622_v63, %v1618_v61  ;;  %vm7479_vm5 = vcmp.eq.f32.partialorder %v1634_v33, 8.507059e+37  ;;  %vm1646_vm6 = vweird.f32 %v7423_v43  ;;  %v1608_v5 = vsel %vm7418_vm14, %v1607_v32, %v1603_v30 }
 0x23f   : > { %v6085_v8 = vpop.eup %6084  ;;  %v1643_v38 = vmul.f32 %v7423_v43, %v1642_v14  ;;  %v1706_v52 = vmul.f32 %v1702_v54, %v1623_v31  ;;  %v1629_v56 = vadd.f32 %v7408_v41, %v1628_v60  ;;  %v1637_v33 = vor.u32 1.1754944e-38, %v1636_v18  ;;  %vm7508_vm10 = vmor %vm1645_vm3, %vm1646_vm6 }
 0x240   : > { %v7471_v42 = vpop.eup %6086  ;;  %v7473_v23 = vadd.f32 1.0, %v6085_v8  ;;  %vm7494_vm8 = vcmp.eq.f32.partialorder %v1649_v45, 8.507059e+37  ;;  %v1705_v54 = vmul.f32 %v1701_v12, %v1608_v5  ;;  %vm1675_vm9 = vweird.f32 %v7426_v35  ;;  %v7521_v12 = vpop.f32.mrf.mxu3 }
 0x241   : > { %v1656_v19 = vmul.f32 %v7471_v42, %v7410_v15  ;;  %v1644_v58 = vadd.f32 %v7423_v43, %v1643_v38  ;;  %v1633_v11 = vsel %vm7490_vm7, %v7408_v41, %v1629_v56  ;;  %v1710_v36 = vadd.f32 %v1706_v52, %v7361_v59 }
 0x242   : > { %v6089_v63 = vpop.eup %6088  ;;  %6090 = vrcp.f32 %v7473_v23  ;;  %v1679_v41 = vand.u32 2147483647, %v7426_v35  ;;  %v1638_v45 = vsel %vm7479_vm5, %v1637_v33, %v1633_v11  ;;  %v1681_v40 = vand.u32 2147483648, %v7426_v35 }
 0x243   : > { %v1657_v38 = vsub.f32 1.0, %v1656_v19  ;;  %v1671_v14 = vmul.f32 %v6089_v63, %v7426_v35  ;;  %6092 = vtanh.f32 %v1708_v2  ;;  %v1652_v19 = vor.u32 1.1754944e-38, %v1651_v1 }
 0x244   : > { %v1537_v32 = vpop.f32.mrf.mxu2  ;;  %v1648_v59 = vsel %vm7508_vm10, %v7423_v43, %v1644_v58  ;;  %vm1676_vm11 = vweird.f32 %v6089_v63  ;;  %v1709_v1 = vadd.f32 %v1705_v54, %v7355_v10  ;;  %vm1661_vm12 = vweird.f32 %v7471_v42 }
 0x245   : > { %v1672_v30 = vsub.f32 1.0, %v1671_v14  ;;  %v1703_v60 = vadd.f32 %v1537_v32, %v7017_v0  ;;  %v1658_v8 = vmul.f32 %v7471_v42, %v1657_v38  ;;  %6094 = vtanh.f32 %v1710_v36  ;;  %vm1677_vm13 = vmor %vm1675_vm9, %vm1676_vm11 }
 0x246   : > { %v1653_v43 = vsel %vm7494_vm8, %v1652_v19, %v1648_v59  ;;  %v1666_v26 = vand.u32 2147483648, %v7410_v15  ;;  %vm1660_vm14 = vweird.f32 %v7410_v15  ;;  %v1664_v10 = vand.u32 2147483647, %v7410_v15 }
 0x247   : > { %v1707_v31 = vmul.f32 %v1703_v60, %v1638_v45  ;;  %v1673_v2 = vmul.f32 %v6089_v63, %v1672_v30  ;;  %v1659_v56 = vadd.f32 %v7471_v42, %v1658_v8  ;;  %vm1680_vm15 = vcmp.eq.f32.partialorder %v1679_v41, 8.507059e+37  ;;  %vm7539_vm0 = vmor %vm1660_vm14, %vm1661_vm12 }
 0x248   : > { %v6091_v52 = vpop.eup %6090  ;;  %v1682_v61 = vor.u32 1.1754944e-38, %v1681_v40  ;;  %v1694_v38 = vand.u32 2147483647, %v7473_v23  ;;  %v1716_v11 = vsub.f32 1.0, %v1653_v43  ;;  %6096 = vtanh.f32 %v1709_v1  ;;  %v7549_v40 = vpop.f32.mrf.mxu3 }
 0x249   : > { %v1686_v58 = vmul.f32 %v6091_v52, %v7473_v23  ;;  %v1674_v5 = vadd.f32 %v6089_v63, %v1673_v2  ;;  %v6093_v22 = vpop.eup %6092  ;;  %v1711_v33 = vadd.f32 %v1707_v31, %v7368_v25  ;;  %v1663_v15 = vsel %vm7539_vm0, %v7471_v42, %v1659_v56 }
 0x24a   : > { %v1696_v25 = vand.u32 2147483648, %v7473_v23  ;;  %v1667_v32 = vor.u32 1.1754944e-38, %v1666_v26  ;;  %vm1691_vm1 = vweird.f32 %v6091_v52  ;;  %vm1665_vm3 = vcmp.eq.f32.partialorder %v1664_v10, 8.507059e+37 }
 0x24b   : > { %v1687_v54 = vsub.f32 1.0, %v1686_v58  ;;  %v1678_v35 = vsel %vm1677_vm13, %v6089_v63, %v1674_v5  ;;  %v6095_v30 = vpop.eup %6094  ;;  %6098 = vtanh.f32 %v1711_v33  ;;  %vm1690_vm4 = vweird.f32 %v7473_v23 }
 0x24c   : > { %v1683_v36 = vsel %vm1680_vm15, %v1682_v61, %v1678_v35  ;;  %v1668_v60 = vsel %vm1665_vm3, %v1667_v32, %v1663_v15  ;;  %v1720_v59 = vmul.f32 %v6093_v22, %v1716_v11  ;;  %vm1692_vm5 = vmor %vm1690_vm4, %vm1691_vm1  ;;  %vm1695_vm6 = vcmp.eq.f32.partialorder %v1694_v38, 8.507059e+37  ;;  %v7591_v11 = vld [vmem:[%s9951_s2 + $0x10] sm:$0xff]  ;;  %v7600_v15 = vld [vmem:[%s9951_s2 + $0x18] sm:$0xff] }
 0x24d   : > { %v1718_v18 = vsub.f32 1.0, %v1683_v36  ;;  %v1688_v19 = vmul.f32 %v6091_v52, %v1687_v54  ;;  %v1726_v41 = vmul.f32 %v1683_v36, %v7233_v50  ;;  %v1697_v42 = vor.u32 1.1754944e-38, %v1696_v25  ;;  %v7580_v54 = vld [vmem:[%s9951_s2 + $0x8] sm:$0xff]  ;;  %v7611_v25 = vld [vmem:[%s9951_s2 + $0x20] sm:$0xff] }
 0x24e   : > { %v1724_v1 = vmul.f32 %v1653_v43, %v7240_v7  ;;  %v1717_v2 = vsub.f32 1.0, %v1668_v60  ;;  %v6097_v56 = vpop.eup %6096  ;;  %v7562_v43 = vld [vmem:[%s9951_s2] sm:$0xff]  ;;  %v1725_v61 = vmul.f32 %v1668_v60, %v7246_v13 }
 0x24f   : > { %v1722_v63 = vmul.f32 %v6095_v30, %v1718_v18  ;;  %v1689_v45 = vadd.f32 %v6091_v52, %v1688_v19  ;;  %v7622_v18 = vld [vmem:[%s9951_s2 + $0x28] sm:$0xff] }
 0x250   : > { %v7555_v23 = vadd.f32 %v1724_v1, %v1720_v59  ;;  %v1721_v33 = vmul.f32 %v6097_v56, %v1717_v2  ;;  %v7572_v14 = vpop.f32.mrf.mxu3  ;;  %v717_v2 = vadd.f32 %v7020_v9, %v6999_v21 }
 0x251   : > { %v7551_v8 = vadd.f32 %v1726_v41, %v1722_v63  ;;  %v1693_v31 = vsel %vm1692_vm5, %v6091_v52, %v1689_v45  ;;  %v6099_v5 = vpop.eup %6098 }
 0x252   : > { %v1698_v26 = vsel %vm1695_vm6, %v1697_v42, %v1693_v31  ;;  %v7570_v38 = vadd.f32 %v1725_v61, %v1721_v33  ;;  %v682_v31 = vadd.f32 %v6883_v47, %v6999_v21  ;;  %v685_v33 = vadd.f32 %v6896_v49, %v6993_v17 }
 0x253   : > { %1762 = vmatpush.msra.mxu3 %v7551_v8  ;;  %v1719_v58 = vsub.f32 1.0, %v1698_v26  ;;  %v1727_v22 = vmul.f32 %v1698_v26, %v7238_v27  ;;  %v720_v61 = vadd.f32 %v7048_v6, %v6993_v17  ;;  %v688_v49 = vadd.f32 %v6909_v51, %v7013_v48 }
 0x254   : > { %v723_v6 = vadd.f32 %v7114_v4, %v7013_v48  ;;  %v7674_v4 = vadd.f32 %v6927_v55, %v7034_v34 }
 0x255   : > { %1763 = vmatpush.msra.mxu3 %v7555_v23  ;;  %v1723_v10 = vmul.f32 %v6099_v5, %v1719_v58 }
 0x256   : > { %5742 = vmatmul.msk.f32.vlgmr.msra.gmra.mxu3 %vm1210_vm2, %v7562_v43 }
 0x257   : > { %v7566_v52 = vadd.f32 %v1727_v22, %v1723_v10 }
 0x258   : > { %v7586_v35 = vpop.f32.mrf.mxu3 }
 0x259   : > { %1797 = vmatpush.msrb.mxu0 %v7566_v52 }
 0x25b   : > { %1798 = vmatpush.msrb.mxu0 %v7570_v38 }
 0x25c   : > { %5748 = vmatmul.msk.f32.vlgmr.msrb.gmra.mxu0 %vm1210_vm2, %v7562_v43 }
 0x25e   : > { %5743 = vmatmul.msk.f32.gmra.mxu3 %vm1210_vm2, %v7580_v54 }
 0x260   : > { %v7604_v36 = vpop.f32.mrf.mxu3 }
 0x264   : > { %5749 = vmatmul.msk.f32.gmra.mxu0 %vm1210_vm2, %v7580_v54 }
 0x266   : > { %5744 = vmatmul.msk.f32.gmra.mxu3 %vm1210_vm2, %v7591_v11 }
 0x268   : > { %v7615_v32 = vpop.f32.mrf.mxu3 }
 0x26c   : > { %5750 = vmatmul.msk.f32.gmra.mxu0 %vm1210_vm2, %v7591_v11 }
 0x26e   : > { %5745 = vmatmul.msk.f32.gmra.mxu3 %vm1210_vm2, %v7600_v15 }
 0x270   : > { %v7626_v19 = vpop.f32.mrf.mxu3 }
 0x274   : > { %5751 = vmatmul.msk.f32.gmra.mxu0 %vm1210_vm2, %v7600_v15 }
 0x276   : > { %5746 = vmatmul.msk.f32.gmra.mxu3 %vm1210_vm2, %v7611_v25 }
 0x278   : > { %v7630_v30 = vpop.f32.mrf.mxu3 }
 0x279   : > { %10049 = vst [vmem:[#allocation50_spill] sm:$0xff] %v7630_v30 }
 0x27c   : > { %5752 = vmatmul.msk.f32.gmra.mxu0 %vm1210_vm2, %v7611_v25 }
 0x27e   : > { %5747 = vmatmul.msk.f32.gmra.mxu3 %vm1210_vm2, %v7622_v18 }
 0x280   : > { %v7632_v60 = vpop.f32.mrf.mxu3 }
 0x281   : > { %10050 = vst [vmem:[#allocation51_spill] sm:$0xff] %v7632_v60 }
 0x284   : > { %5753 = vmatmul.msk.f32.gmra.mxu0 %vm1210_vm2, %v7622_v18 }
 0x288   : > { %v7634_v63 = vpop.f32.mrf.mxu3 }
 0x289   : > { %10051 = vst [vmem:[#allocation52_spill] sm:$0xff] %v7634_v63 }
 0x290   : > { %v7636_v41 = vpop.f32.mrf.mxu3 }
 0x291   : > { %10052 = vst [vmem:[#allocation53_spill] sm:$0xff] %v7636_v41 }
 0x298   : > { %v7638_v59 = vpop.f32.mrf.mxu3 }
 0x299   : > { %10053 = vst [vmem:[#allocation54_spill] sm:$0xff] %v7638_v59 }
 0x2a0   : > { %v7640_v45 = vpop.f32.mrf.mxu3 }
 0x2a1   : > { %10054 = vst [vmem:[#allocation55_spill] sm:$0xff] %v7640_v45 }
 0x2a8   : > { %v7642_v42 = vpop.f32.mrf.mxu3 }
 0x2a9   : > { %10055 = vst [vmem:[#allocation56_spill] sm:$0xff] %v7642_v42 }
 0x2b0   : > { %v7644_v1 = vpop.f32.mrf.mxu3 }
 0x2b1   : > { %10056 = vst [vmem:[#allocation57_spill] sm:$0xff] %v7644_v1 }
 0x2d9   : > { %v1765_v56 = vpop.f32.mrf.mxu3  ;;  %v1800_v26 = vpop.f32.mrf.mxu0 }
 0x2da   : > { %v1818_v58 = vadd.f32 %v1765_v56, %v682_v31  ;;  %v1819_v5 = vadd.f32 %v1800_v26, %v717_v2 }
 0x2dc   : > { %v5754_v10 = vmul.f32 -1.442695, %v1818_v58  ;;  %v5755_v22 = vmul.f32 -1.442695, %v1819_v5  ;;  %v691_v5 = vadd.f32 %v6918_v53, %v7006_v28 }
 0x2de   : > { %6100 = vpow2.f32 %v5754_v10 }
 0x2df   : > { %6102 = vpow2.f32 %v5755_v22  ;;  %v726_v22 = vadd.f32 %v7189_v24, %v7006_v28 }
 0x2e1   : > { %v1768_v1 = vpop.f32.mrf.mxu3  ;;  %v1803_v42 = vpop.f32.mrf.mxu0 }
 0x2e2   : > { %v1820_v47 = vadd.f32 %v1768_v1, %v685_v33  ;;  %v1821_v45 = vadd.f32 %v1803_v42, %v720_v61 }
 0x2e4   : > { %v6101_v59 = vpop.eup %6100  ;;  %v5756_v9 = vmul.f32 -1.442695, %v1820_v47  ;;  %v5757_v31 = vmul.f32 -1.442695, %v1821_v45  ;;  %v7682_v47 = vadd.f32 %v7227_v62, %v7034_v34  ;;  %v7697_v62 = vadd.f32 %v7242_v3, %v7045_v46 }
 0x2e5   : > { %v6103_v41 = vpop.eup %6102  ;;  %v7654_v63 = vadd.f32 1.0, %v6101_v59 }
 0x2e6   : > { %v7656_v2 = vadd.f32 1.0, %v6103_v41  ;;  %6104 = vpow2.f32 %v5756_v9 }
 0x2e7   : > { %6106 = vrcp.f32 %v7654_v63  ;;  %v1867_v53 = vand.u32 2147483647, %v7654_v63  ;;  %vm1863_vm7 = vweird.f32 %v7654_v63 }
 0x2e8   : > { %6108 = vrcp.f32 %v7656_v2  ;;  %vm1878_vm8 = vweird.f32 %v7656_v2  ;;  %v1884_v3 = vand.u32 2147483648, %v7656_v2 }
 0x2e9   : > { %6110 = vpow2.f32 %v5757_v31  ;;  %v1771_v42 = vpop.f32.mrf.mxu3  ;;  %v1806_v1 = vpop.f32.mrf.mxu0  ;;  %v1869_v31 = vand.u32 2147483648, %v7654_v63  ;;  %vm7706_vm9 = vcmp.eq.f32.partialorder %v1867_v53, 8.507059e+37 }
 0x2ea   : > { %v1822_v56 = vadd.f32 %v1771_v42, %v688_v49  ;;  %v1823_v59 = vadd.f32 %v1806_v1, %v723_v6  ;;  %v7693_v49 = vadd.f32 %v6936_v57, %v7045_v46 }
 0x2eb   : > { %v1870_v13 = vor.u32 1.1754944e-38, %v1869_v31 }
 0x2ec   : > { %v6105_v26 = vpop.eup %6104  ;;  %v5758_v45 = vmul.f32 -1.442695, %v1822_v56  ;;  %v5759_v41 = vmul.f32 -1.442695, %v1823_v59  ;;  %v1882_v56 = vand.u32 2147483647, %v7656_v2 }
 0x2ed   : > { %v7664_v58 = vpop.eup %6106  ;;  %v7668_v10 = vadd.f32 1.0, %v6105_v26 }
 0x2ee   : > { %v7670_v51 = vpop.eup %6108  ;;  %6112 = vpow2.f32 %v5758_v45  ;;  %v1859_v33 = vmul.f32 %v7664_v58, %v7654_v63  ;;  %vm1864_vm10 = vweird.f32 %v7664_v58  ;;  %vm7716_vm11 = vcmp.eq.f32.partialorder %v1882_v56, 8.507059e+37 }
 0x2ef   : > { %v6111_v61 = vpop.eup %6110  ;;  %6114 = vrcp.f32 %v7668_v10  ;;  %v1874_v55 = vmul.f32 %v7670_v51, %v7656_v2  ;;  %vm1879_vm12 = vweird.f32 %v7670_v51  ;;  %v1899_v56 = vand.u32 2147483648, %v7668_v10  ;;  %vm7733_vm13 = vmor %vm1863_vm7, %vm1864_vm10 }
 0x2f0   : > { %v7688_v9 = vadd.f32 1.0, %v6111_v61  ;;  %6116 = vpow2.f32 %v5759_v41  ;;  %v1860_v24 = vsub.f32 1.0, %v1859_v33  ;;  %vm1893_vm14 = vweird.f32 %v7668_v10  ;;  %vm7746_vm15 = vmor %vm1878_vm8, %vm1879_vm12 }
 0x2f1   : > { %v1774_v6 = vpop.f32.mrf.mxu3  ;;  %v1809_v42 = vpop.f32.mrf.mxu0  ;;  %v1875_v1 = vsub.f32 1.0, %v1874_v55  ;;  %v1900_v7 = vor.u32 1.1754944e-38, %v1899_v56 }
 0x2f2   : > { %6118 = vrcp.f32 %v7688_v9  ;;  %v1824_v59 = vadd.f32 %v1774_v6, %v691_v5  ;;  %v1825_v26 = vadd.f32 %v1809_v42, %v726_v22  ;;  %v1861_v45 = vmul.f32 %v7664_v58, %v1860_v24 }
 0x2f3   : > { %v1876_v57 = vmul.f32 %v7670_v51, %v1875_v1  ;;  %vm1908_vm1 = vweird.f32 %v7688_v9 }
 0x2f4   : > { %v6113_v41 = vpop.eup %6112  ;;  %v5760_v33 = vmul.f32 -1.442695, %v1824_v59  ;;  %v5761_v61 = vmul.f32 -1.442695, %v1825_v26  ;;  %v1862_v24 = vadd.f32 %v7664_v58, %v1861_v45  ;;  %v1897_v59 = vand.u32 2147483647, %v7668_v10 }
 0x2f5   : > { %v7710_v5 = vpop.eup %6114  ;;  %v7712_v22 = vadd.f32 1.0, %v6113_v41  ;;  %v1877_v53 = vadd.f32 %v7670_v51, %v1876_v57  ;;  %v1885_v57 = vor.u32 1.1754944e-38, %v1884_v3  ;;  %v1914_v45 = vand.u32 2147483648, %v7688_v9 }
 0x2f6   : > { %v6117_v42 = vpop.eup %6116  ;;  %6120 = vpow2.f32 %v5760_v33  ;;  %v1889_v31 = vmul.f32 %v7710_v5, %v7668_v10  ;;  %vm7759_vm0 = vcmp.eq.f32.partialorder %v1897_v59, 8.507059e+37  ;;  %vm1894_vm3 = vweird.f32 %v7710_v5 }
 0x2f7   : > { %6122 = vrcp.f32 %v7712_v22  ;;  %v7725_v1 = vadd.f32 1.0, %v6117_v42  ;;  %v1866_v42 = vsel %vm7733_vm13, %v7664_v58, %v1862_v24  ;;  %v1881_v58 = vsel %vm7746_vm15, %v7670_v51, %v1877_v53  ;;  %vm7790_vm6 = vmor %vm1893_vm14, %vm1894_vm3 }
 0x2f8   : > { %v7729_v26 = vpop.eup %6118  ;;  %6124 = vpow2.f32 %v5761_v61  ;;  %v1890_v41 = vsub.f32 1.0, %v1889_v31  ;;  %v1912_v61 = vand.u32 2147483647, %v7688_v9  ;;  %v1886_v56 = vsel %vm7716_vm11, %v1885_v57, %v1881_v58 }
 0x2f9   : > { %6126 = vrcp.f32 %v7725_v1  ;;  %v1777_v33 = vpop.f32.mrf.mxu3  ;;  %v1812_v27 = vpop.f32.mrf.mxu0  ;;  %v1904_v3 = vmul.f32 %v7729_v26, %v7688_v9  ;;  %vm1909_vm4 = vweird.f32 %v7729_v26  ;;  %v1927_v57 = vand.u32 2147483647, %v7712_v22 }
 0x2fa   : > { %v1978_v31 = vadd.f32 %v1777_v33, %v7106_v39  ;;  %v1891_v24 = vmul.f32 %v7710_v5, %v1890_v41  ;;  %v1871_v33 = vsel %vm7706_vm9, %v1870_v13, %v1866_v42  ;;  %v1979_v30 = vadd.f32 %v1812_v27, %v7106_v39  ;;  %vm7805_vm7 = vmor %vm1908_vm1, %vm1909_vm4 }
 0x2fb   : > { %v1905_v50 = vsub.f32 1.0, %v1904_v3  ;;  %vm7779_vm5 = vcmp.eq.f32.partialorder %v1912_v61, 8.507059e+37  ;;  %v1915_v42 = vor.u32 1.1754944e-38, %v1914_v45  ;;  %vm1923_vm8 = vweird.f32 %v7712_v22 }
 0x2fc   : > { %v6121_v60 = vpop.eup %6120  ;;  %v1892_v51 = vadd.f32 %v7710_v5, %v1891_v24  ;;  %v1982_v27 = vmul.f32 %v1978_v31, %v1871_v33  ;;  %v1983_v58 = vmul.f32 %v1979_v30, %v1886_v56  ;;  %vm1938_vm9 = vweird.f32 %v7725_v1 }
 0x2fd   : > { %v7769_v53 = vpop.eup %6122  ;;  %v7771_v59 = vadd.f32 1.0, %v6121_v60  ;;  %v1906_v41 = vmul.f32 %v7729_v26, %v1905_v50  ;;  %vm7821_vm10 = vcmp.eq.f32.partialorder %v1927_v57, 8.507059e+37 }
 0x2fe   : > { %v6125_v63 = vpop.eup %6124  ;;  %v1919_v13 = vmul.f32 %v7769_v53, %v7712_v22  ;;  %v1896_v24 = vsel %vm7790_vm6, %v7710_v5, %v1892_v51  ;;  %v1929_v5 = vand.u32 2147483648, %v7712_v22  ;;  %v1986_v56 = vadd.f32 %v1982_v27, %v7674_v4 }
 0x2ff   : > { %v7783_v3 = vpop.eup %6126  ;;  %6128 = vrcp.f32 %v7771_v59  ;;  %v7786_v60 = vadd.f32 1.0, %v6125_v63  ;;  %v1907_v6 = vadd.f32 %v7729_v26, %v1906_v41  ;;  %v1901_v41 = vsel %vm7759_vm0, %v1900_v7, %v1896_v24 }
 0x300   : > { %v1920_v61 = vsub.f32 1.0, %v1919_v13  ;;  %v1934_v31 = vmul.f32 %v7783_v3, %v7725_v1  ;;  %v1987_v50 = vadd.f32 %v1983_v58, %v7682_v47  ;;  %v1957_v7 = vand.u32 2147483647, %v7771_v59 }
 0x301   : > { %6130 = vrcp.f32 %v7786_v60  ;;  %v1780_v45 = vpop.f32.mrf.mxu3  ;;  %v1815_v33 = vpop.f32.mrf.mxu0  ;;  %v1911_v30 = vsel %vm7805_vm7, %v7729_v26, %v1907_v6  ;;  %v1942_v26 = vand.u32 2147483647, %v7725_v1  ;;  %vm1924_vm11 = vweird.f32 %v7769_v53 }
 0x302   : > { %v1935_v51 = vsub.f32 1.0, %v1934_v31  ;;  %v1980_v9 = vadd.f32 %v1780_v45, %v7017_v0  ;;  %v1981_v63 = vadd.f32 %v1815_v33, %v7017_v0  ;;  %v1916_v4 = vsel %vm7779_vm5, %v1915_v42, %v1911_v30  ;;  %vm1925_vm14 = vmor %vm1923_vm8, %vm1924_vm11 }
 0x303   : > { %v1921_v27 = vmul.f32 %v7769_v53, %v1920_v61  ;;  %6132 = vtanh.f32 %v1986_v56  ;;  %vm1953_vm12 = vweird.f32 %v7771_v59  ;;  %v1930_v47 = vor.u32 1.1754944e-38, %v1929_v5 }
 0x304   : > { %v1984_v6 = vmul.f32 %v1980_v9, %v1901_v41  ;;  %v1985_v10 = vmul.f32 %v1981_v63, %v1916_v4  ;;  %v1936_v2 = vmul.f32 %v7783_v3, %v1935_v51  ;;  %vm1939_vm13 = vweird.f32 %v7783_v3 }
 0x305   : > { %v6129_v31 = vpop.eup %6128  ;;  %v1922_v42 = vadd.f32 %v7769_v53, %v1921_v27  ;;  %6134 = vtanh.f32 %v1987_v50  ;;  %v1959_v33 = vand.u32 2147483648, %v7771_v59  ;;  %vm7846_vm15 = vcmp.eq.f32.partialorder %v1957_v7, 8.507059e+37  ;;  %vm7854_vm1 = vmor %vm1938_vm9, %vm1939_vm13 }
 0x306   : > { %v1949_v57 = vmul.f32 %v6129_v31, %v7771_v59  ;;  %v1988_v55 = vadd.f32 %v1984_v6, %v7693_v49  ;;  %v1937_v61 = vadd.f32 %v7783_v3, %v1936_v2  ;;  %v1989_v30 = vadd.f32 %v1985_v10, %v7697_v62 }
 0x307   : > { %v6131_v58 = vpop.eup %6130  ;;  %v1972_v5 = vand.u32 2147483647, %v7786_v60  ;;  %v1926_v51 = vsel %vm1925_vm14, %v7769_v53, %v1922_v42  ;;  %vm1954_vm0 = vweird.f32 %v6129_v31  ;;  %v1944_v22 = vand.u32 2147483648, %v7725_v1 }
 0x308   : > { %v1950_v24 = vsub.f32 1.0, %v1949_v57  ;;  %v1964_v45 = vmul.f32 %v6131_v58, %v7786_v60  ;;  %6136 = vtanh.f32 %v1988_v55  ;;  %v1974_v62 = vand.u32 2147483648, %v7786_v60  ;;  %vm1955_vm4 = vmor %vm1953_vm12, %vm1954_vm0 }
 0x309   : > { %v1931_v63 = vsel %vm7821_vm10, %v1930_v47, %v1926_v51  ;;  %v1941_v53 = vsel %vm7854_vm1, %v7783_v3, %v1937_v61  ;;  %v6133_v50 = vpop.eup %6132  ;;  %vm1969_vm3 = vweird.f32 %v6131_v58  ;;  %v1945_v27 = vor.u32 1.1754944e-38, %v1944_v22 }
 0x30a   : > { %v1965_v56 = vsub.f32 1.0, %v1964_v45  ;;  %v1951_v9 = vmul.f32 %v6129_v31, %v1950_v24  ;;  %6138 = vtanh.f32 %v1989_v30  ;;  %v1960_v1 = vor.u32 1.1754944e-38, %v1959_v33 }
 0x30b   : > { %vm1968_vm5 = vweird.f32 %v7786_v60  ;;  %vm1943_vm6 = vcmp.eq.f32.partialorder %v1942_v26, 8.507059e+37  ;;  %v6135_v10 = vpop.eup %6134  ;;  %v1994_v2 = vsub.f32 1.0, %v1931_v63  ;;  %v1975_v47 = vor.u32 1.1754944e-38, %v1974_v62 }
 0x30c   : > { %v1952_v6 = vadd.f32 %v6129_v31, %v1951_v9  ;;  %v1966_v4 = vmul.f32 %v6131_v58, %v1965_v56  ;;  %v1946_v57 = vsel %vm1943_vm6, %v1945_v27, %v1941_v53  ;;  %vm1970_vm7 = vmor %vm1968_vm5, %vm1969_vm3  ;;  %vm1973_vm8 = vcmp.eq.f32.partialorder %v1972_v5, 8.507059e+37 }
 0x30d   : > { %v1995_v61 = vsub.f32 1.0, %v1946_v57  ;;  %v1998_v33 = vmul.f32 %v6133_v50, %v1994_v2  ;;  %v2002_v30 = vmul.f32 %v1931_v63, %v7555_v23  ;;  %v2003_v41 = vmul.f32 %v1946_v57, %v7570_v38 }
 0x30e   : > { %v1956_v13 = vsel %vm1955_vm4, %v6129_v31, %v1952_v6  ;;  %v1967_v7 = vadd.f32 %v6131_v58, %v1966_v4  ;;  %v6137_v59 = vpop.eup %6136  ;;  %v752_v62 = vadd.f32 %v7036_v37, %v6999_v21  ;;  %v787_v6 = vadd.f32 %v7338_v20, %v6999_v21 }
 0x30f   : > { %v1961_v3 = vsel %vm7846_vm15, %v1960_v1, %v1956_v13  ;;  %v1999_v9 = vmul.f32 %v6135_v10, %v1995_v61  ;;  %v7878_v5 = vadd.f32 %v2002_v30, %v1998_v33  ;;  %v755_v4 = vadd.f32 %v7094_v16, %v6993_v17  ;;  %v10079_v33 = vld [vmem:[#allocation49_spill] sm:$0xff]  ;;  %v10080_v30 = vld [vmem:[#allocation18_spill] sm:$0xff] }
 0x310   : > { %v1996_v55 = vsub.f32 1.0, %v1961_v3  ;;  %v1971_v42 = vsel %vm1970_vm7, %v6131_v58, %v1967_v7  ;;  %v2004_v60 = vmul.f32 %v1961_v3, %v7551_v8  ;;  %v6139_v31 = vpop.eup %6138  ;;  %v790_v37 = vadd.f32 %v7380_v44, %v6993_v17 }
 0x311   : > { %v1976_v24 = vsel %vm1973_vm8, %v1975_v47, %v1971_v42  ;;  %v7883_v22 = vadd.f32 %v2003_v41, %v1999_v9  ;;  %v758_v20 = vadd.f32 %v7180_v29, %v7013_v48 }
 0x312   : > { %v2000_v45 = vmul.f32 %v6137_v59, %v1996_v55  ;;  %v1997_v26 = vsub.f32 1.0, %v1976_v24  ;;  %v2005_v56 = vmul.f32 %v1976_v24, %v7566_v52 }
 0x314   : > { %v7872_v51 = vadd.f32 %v2004_v60, %v2000_v45  ;;  %v2001_v49 = vmul.f32 %v6139_v31, %v1997_v26  ;;  %v793_v31 = vadd.f32 %v10079_v33, %v7013_v48 }
 0x316   : > { %2040 = vmatpush.msrb.mxu1 %v7872_v51  ;;  %v7876_v58 = vadd.f32 %v2005_v56, %v2001_v49  ;;  %v761_v49 = vadd.f32 %v10080_v30, %v7006_v28 }
 0x318   : > { %2075 = vmatpush.msrb.mxu2 %v7876_v58  ;;  %2041 = vmatpush.msrb.mxu1 %v7878_v5 }
 0x319   : > { %5762 = vmatmul.msk.f32.vlgmr.msrb.gmra.mxu1 %vm1210_vm2, %v7562_v43 }
 0x31a   : > { %2076 = vmatpush.msrb.mxu2 %v7883_v22 }
 0x31b   : > { %5768 = vmatmul.msk.f32.vlgmr.msrb.gmra.mxu2 %vm1210_vm2, %v7562_v43 }
 0x321   : > { %5763 = vmatmul.msk.f32.gmra.mxu1 %vm1210_vm2, %v7580_v54 }
 0x323   : > { %5769 = vmatmul.msk.f32.gmra.mxu2 %vm1210_vm2, %v7580_v54 }
 0x329   : > { %5764 = vmatmul.msk.f32.gmra.mxu1 %vm1210_vm2, %v7591_v11 }
 0x32b   : > { %5770 = vmatmul.msk.f32.gmra.mxu2 %vm1210_vm2, %v7591_v11 }
 0x331   : > { %5765 = vmatmul.msk.f32.gmra.mxu1 %vm1210_vm2, %v7600_v15 }
 0x333   : > { %5771 = vmatmul.msk.f32.gmra.mxu2 %vm1210_vm2, %v7600_v15 }
 0x339   : > { %5766 = vmatmul.msk.f32.gmra.mxu1 %vm1210_vm2, %v7611_v25 }
 0x33b   : > { %5772 = vmatmul.msk.f32.gmra.mxu2 %vm1210_vm2, %v7611_v25 }
 0x341   : > { %5767 = vmatmul.msk.f32.gmra.mxu1 %vm1210_vm2, %v7622_v18 }
 0x343   : > { %5773 = vmatmul.msk.f32.gmra.mxu2 %vm1210_vm2, %v7622_v18 }
 0x396   : > { %v2043_v63 = vpop.f32.mrf.mxu1 }
 0x397   : > { %v2096_v53 = vadd.f32 %v2043_v63, %v752_v62 }
 0x399   : > { %v5774_v50 = vmul.f32 -1.442695, %v2096_v53  ;;  %v796_v53 = vadd.f32 %v7521_v12, %v7006_v28 }
 0x39b   : > { %6140 = vpow2.f32 %v5774_v50 }
 0x39e   : > { %v2078_v27 = vpop.f32.mrf.mxu2  ;;  %v2046_v1 = vpop.f32.mrf.mxu1 }
 0x39f   : > { %v2097_v10 = vadd.f32 %v2078_v27, %v787_v6  ;;  %v2098_v13 = vadd.f32 %v2046_v1, %v755_v4  ;;  %v10081_v6 = vld [vmem:[#allocation20_spill] sm:$0xff]  ;;  %v7945_v27 = vadd.f32 %v7549_v40, %v7034_v34 }
 0x3a0   : > { %v7941_v4 = vadd.f32 %v10081_v6, %v7034_v34 }
 0x3a1   : > { %v6141_v7 = vpop.eup %6140  ;;  %v5775_v2 = vmul.f32 -1.442695, %v2097_v10  ;;  %v5776_v57 = vmul.f32 -1.442695, %v2098_v13 }
 0x3a2   : > { %v7916_v3 = vadd.f32 1.0, %v6141_v7  ;;  %v10082_v7 = vld [vmem:[#allocation24_spill] sm:$0xff] }
 0x3a3   : > { %6142 = vpow2.f32 %v5775_v2  ;;  %v7951_v2 = vadd.f32 %v10082_v7, %v7045_v46 }
 0x3a4   : > { %6144 = vrcp.f32 %v7916_v3  ;;  %vm2141_vm9 = vweird.f32 %v7916_v3 }
 0x3a5   : > { %6146 = vpow2.f32 %v5776_v57 }
 0x3a6   : > { %v2081_v16 = vpop.f32.mrf.mxu2  ;;  %v2049_v47 = vpop.f32.mrf.mxu1 }
 0x3a7   : > { %v2099_v55 = vadd.f32 %v2081_v16, %v790_v37  ;;  %v2100_v42 = vadd.f32 %v2049_v47, %v758_v20  ;;  %v2145_v37 = vand.u32 2147483647, %v7916_v3  ;;  %v7959_v16 = vadd.f32 %v7572_v14, %v7045_v46 }
 0x3a9   : > { %v6143_v61 = vpop.eup %6142  ;;  %v5777_v59 = vmul.f32 -1.442695, %v2099_v55  ;;  %v5778_v24 = vmul.f32 -1.442695, %v2100_v42  ;;  %v2147_v42 = vand.u32 2147483648, %v7916_v3  ;;  %vm7977_vm11 = vcmp.eq.f32.partialorder %v2145_v37, 8.507059e+37 }
 0x3aa   : > { %v7923_v45 = vpop.eup %6144  ;;  %v7925_v60 = vadd.f32 1.0, %v6143_v61 }
 0x3ab   : > { %v6147_v26 = vpop.eup %6146  ;;  %6148 = vpow2.f32 %v5777_v59  ;;  %v2137_v44 = vmul.f32 %v7923_v45, %v7916_v3  ;;  %vm2142_vm10 = vweird.f32 %v7923_v45 }
 0x3ac   : > { %6150 = vrcp.f32 %v7925_v60  ;;  %v7930_v29 = vadd.f32 1.0, %v6147_v26  ;;  %v2162_v61 = vand.u32 2147483648, %v7925_v60  ;;  %vm2156_vm12 = vweird.f32 %v7925_v60  ;;  %vm7988_vm14 = vmor %vm2141_vm9, %vm2142_vm10 }
 0x3ad   : > { %6152 = vpow2.f32 %v5778_v24  ;;  %v2138_v41 = vsub.f32 1.0, %v2137_v44 }
 0x3ae   : > { %6154 = vrcp.f32 %v7930_v29  ;;  %v2084_v56 = vpop.f32.mrf.mxu2  ;;  %v2052_v9 = vpop.f32.mrf.mxu1  ;;  %v2175_v24 = vand.u32 2147483647, %v7930_v29  ;;  %vm2171_vm13 = vweird.f32 %v7930_v29 }
 0x3af   : > { %v2101_v62 = vadd.f32 %v2084_v56, %v793_v31  ;;  %v2102_v63 = vadd.f32 %v2052_v9, %v761_v49  ;;  %v2139_v12 = vmul.f32 %v7923_v45, %v2138_v41  ;;  %v2160_v49 = vand.u32 2147483647, %v7925_v60 }
 0x3b0   : > { %v2177_v9 = vand.u32 2147483648, %v7930_v29  ;;  %v2148_v41 = vor.u32 1.1754944e-38, %v2147_v42  ;;  %vm7993_vm15 = vcmp.eq.f32.partialorder %v2175_v24, 8.507059e+37 }
 0x3b1   : > { %v6149_v50 = vpop.eup %6148  ;;  %v5779_v1 = vmul.f32 -1.442695, %v2101_v62  ;;  %v5780_v10 = vmul.f32 -1.442695, %v2102_v63  ;;  %v2140_v33 = vadd.f32 %v7923_v45, %v2139_v12  ;;  %vm8007_vm3 = vcmp.eq.f32.partialorder %v2160_v49, 8.507059e+37 }
 0x3b2   : > { %v7947_v13 = vpop.eup %6150  ;;  %v7953_v57 = vadd.f32 1.0, %v6149_v50 }
 0x3b3   : > { %v6153_v20 = vpop.eup %6152  ;;  %6156 = vpow2.f32 %v5779_v1  ;;  %v2152_v40 = vmul.f32 %v7947_v13, %v7925_v60  ;;  %v2144_v37 = vsel %vm7988_vm14, %v7923_v45, %v2140_v33  ;;  %vm2157_vm1 = vweird.f32 %v7947_v13 }
 0x3b4   : > { %v7964_v47 = vpop.eup %6154  ;;  %6158 = vrcp.f32 %v7953_v57  ;;  %v7967_v55 = vadd.f32 1.0, %v6153_v20  ;;  %vm2186_vm5 = vweird.f32 %v7953_v57  ;;  %vm8040_vm6 = vmor %vm2156_vm12, %vm2157_vm1 }
 0x3b5   : > { %6160 = vpow2.f32 %v5780_v10  ;;  %v2153_v59 = vsub.f32 1.0, %v2152_v40  ;;  %v2167_v14 = vmul.f32 %v7964_v47, %v7930_v29  ;;  %vm2172_vm0 = vweird.f32 %v7964_v47 }
 0x3b6   : > { %6162 = vrcp.f32 %v7967_v55  ;;  %v2087_v26 = vpop.f32.mrf.mxu2  ;;  %v2055_v44 = vpop.f32.mrf.mxu1  ;;  %vm8026_vm4 = vmor %vm2171_vm13, %vm2172_vm0  ;;  %vm2201_vm7 = vweird.f32 %v7967_v55  ;;  %v2207_v60 = vand.u32 2147483648, %v7967_v55 }
 0x3b7   : > { %v2103_v30 = vadd.f32 %v2087_v26, %v796_v53  ;;  %v2168_v56 = vsub.f32 1.0, %v2167_v14  ;;  %v2154_v62 = vmul.f32 %v7947_v13, %v2153_v59  ;;  %v2163_v53 = vor.u32 1.1754944e-38, %v2162_v61 }
 0x3b8   : > { %v2256_v3 = vadd.f32 %v2055_v44, %v7106_v39  ;;  %v2178_v61 = vor.u32 1.1754944e-38, %v2177_v9  ;;  %v2149_v44 = vsel %vm7977_vm11, %v2148_v41, %v2144_v37 }
 0x3b9   : > { %v6157_v63 = vpop.eup %6156  ;;  %v5781_v50 = vmul.f32 -1.442695, %v2103_v30  ;;  %v2169_v1 = vmul.f32 %v7964_v47, %v2168_v56  ;;  %v2155_v14 = vadd.f32 %v7947_v13, %v2154_v62  ;;  %v2190_v30 = vand.u32 2147483647, %v7953_v57 }
 0x3ba   : > { %v7997_v7 = vpop.eup %6158  ;;  %v7999_v12 = vadd.f32 1.0, %v6157_v63  ;;  %v2260_v49 = vmul.f32 %v2256_v3, %v2149_v44 }
 0x3bb   : > { %v6161_v20 = vpop.eup %6160  ;;  %6164 = vpow2.f32 %v5781_v50  ;;  %v2170_v42 = vadd.f32 %v7964_v47, %v2169_v1  ;;  %v2182_v24 = vmul.f32 %v7997_v7, %v7953_v57  ;;  %v2192_v50 = vand.u32 2147483648, %v7953_v57 }
 0x3bc   : > { %v8012_v59 = vpop.eup %6162  ;;  %6166 = vrcp.f32 %v7999_v12  ;;  %v8015_v45 = vadd.f32 1.0, %v6161_v20  ;;  %v2205_v1 = vand.u32 2147483647, %v7967_v55  ;;  %vm2187_vm8 = vweird.f32 %v7997_v7 }
 0x3bd   : > { %v2197_v26 = vmul.f32 %v8012_v59, %v7967_v55  ;;  %v2174_v31 = vsel %vm8026_vm4, %v7964_v47, %v2170_v42  ;;  %v2183_v41 = vsub.f32 1.0, %v2182_v24  ;;  %v2159_v47 = vsel %vm8040_vm6, %v7947_v13, %v2155_v14  ;;  %vm8077_vm11 = vmor %vm2186_vm5, %vm2187_vm8 }
 0x3be   : > { %6168 = vrcp.f32 %v8015_v45  ;;  %v2090_v56 = vpop.f32.mrf.mxu2  ;;  %v2058_v9 = vpop.f32.mrf.mxu1  ;;  %v2179_v20 = vsel %vm7993_vm15, %v2178_v61, %v2174_v31  ;;  %v2264_v13 = vadd.f32 %v2260_v49, %v7941_v4  ;;  %vm8066_vm9 = vcmp.eq.f32.partialorder %v2190_v30, 8.507059e+37 }
 0x3bf   : > { %v2198_v62 = vsub.f32 1.0, %v2197_v26  ;;  %v2258_v63 = vadd.f32 %v2058_v9, %v7017_v0  ;;  %v2184_v6 = vmul.f32 %v7997_v7, %v2183_v41  ;;  %v2257_v3 = vadd.f32 %v2090_v56, %v7106_v39 }
 0x3c0   : > { %vm2202_vm10 = vweird.f32 %v8012_v59  ;;  %v2164_v4 = vsel %vm8007_vm3, %v2163_v53, %v2159_v47  ;;  %v2193_v30 = vor.u32 1.1754944e-38, %v2192_v50  ;;  %vm8081_vm12 = vcmp.eq.f32.partialorder %v2205_v1, 8.507059e+37 }
 0x3c1   : > { %v6165_v37 = vpop.eup %6164  ;;  %v2199_v42 = vmul.f32 %v8012_v59, %v2198_v62  ;;  %v2262_v14 = vmul.f32 %v2258_v63, %v2179_v20  ;;  %v2185_v44 = vadd.f32 %v7997_v7, %v2184_v6  ;;  %v2261_v62 = vmul.f32 %v2257_v3, %v2164_v4  ;;  %vm8095_vm14 = vmor %vm2201_vm7, %vm2202_vm10 }
 0x3c2   : > { %v8058_v24 = vpop.eup %6166  ;;  %v8060_v26 = vadd.f32 1.0, %v6165_v37  ;;  %vm2231_vm13 = vweird.f32 %v8015_v45  ;;  %v2208_v63 = vor.u32 1.1754944e-38, %v2207_v60  ;;  %v2237_v55 = vand.u32 2147483648, %v8015_v45 }
 0x3c3   : > { %v2212_v33 = vmul.f32 %v8058_v24, %v7999_v12  ;;  %v2200_v10 = vadd.f32 %v8012_v59, %v2199_v42  ;;  %v2189_v40 = vsel %vm8077_vm11, %v7997_v7, %v2185_v44  ;;  %v2266_v57 = vadd.f32 %v2262_v14, %v7951_v2 }
 0x3c4   : > { %v6169_v61 = vpop.eup %6168  ;;  %6170 = vrcp.f32 %v8060_v26  ;;  %v2235_v7 = vand.u32 2147483647, %v8015_v45  ;;  %v2194_v6 = vsel %vm8066_vm9, %v2193_v30, %v2189_v40  ;;  %v2265_v37 = vadd.f32 %v2261_v62, %v7945_v27 }
 0x3c5   : > { %v2213_v31 = vsub.f32 1.0, %v2212_v33  ;;  %v2227_v41 = vmul.f32 %v6169_v61, %v8015_v45  ;;  %6172 = vtanh.f32 %v2264_v13  ;;  %v2204_v2 = vsel %vm8095_vm14, %v8012_v59, %v2200_v10 }
 0x3c6   : > { %v2093_v53 = vpop.f32.mrf.mxu2  ;;  %vm2232_vm15 = vweird.f32 %v6169_v61  ;;  %vm2217_vm0 = vweird.f32 %v8058_v24  ;;  %6174 = vtanh.f32 %v2266_v57  ;;  %v2209_v42 = vsel %vm8081_vm12, %v2208_v63, %v2204_v2 }
 0x3c7   : > { %v2228_v50 = vsub.f32 1.0, %v2227_v41  ;;  %v2259_v47 = vadd.f32 %v2093_v53, %v7017_v0  ;;  %v2214_v1 = vmul.f32 %v8058_v24, %v2213_v31  ;;  %v2222_v13 = vand.u32 2147483648, %v7999_v12  ;;  %vm2233_vm1 = vmor %vm2231_vm13, %vm2232_vm15 }
 0x3c8   : > { %vm2216_vm3 = vweird.f32 %v7999_v12  ;;  %v2220_v27 = vand.u32 2147483647, %v7999_v12  ;;  %vm2236_vm4 = vcmp.eq.f32.partialorder %v2235_v7, 8.507059e+37  ;;  %v2238_v10 = vor.u32 1.1754944e-38, %v2237_v55 }
 0x3c9   : > { %v2263_v60 = vmul.f32 %v2259_v47, %v2194_v6  ;;  %v2229_v3 = vmul.f32 %v6169_v61, %v2228_v50  ;;  %v2215_v59 = vadd.f32 %v8058_v24, %v2214_v1  ;;  %v2250_v4 = vand.u32 2147483647, %v8060_v26  ;;  %vm8123_vm5 = vmor %vm2216_vm3, %vm2217_vm0 }
 0x3ca   : > { %v6171_v20 = vpop.eup %6170  ;;  %v2272_v9 = vsub.f32 1.0, %v2209_v42  ;;  %6176 = vtanh.f32 %v2265_v37  ;;  %v2223_v41 = vor.u32 1.1754944e-38, %v2222_v13  ;;  %vm2221_vm7 = vcmp.eq.f32.partialorder %v2220_v27, 8.507059e+37 }
 0x3cb   : > { %v2242_v14 = vmul.f32 %v6171_v20, %v8060_v26  ;;  %v2230_v44 = vadd.f32 %v6169_v61, %v2229_v3  ;;  %v6173_v33 = vpop.eup %6172  ;;  %v2267_v56 = vadd.f32 %v2263_v60, %v7959_v16  ;;  %v2219_v12 = vsel %vm8123_vm5, %v8058_v24, %v2215_v59 }
 0x3cc   : > { %v2252_v16 = vand.u32 2147483648, %v8060_v26  ;;  %vm2247_vm6 = vweird.f32 %v6171_v20  ;;  %v6175_v57 = vpop.eup %6174  ;;  %vm2246_vm8 = vweird.f32 %v8060_v26  ;;  %v2224_v53 = vsel %vm2221_vm7, %v2223_v41, %v2219_v12 }
 0x3cd   : > { %v2243_v30 = vsub.f32 1.0, %v2242_v14  ;;  %v2234_v45 = vsel %vm2233_vm1, %v6169_v61, %v2230_v44  ;;  %6178 = vtanh.f32 %v2267_v56  ;;  %v2276_v63 = vmul.f32 %v6173_v33, %v2272_v9  ;;  %vm2248_vm9 = vmor %vm2246_vm8, %vm2247_vm6 }
 0x3ce   : > { %v2239_v31 = vsel %vm2236_vm4, %v2238_v10, %v2234_v45  ;;  %vm2251_vm10 = vcmp.eq.f32.partialorder %v2250_v4, 8.507059e+37  ;;  %v2253_v24 = vor.u32 1.1754944e-38, %v2252_v16  ;;  %v2280_v7 = vmul.f32 %v2209_v42, %v7878_v5 }
 0x3cf   : > { %v2274_v62 = vsub.f32 1.0, %v2239_v31  ;;  %v2244_v40 = vmul.f32 %v6171_v20, %v2243_v30  ;;  %v2282_v29 = vmul.f32 %v2239_v31, %v7872_v51  ;;  %v2273_v6 = vsub.f32 1.0, %v2224_v53  ;;  %v10109_v30 = vld [vmem:[#allocation27_spill] sm:$0xff] }
 0x3d0   : > { %v6177_v55 = vpop.eup %6176  ;;  %v8137_v26 = vadd.f32 %v2280_v7, %v2276_v63  ;;  %v10111_v63 = vld [vmem:[#allocation29_spill] sm:$0xff] }
 0x3d1   : > { %v2278_v61 = vmul.f32 %v6175_v57, %v2274_v62  ;;  %v2245_v50 = vadd.f32 %v6171_v20, %v2244_v40  ;;  %v2277_v13 = vmul.f32 %v6177_v55, %v2273_v6 }
 0x3d3   : > { %v8133_v47 = vadd.f32 %v2282_v29, %v2278_v61  ;;  %v2249_v2 = vsel %vm2248_vm9, %v6171_v20, %v2245_v50  ;;  %v6179_v60 = vpop.eup %6178  ;;  %v2281_v20 = vmul.f32 %v2224_v53, %v7883_v22  ;;  %v10110_v61 = vld [vmem:[#allocation8_spill] sm:$0xff]  ;;  %v863_v50 = vadd.f32 %v10111_v63, %v7013_v48 }
 0x3d4   : > { %v2254_v1 = vsel %vm2251_vm10, %v2253_v24, %v2249_v2  ;;  %v828_v29 = vadd.f32 %v10110_v61, %v7013_v48 }
 0x3d5   : > { %2318 = vmatpush.msrb.mxu3 %v8133_v47  ;;  %v2275_v37 = vsub.f32 1.0, %v2254_v1  ;;  %v2283_v59 = vmul.f32 %v2254_v1, %v7876_v58  ;;  %v8147_v14 = vadd.f32 %v2281_v20, %v2277_v13 }
 0x3d7   : > { %2319 = vmatpush.msrb.mxu3 %v8137_v26  ;;  %v2279_v3 = vmul.f32 %v6179_v60, %v2275_v37  ;;  %10105 = vst [vmem:[#allocation49_spill] sm:$0xff] %v8147_v14 }
 0x3d8   : > { %5782 = vmatmul.msk.f32.vlgmr.msrb.gmra.mxu3 %vm1210_vm2, %v7562_v43 }
 0x3d9   : > { %v8143_v42 = vadd.f32 %v2283_v59, %v2279_v3  ;;  %v10112_v3 = vld [vmem:[#allocation9_spill] sm:$0xff] }
 0x3da   : > { %v831_v59 = vadd.f32 %v10112_v3, %v7006_v28 }
 0x3db   : > { %2353 = vmatpush.msra.mxu0 %v8143_v42 }
 0x3dd   : > { %2354 = vmatpush.msra.mxu0 %v8147_v14 }
 0x3de   : > { %5788 = vmatmul.msk.f32.vlgmr.msra.gmra.mxu0 %vm1210_vm2, %v7562_v43  ;;  %v10106_v43 = vld [vmem:[#allocation6_spill] sm:$0xff] }
 0x3e0   : > { %5783 = vmatmul.msk.f32.gmra.mxu3 %vm1210_vm2, %v7580_v54 }
 0x3e6   : > { %5789 = vmatmul.msk.f32.gmra.mxu0 %vm1210_vm2, %v7580_v54  ;;  %v822_v54 = vadd.f32 %v10106_v43, %v6999_v21  ;;  %v10113_v43 = vld [vmem:[#allocation10_spill] sm:$0xff] }
 0x3e8   : > { %5784 = vmatmul.msk.f32.gmra.mxu3 %vm1210_vm2, %v7591_v11 }
 0x3ee   : > { %5790 = vmatmul.msk.f32.gmra.mxu0 %vm1210_vm2, %v7591_v11  ;;  %v10107_v11 = vld [vmem:[#allocation25_spill] sm:$0xff] }
 0x3ef   : > { %v857_v44 = vadd.f32 %v10107_v11, %v6999_v21  ;;  %v10114_v11 = vld [vmem:[#allocation31_spill] sm:$0xff] }
 0x3f0   : > { %5785 = vmatmul.msk.f32.gmra.mxu3 %vm1210_vm2, %v7600_v15 }
 0x3f6   : > { %5791 = vmatmul.msk.f32.gmra.mxu0 %vm1210_vm2, %v7600_v15 }
 0x3f8   : > { %5786 = vmatmul.msk.f32.gmra.mxu3 %vm1210_vm2, %v7611_v25 }
 0x3fe   : > { %5792 = vmatmul.msk.f32.gmra.mxu0 %vm1210_vm2, %v7611_v25  ;;  %v10108_v25 = vld [vmem:[#allocation7_spill] sm:$0xff] }
 0x3ff   : > { %v825_v49 = vadd.f32 %v10108_v25, %v6993_v17 }
 0x400   : > { %5787 = vmatmul.msk.f32.gmra.mxu3 %vm1210_vm2, %v7622_v18 }
 0x406   : > { %5793 = vmatmul.msk.f32.gmra.mxu0 %vm1210_vm2, %v7622_v18  ;;  %v860_v18 = vadd.f32 %v10109_v30, %v6993_v17 }
 0x45b   : > { %v2321_v27 = vpop.f32.mrf.mxu3  ;;  %v2356_v15 = vpop.f32.mrf.mxu0 }
 0x45c   : > { %v2374_v33 = vadd.f32 %v2321_v27, %v822_v54  ;;  %v2375_v56 = vadd.f32 %v2356_v15, %v857_v44  ;;  %v8200_v54 = vadd.f32 %v10113_v43, %v7034_v34  ;;  %v866_v44 = vadd.f32 %v10114_v11, %v7006_v28 }
 0x45e   : > { %v5794_v10 = vmul.f32 -1.442695, %v2374_v33  ;;  %v5795_v4 = vmul.f32 -1.442695, %v2375_v56  ;;  %v10115_v33 = vld [vmem:[#allocation33_spill] sm:$0xff] }
 0x45f   : > { %v8208_v56 = vadd.f32 %v10115_v33, %v7034_v34 }
 0x460   : > { %6180 = vpow2.f32 %v5794_v10 }
 0x461   : > { %6182 = vpow2.f32 %v5795_v4 }
 0x463   : > { %v2324_v45 = vpop.f32.mrf.mxu3  ;;  %v2359_v9 = vpop.f32.mrf.mxu0 }
 0x464   : > { %v2376_v12 = vadd.f32 %v2324_v45, %v825_v49  ;;  %v2377_v31 = vadd.f32 %v2359_v9, %v860_v18  ;;  %v10116_v18 = vld [vmem:[#allocation11_spill] sm:$0xff] }
 0x465   : > { %v8219_v45 = vadd.f32 %v10116_v18, %v7045_v46  ;;  %v10117_v9 = vld [vmem:[#allocation35_spill] sm:$0xff] }
 0x466   : > { %v6181_v16 = vpop.eup %6180  ;;  %v5796_v41 = vmul.f32 -1.442695, %v2376_v12  ;;  %v5797_v57 = vmul.f32 -1.442695, %v2377_v31  ;;  %v8223_v12 = vadd.f32 %v10117_v9, %v7045_v46 }
 0x467   : > { %v6183_v62 = vpop.eup %6182  ;;  %v8180_v40 = vadd.f32 1.0, %v6181_v16 }
 0x468   : > { %v8182_v53 = vadd.f32 1.0, %v6183_v62  ;;  %6184 = vpow2.f32 %v5796_v41 }
 0x469   : > { %6186 = vrcp.f32 %v8180_v40  ;;  %v2423_v10 = vand.u32 2147483647, %v8180_v40  ;;  %v2425_v30 = vand.u32 2147483648, %v8180_v40  ;;  %vm2419_vm11 = vweird.f32 %v8180_v40 }
 0x46a   : > { %6188 = vrcp.f32 %v8182_v53  ;;  %v2438_v62 = vand.u32 2147483647, %v8182_v53  ;;  %vm2434_vm12 = vweird.f32 %v8182_v53 }
 0x46b   : > { %6190 = vpow2.f32 %v5797_v57  ;;  %v2327_v24 = vpop.f32.mrf.mxu3  ;;  %v2362_v7 = vpop.f32.mrf.mxu0  ;;  %vm8232_vm13 = vcmp.eq.f32.partialorder %v2423_v10, 8.507059e+37 }
 0x46c   : > { %v2378_v2 = vadd.f32 %v2327_v24, %v828_v29  ;;  %v2379_v6 = vadd.f32 %v2362_v7, %v863_v50  ;;  %v2440_v50 = vand.u32 2147483648, %v8182_v53  ;;  %vm8242_vm15 = vcmp.eq.f32.partialorder %v2438_v62, 8.507059e+37 }
 0x46e   : > { %v6185_v55 = vpop.eup %6184  ;;  %v5798_v1 = vmul.f32 -1.442695, %v2378_v2  ;;  %v5799_v37 = vmul.f32 -1.442695, %v2379_v6 }
 0x46f   : > { %v8190_v60 = vpop.eup %6186  ;;  %v8194_v13 = vadd.f32 1.0, %v6185_v55  ;;  %v2426_v55 = vor.u32 1.1754944e-38, %v2425_v30 }
 0x470   : > { %v8196_v20 = vpop.eup %6188  ;;  %6192 = vpow2.f32 %v5798_v1  ;;  %v2415_v27 = vmul.f32 %v8190_v60, %v8180_v40  ;;  %vm2420_vm14 = vweird.f32 %v8190_v60 }
 0x471   : > { %v6191_v15 = vpop.eup %6190  ;;  %6194 = vrcp.f32 %v8194_v13  ;;  %v2430_v4 = vmul.f32 %v8196_v20, %v8182_v53  ;;  %vm2435_vm0 = vweird.f32 %v8196_v20  ;;  %v2455_v33 = vand.u32 2147483648, %v8194_v13  ;;  %vm8259_vm1 = vmor %vm2419_vm11, %vm2420_vm14 }
 0x472   : > { %v8214_v25 = vadd.f32 1.0, %v6191_v15  ;;  %6196 = vpow2.f32 %v5799_v37  ;;  %v2416_v49 = vsub.f32 1.0, %v2415_v27  ;;  %v2453_v15 = vand.u32 2147483647, %v8194_v13  ;;  %vm8272_vm4 = vmor %vm2434_vm12, %vm2435_vm0 }
 0x473   : > { %v2330_v31 = vpop.f32.mrf.mxu3  ;;  %v2365_v16 = vpop.f32.mrf.mxu0  ;;  %v2431_v41 = vsub.f32 1.0, %v2430_v4  ;;  %vm2449_vm3 = vweird.f32 %v8194_v13 }
 0x474   : > { %6198 = vrcp.f32 %v8214_v25  ;;  %v2380_v57 = vadd.f32 %v2330_v31, %v831_v59  ;;  %v2381_v61 = vadd.f32 %v2365_v16, %v866_v44  ;;  %v2417_v29 = vmul.f32 %v8190_v60, %v2416_v49 }
 0x475   : > { %v2432_v63 = vmul.f32 %v8196_v20, %v2431_v41  ;;  %v2441_v49 = vor.u32 1.1754944e-38, %v2440_v50  ;;  %v2468_v41 = vand.u32 2147483647, %v8214_v25  ;;  %vm8285_vm5 = vcmp.eq.f32.partialorder %v2453_v15, 8.507059e+37 }
 0x476   : > { %v6193_v24 = vpop.eup %6192  ;;  %v5800_v7 = vmul.f32 -1.442695, %v2380_v57  ;;  %v5801_v2 = vmul.f32 -1.442695, %v2381_v61  ;;  %v2418_v3 = vadd.f32 %v8190_v60, %v2417_v29  ;;  %v2470_v61 = vand.u32 2147483648, %v8214_v25 }
 0x477   : > { %v8236_v1 = vpop.eup %6194  ;;  %v8238_v37 = vadd.f32 1.0, %v6193_v24  ;;  %v2433_v11 = vadd.f32 %v8196_v20, %v2432_v63  ;;  %v2456_v29 = vor.u32 1.1754944e-38, %v2455_v33  ;;  %vm2464_vm6 = vweird.f32 %v8214_v25 }
 0x478   : > { %v6197_v43 = vpop.eup %6196  ;;  %6200 = vpow2.f32 %v5800_v7  ;;  %v2445_v44 = vmul.f32 %v8236_v1, %v8194_v13  ;;  %v2422_v9 = vsel %vm8259_vm1, %v8190_v60, %v2418_v3  ;;  %vm2450_vm7 = vweird.f32 %v8236_v1 }
 0x479   : > { %6202 = vrcp.f32 %v8238_v37  ;;  %v8251_v27 = vadd.f32 1.0, %v6197_v43  ;;  %v2437_v60 = vsel %vm8272_vm4, %v8196_v20, %v2433_v11  ;;  %v2427_v24 = vsel %vm8232_vm13, %v2426_v55, %v2422_v9  ;;  %vm8316_vm10 = vmor %vm2449_vm3, %vm2450_vm7 }
 0x47a   : > { %v8255_v10 = vpop.eup %6198  ;;  %6204 = vpow2.f32 %v5801_v2  ;;  %v2446_v30 = vsub.f32 1.0, %v2445_v44  ;;  %v2442_v43 = vsel %vm8242_vm15, %v2441_v49, %v2437_v60  ;;  %vm8305_vm9 = vcmp.eq.f32.partialorder %v2468_v41, 8.507059e+37 }
 0x47b   : > { %6206 = vrcp.f32 %v8251_v27  ;;  %v2333_v18 = vpop.f32.mrf.mxu3  ;;  %v2368_v31 = vpop.f32.mrf.mxu0  ;;  %v2460_v16 = vmul.f32 %v8255_v10, %v8214_v25  ;;  %vm2465_vm8 = vweird.f32 %v8255_v10  ;;  %v2471_v33 = vor.u32 1.1754944e-38, %v2470_v61 }
 0x47c   : > { %v2534_v62 = vadd.f32 %v2333_v18, %v7106_v39  ;;  %v2447_v57 = vmul.f32 %v8236_v1, %v2446_v30  ;;  %v2535_v7 = vadd.f32 %v2368_v31, %v7106_v39  ;;  %v2483_v18 = vand.u32 2147483647, %v8238_v37  ;;  %vm8331_vm11 = vmor %vm2464_vm6, %vm2465_vm8 }
 0x47d   : > { %v2461_v63 = vsub.f32 1.0, %v2460_v16  ;;  %vm2479_vm12 = vweird.f32 %v8238_v37  ;;  %vm2494_vm13 = vweird.f32 %v8251_v27 }
 0x47e   : > { %v6201_v50 = vpop.eup %6200  ;;  %v2448_v20 = vadd.f32 %v8236_v1, %v2447_v57  ;;  %v2538_v55 = vmul.f32 %v2534_v62, %v2427_v24  ;;  %v2539_v40 = vmul.f32 %v2535_v7, %v2442_v43  ;;  %vm8347_vm14 = vcmp.eq.f32.partialorder %v2483_v18, 8.507059e+37 }
 0x47f   : > { %v8295_v2 = vpop.eup %6202  ;;  %v8297_v3 = vadd.f32 1.0, %v6201_v50  ;;  %v2462_v11 = vmul.f32 %v8255_v10, %v2461_v63 }
 0x480   : > { %v6205_v44 = vpop.eup %6204  ;;  %v2475_v6 = vmul.f32 %v8295_v2, %v8238_v37  ;;  %v2452_v16 = vsel %vm8316_vm10, %v8236_v1, %v2448_v20  ;;  %v2485_v1 = vand.u32 2147483648, %v8238_v37  ;;  %v2542_v61 = vadd.f32 %v2538_v55, %v8200_v54 }
 0x481   : > { %v8309_v4 = vpop.eup %6206  ;;  %6208 = vrcp.f32 %v8297_v3  ;;  %v8312_v59 = vadd.f32 1.0, %v6205_v44  ;;  %v2463_v30 = vadd.f32 %v8255_v10, %v2462_v11  ;;  %v2457_v63 = vsel %vm8285_vm5, %v2456_v29, %v2452_v16 }
 0x482   : > { %v2476_v9 = vsub.f32 1.0, %v2475_v6  ;;  %v2490_v31 = vmul.f32 %v8309_v4, %v8251_v27  ;;  %v2543_v7 = vadd.f32 %v2539_v40, %v8208_v56  ;;  %v2513_v53 = vand.u32 2147483647, %v8297_v3 }
 0x483   : > { %6210 = vrcp.f32 %v8312_v59  ;;  %v2336_v41 = vpop.f32.mrf.mxu3  ;;  %v2371_v62 = vpop.f32.mrf.mxu0  ;;  %v2467_v60 = vsel %vm8331_vm11, %v8255_v10, %v2463_v30  ;;  %v2498_v10 = vand.u32 2147483647, %v8251_v27  ;;  %vm2480_vm15 = vweird.f32 %v8295_v2 }
 0x484   : > { %v2491_v57 = vsub.f32 1.0, %v2490_v31  ;;  %v2536_v25 = vadd.f32 %v2336_v41, %v7017_v0  ;;  %v2537_v50 = vadd.f32 %v2371_v62, %v7017_v0  ;;  %v2472_v54 = vsel %vm8305_vm9, %v2471_v33, %v2467_v60  ;;  %vm2481_vm3 = vmor %vm2479_vm12, %vm2480_vm15  ;;  %v8451_v62 = vld [vmem:[%s9951_s2 + $0x20] sm:$0xff] }
 0x485   : > { %v2477_v43 = vmul.f32 %v8295_v2, %v2476_v9  ;;  %6212 = vtanh.f32 %v2542_v61  ;;  %vm2509_vm0 = vweird.f32 %v8297_v3  ;;  %v2486_v56 = vor.u32 1.1754944e-38, %v2485_v1 }
 0x486   : > { %v2540_v20 = vmul.f32 %v2536_v25, %v2457_v63  ;;  %v2541_v44 = vmul.f32 %v2537_v50, %v2472_v54  ;;  %v2492_v29 = vmul.f32 %v8309_v4, %v2491_v57  ;;  %vm2495_vm1 = vweird.f32 %v8309_v4 }
 0x487   : > { %v6209_v11 = vpop.eup %6208  ;;  %v2478_v33 = vadd.f32 %v8295_v2, %v2477_v43  ;;  %6214 = vtanh.f32 %v2543_v7  ;;  %v2515_v9 = vand.u32 2147483648, %v8297_v3  ;;  %vm8372_vm4 = vcmp.eq.f32.partialorder %v2513_v53, 8.507059e+37  ;;  %vm8380_vm6 = vmor %vm2494_vm13, %vm2495_vm1 }
 0x488   : > { %v2505_v6 = vmul.f32 %v6209_v11, %v8297_v3  ;;  %v2544_v15 = vadd.f32 %v2540_v20, %v8219_v45  ;;  %v2493_v49 = vadd.f32 %v8309_v4, %v2492_v29  ;;  %v2545_v31 = vadd.f32 %v2541_v44, %v8223_v12 }
 0x489   : > { %v6211_v55 = vpop.eup %6210  ;;  %v2528_v40 = vand.u32 2147483647, %v8312_v59  ;;  %v2482_v16 = vsel %vm2481_vm3, %v8295_v2, %v2478_v33  ;;  %vm2510_vm5 = vweird.f32 %v6209_v11  ;;  %v2500_v37 = vand.u32 2147483648, %v8251_v27 }
 0x48a   : > { %v2506_v30 = vsub.f32 1.0, %v2505_v6  ;;  %v2520_v18 = vmul.f32 %v6211_v55, %v8312_v59  ;;  %6216 = vtanh.f32 %v2544_v15  ;;  %v2530_v12 = vand.u32 2147483648, %v8312_v59  ;;  %vm2511_vm8 = vmor %vm2509_vm0, %vm2510_vm5 }
 0x48b   : > { %v2487_v60 = vsel %vm8347_vm14, %v2486_v56, %v2482_v16  ;;  %v2497_v2 = vsel %vm8380_vm6, %v8309_v4, %v2493_v49  ;;  %v6213_v1 = vpop.eup %6212  ;;  %vm2525_vm7 = vweird.f32 %v6211_v55  ;;  %v2501_v25 = vor.u32 1.1754944e-38, %v2500_v37  ;;  %v8424_v16 = vld [vmem:[%s9951_s2 + $0x8] sm:$0xff] }
 0x48c   : > { %v2521_v13 = vsub.f32 1.0, %v2520_v18  ;;  %v2507_v41 = vmul.f32 %v6209_v11, %v2506_v30  ;;  %6218 = vtanh.f32 %v2545_v31  ;;  %v2516_v27 = vor.u32 1.1754944e-38, %v2515_v9  ;;  %v8460_v37 = vld [vmem:[%s9951_s2 + $0x28] sm:$0xff] }
 0x48d   : > { %vm2524_vm9 = vweird.f32 %v8312_v59  ;;  %vm2499_vm10 = vcmp.eq.f32.partialorder %v2498_v10, 8.507059e+37  ;;  %v6215_v63 = vpop.eup %6214  ;;  %v2550_v7 = vsub.f32 1.0, %v2487_v60  ;;  %v2531_v54 = vor.u32 1.1754944e-38, %v2530_v12  ;;  %v10140_v12 = vld [vmem:[#allocation26_spill] sm:$0xff] }
 0x48e   : > { %v2508_v57 = vadd.f32 %v6209_v11, %v2507_v41  ;;  %v2522_v61 = vmul.f32 %v6211_v55, %v2521_v13  ;;  %v2502_v20 = vsel %vm2499_vm10, %v2501_v25, %v2497_v2  ;;  %vm2526_vm11 = vmor %vm2524_vm9, %vm2525_vm7  ;;  %vm2529_vm12 = vcmp.eq.f32.partialorder %v2528_v40, 8.507059e+37  ;;  %v8414_v40 = vld [vmem:[%s9951_s2] sm:$0xff]  ;;  %v8433_v13 = vld [vmem:[%s9951_s2 + $0x10] sm:$0xff] }
 0x48f   : > { %v2551_v53 = vsub.f32 1.0, %v2502_v20  ;;  %v2554_v56 = vmul.f32 %v6213_v1, %v2550_v7  ;;  %v2558_v15 = vmul.f32 %v2487_v60, %v8137_v26  ;;  %v2559_v31 = vmul.f32 %v2502_v20, %v8147_v14  ;;  %v8442_v41 = vld [vmem:[%s9951_s2 + $0x18] sm:$0xff] }
 0x490   : > { %v2512_v50 = vsel %vm2511_vm8, %v6209_v11, %v2508_v57  ;;  %v2523_v24 = vadd.f32 %v6211_v55, %v2522_v61  ;;  %v6217_v3 = vpop.eup %6216  ;;  %v892_v60 = vadd.f32 %v10140_v12, %v6999_v21  ;;  %v927_v61 = vadd.f32 %v7586_v35, %v6999_v21  ;;  %v10141_v25 = vld [vmem:[#allocation28_spill] sm:$0xff]  ;;  %v10142_v35 = vld [vmem:[#allocation30_spill] sm:$0xff] }
 0x491   : > { %v2517_v4 = vsel %vm8372_vm4, %v2516_v27, %v2512_v50  ;;  %v2555_v18 = vmul.f32 %v6215_v63, %v2551_v53  ;;  %v8404_v9 = vadd.f32 %v2558_v15, %v2554_v56  ;;  %v895_v27 = vadd.f32 %v10141_v25, %v6993_v17  ;;  %v10143_v12 = vld [vmem:[#allocation32_spill] sm:$0xff] }
 0x492   : > { %v2552_v43 = vsub.f32 1.0, %v2517_v4  ;;  %v2527_v44 = vsel %vm2526_vm11, %v6211_v55, %v2523_v24  ;;  %v2560_v59 = vmul.f32 %v2517_v4, %v8133_v47  ;;  %v6219_v11 = vpop.eup %6218  ;;  %v898_v53 = vadd.f32 %v10142_v35, %v7013_v48 }
 0x493   : > { %v2532_v29 = vsel %vm2529_vm12, %v2531_v54, %v2527_v44  ;;  %v8409_v45 = vadd.f32 %v2559_v31, %v2555_v18  ;;  %v930_v44 = vadd.f32 %v7604_v36, %v6993_v17  ;;  %v933_v31 = vadd.f32 %v7615_v32, %v7013_v48  ;;  %v10145_v32 = vld [vmem:[#allocation50_spill] sm:$0xff] }
 0x494   : > { %v2556_v6 = vmul.f32 %v6217_v3, %v2552_v43  ;;  %v2553_v10 = vsub.f32 1.0, %v2532_v29  ;;  %v2561_v30 = vmul.f32 %v2532_v29, %v8143_v42 }
 0x496   : > { %v8398_v33 = vadd.f32 %v2560_v59, %v2556_v6  ;;  %v2557_v49 = vmul.f32 %v6219_v11, %v2553_v10 }
 0x498   : > { %2596 = vmatpush.msra.mxu1 %v8398_v33  ;;  %v8402_v55 = vadd.f32 %v2561_v30, %v2557_v49 }
 0x49a   : > { %2631 = vmatpush.msra.mxu2 %v8402_v55  ;;  %2597 = vmatpush.msra.mxu1 %v8404_v9 }
 0x49b   : > { %5802 = vmatmul.msk.f32.vlgmr.msra.gmra.mxu1 %vm1210_vm2, %v8414_v40 }
 0x49c   : > { %2632 = vmatpush.msra.mxu2 %v8409_v45 }
 0x49d   : > { %5808 = vmatmul.msk.f32.vlgmr.msra.gmra.mxu2 %vm1210_vm2, %v8414_v40 }
 0x4a3   : > { %5803 = vmatmul.msk.f32.gmra.mxu1 %vm1210_vm2, %v8424_v16 }
 0x4a5   : > { %5809 = vmatmul.msk.f32.gmra.mxu2 %vm1210_vm2, %v8424_v16 }
 0x4ab   : > { %5804 = vmatmul.msk.f32.gmra.mxu1 %vm1210_vm2, %v8433_v13 }
 0x4ad   : > { %5810 = vmatmul.msk.f32.gmra.mxu2 %vm1210_vm2, %v8433_v13 }
 0x4b3   : > { %5805 = vmatmul.msk.f32.gmra.mxu1 %vm1210_vm2, %v8442_v41 }
 0x4b5   : > { %5811 = vmatmul.msk.f32.gmra.mxu2 %vm1210_vm2, %v8442_v41 }
 0x4bb   : > { %5806 = vmatmul.msk.f32.gmra.mxu1 %vm1210_vm2, %v8451_v62 }
 0x4bd   : > { %5812 = vmatmul.msk.f32.gmra.mxu2 %vm1210_vm2, %v8451_v62 }
 0x4c3   : > { %5807 = vmatmul.msk.f32.gmra.mxu1 %vm1210_vm2, %v8460_v37 }
 0x4c5   : > { %5813 = vmatmul.msk.f32.gmra.mxu2 %vm1210_vm2, %v8460_v37 }
 0x518   : > { %v2599_v2 = vpop.f32.mrf.mxu1 }
 0x519   : > { %v2652_v1 = vadd.f32 %v2599_v2, %v892_v60  ;;  %v901_v60 = vadd.f32 %v10143_v12, %v7006_v28 }
 0x51b   : > { %v5814_v57 = vmul.f32 -1.442695, %v2652_v1 }
 0x51d   : > { %6220 = vpow2.f32 %v5814_v57 }
 0x520   : > { %v2634_v63 = vpop.f32.mrf.mxu2  ;;  %v2602_v50 = vpop.f32.mrf.mxu1 }
 0x521   : > { %v2653_v24 = vadd.f32 %v2634_v63, %v927_v61  ;;  %v2654_v7 = vadd.f32 %v2602_v50, %v895_v27  ;;  %v936_v27 = vadd.f32 %v7626_v19, %v7006_v28  ;;  %v10144_v50 = vld [vmem:[#allocation34_spill] sm:$0xff] }
 0x523   : > { %v6221_v20 = vpop.eup %6220  ;;  %v5815_v4 = vmul.f32 -1.442695, %v2653_v24  ;;  %v5816_v54 = vmul.f32 -1.442695, %v2654_v7  ;;  %v8497_v24 = vadd.f32 %v10144_v50, %v7034_v34  ;;  %v8501_v7 = vadd.f32 %v10145_v32, %v7034_v34 }
 0x524   : > { %v8472_v43 = vadd.f32 1.0, %v6221_v20 }
 0x525   : > { %6222 = vpow2.f32 %v5815_v4 }
 0x526   : > { %6224 = vrcp.f32 %v8472_v43  ;;  %vm2697_vm13 = vweird.f32 %v8472_v43 }
 0x527   : > { %6226 = vpow2.f32 %v5816_v54 }
 0x528   : > { %v2637_v3 = vpop.f32.mrf.mxu2  ;;  %v2605_v29 = vpop.f32.mrf.mxu1 }
 0x529   : > { %v2655_v6 = vadd.f32 %v2637_v3, %v930_v44  ;;  %v2656_v59 = vadd.f32 %v2605_v29, %v898_v53  ;;  %v10146_v44 = vld [vmem:[#allocation36_spill] sm:$0xff]  ;;  %v2701_v3 = vand.u32 2147483647, %v8472_v43 }
 0x52a   : > { %v8507_v35 = vadd.f32 %v10146_v44, %v7045_v46 }
 0x52b   : > { %v6223_v10 = vpop.eup %6222  ;;  %v5817_v56 = vmul.f32 -1.442695, %v2655_v6  ;;  %v5818_v11 = vmul.f32 -1.442695, %v2656_v59  ;;  %v10147_v6 = vld [vmem:[#allocation51_spill] sm:$0xff]  ;;  %vm8533_vm15 = vcmp.eq.f32.partialorder %v2701_v3, 8.507059e+37 }
 0x52c   : > { %v8479_v15 = vpop.eup %6224  ;;  %v8481_v49 = vadd.f32 1.0, %v6223_v10  ;;  %v8515_v59 = vadd.f32 %v10147_v6, %v7045_v46 }
 0x52d   : > { %v6227_v30 = vpop.eup %6226  ;;  %6228 = vpow2.f32 %v5817_v56  ;;  %v2693_v36 = vmul.f32 %v8479_v15, %v8472_v43  ;;  %vm2698_vm14 = vweird.f32 %v8479_v15 }
 0x52e   : > { %6230 = vrcp.f32 %v8481_v49  ;;  %v8486_v18 = vadd.f32 1.0, %v6227_v30  ;;  %v2703_v30 = vand.u32 2147483648, %v8472_v43  ;;  %vm2712_vm0 = vweird.f32 %v8481_v49  ;;  %vm8544_vm3 = vmor %vm2697_vm13, %vm2698_vm14 }
 0x52f   : > { %6232 = vpow2.f32 %v5818_v11  ;;  %v2694_v57 = vsub.f32 1.0, %v2693_v36  ;;  %v2718_v36 = vand.u32 2147483648, %v8481_v49 }
 0x530   : > { %6234 = vrcp.f32 %v8486_v18  ;;  %v2640_v2 = vpop.f32.mrf.mxu2  ;;  %v2608_v1 = vpop.f32.mrf.mxu1  ;;  %v2733_v32 = vand.u32 2147483648, %v8486_v18  ;;  %vm2727_vm1 = vweird.f32 %v8486_v18 }
 0x531   : > { %v2657_v61 = vadd.f32 %v2640_v2, %v933_v31  ;;  %v2658_v25 = vadd.f32 %v2608_v1, %v901_v60  ;;  %v2695_v19 = vmul.f32 %v8479_v15, %v2694_v57  ;;  %v2731_v60 = vand.u32 2147483647, %v8486_v18 }
 0x533   : > { %v6229_v63 = vpop.eup %6228  ;;  %v5819_v20 = vmul.f32 -1.442695, %v2657_v61  ;;  %v5820_v4 = vmul.f32 -1.442695, %v2658_v25  ;;  %v2696_v57 = vadd.f32 %v8479_v15, %v2695_v19  ;;  %vm8549_vm4 = vcmp.eq.f32.partialorder %v2731_v60, 8.507059e+37 }
 0x534   : > { %v8503_v54 = vpop.eup %6230  ;;  %v8509_v53 = vadd.f32 1.0, %v6229_v63  ;;  %v2716_v63 = vand.u32 2147483647, %v8481_v49 }
 0x535   : > { %v6233_v29 = vpop.eup %6232  ;;  %6236 = vpow2.f32 %v5819_v20  ;;  %v2708_v10 = vmul.f32 %v8503_v54, %v8481_v49  ;;  %v2704_v20 = vor.u32 1.1754944e-38, %v2703_v30  ;;  %vm2713_vm6 = vweird.f32 %v8503_v54 }
 0x536   : > { %v8520_v56 = vpop.eup %6234  ;;  %6238 = vrcp.f32 %v8509_v53  ;;  %v8523_v11 = vadd.f32 1.0, %v6233_v29  ;;  %vm8563_vm7 = vcmp.eq.f32.partialorder %v2716_v63, 8.507059e+37  ;;  %vm2742_vm9 = vweird.f32 %v8509_v53  ;;  %vm8596_vm10 = vmor %vm2712_vm0, %vm2713_vm6 }
 0x537   : > { %6240 = vpow2.f32 %v5820_v4  ;;  %v2709_v31 = vsub.f32 1.0, %v2708_v10  ;;  %v2723_v12 = vmul.f32 %v8520_v56, %v8486_v18  ;;  %vm2728_vm5 = vweird.f32 %v8520_v56 }
 0x538   : > { %6242 = vrcp.f32 %v8523_v11  ;;  %v2643_v2 = vpop.f32.mrf.mxu2  ;;  %v2611_v1 = vpop.f32.mrf.mxu1  ;;  %vm8582_vm8 = vmor %vm2727_vm1, %vm2728_vm5  ;;  %vm2757_vm11 = vweird.f32 %v8523_v11  ;;  %v2763_v49 = vand.u32 2147483648, %v8523_v11 }
 0x539   : > { %v2659_v25 = vadd.f32 %v2643_v2, %v936_v27  ;;  %v2724_v50 = vsub.f32 1.0, %v2723_v12  ;;  %v2710_v4 = vmul.f32 %v8503_v54, %v2709_v31  ;;  %v2719_v27 = vor.u32 1.1754944e-38, %v2718_v36 }
 0x53a   : > { %v2700_v31 = vsel %vm8544_vm3, %v8479_v15, %v2696_v57  ;;  %v2812_v43 = vadd.f32 %v2611_v1, %v7106_v39  ;;  %v2734_v2 = vor.u32 1.1754944e-38, %v2733_v32 }
 0x53b   : > { %v6237_v44 = vpop.eup %6236  ;;  %v5821_v19 = vmul.f32 -1.442695, %v2659_v25  ;;  %v2725_v29 = vmul.f32 %v8520_v56, %v2724_v50  ;;  %v2711_v1 = vadd.f32 %v8503_v54, %v2710_v4  ;;  %v2705_v50 = vsel %vm8533_vm15, %v2704_v20, %v2700_v31 }
 0x53c   : > { %v8553_v10 = vpop.eup %6238  ;;  %v8555_v30 = vadd.f32 1.0, %v6237_v44  ;;  %v2746_v44 = vand.u32 2147483647, %v8509_v53  ;;  %v2816_v4 = vmul.f32 %v2812_v43, %v2705_v50  ;;  %v2748_v43 = vand.u32 2147483648, %v8509_v53 }
 0x53d   : > { %v6241_v12 = vpop.eup %6240  ;;  %6244 = vpow2.f32 %v5821_v19  ;;  %v2726_v60 = vadd.f32 %v8520_v56, %v2725_v29  ;;  %v2738_v57 = vmul.f32 %v8553_v10, %v8509_v53  ;;  %vm2743_vm12 = vweird.f32 %v8553_v10 }
 0x53e   : > { %v8568_v25 = vpop.eup %6242  ;;  %6246 = vrcp.f32 %v8555_v30  ;;  %v8571_v15 = vadd.f32 1.0, %v6241_v12  ;;  %vm8622_vm13 = vcmp.eq.f32.partialorder %v2746_v44, 8.507059e+37  ;;  %vm8633_vm15 = vmor %vm2742_vm9, %vm2743_vm12  ;;  %v2749_v44 = vor.u32 1.1754944e-38, %v2748_v43 }
 0x53f   : > { %v2753_v63 = vmul.f32 %v8568_v25, %v8523_v11  ;;  %v2730_v61 = vsel %vm8582_vm8, %v8520_v56, %v2726_v60  ;;  %v2739_v20 = vsub.f32 1.0, %v2738_v57  ;;  %v2715_v56 = vsel %vm8596_vm10, %v8503_v54, %v2711_v1 }
 0x540   : > { %6248 = vrcp.f32 %v8571_v15  ;;  %v2646_v19 = vpop.f32.mrf.mxu2  ;;  %v2614_v3 = vpop.f32.mrf.mxu1  ;;  %v2761_v60 = vand.u32 2147483647, %v8523_v11  ;;  %v2735_v50 = vsel %vm8549_vm4, %v2734_v2, %v2730_v61  ;;  %v2820_v54 = vadd.f32 %v2816_v4, %v8497_v24 }
 0x541   : > { %v2754_v29 = vsub.f32 1.0, %v2753_v63  ;;  %v2814_v31 = vadd.f32 %v2614_v3, %v7017_v0  ;;  %v2740_v12 = vmul.f32 %v8553_v10, %v2739_v20  ;;  %v2813_v63 = vadd.f32 %v2646_v19, %v7106_v39 }
 0x542   : > { %vm2758_vm14 = vweird.f32 %v8568_v25  ;;  %v2720_v24 = vsel %vm8563_vm7, %v2719_v27, %v2715_v56  ;;  %vm8637_vm0 = vcmp.eq.f32.partialorder %v2761_v60, 8.507059e+37  ;;  %vm2787_vm1 = vweird.f32 %v8571_v15 }
 0x543   : > { %v6245_v57 = vpop.eup %6244  ;;  %v2755_v32 = vmul.f32 %v8568_v25, %v2754_v29  ;;  %v2818_v1 = vmul.f32 %v2814_v31, %v2735_v50  ;;  %v2741_v20 = vadd.f32 %v8553_v10, %v2740_v12  ;;  %v2817_v12 = vmul.f32 %v2813_v63, %v2720_v24  ;;  %vm8651_vm3 = vmor %vm2757_vm11, %vm2758_vm14 }
 0x544   : > { %v8614_v3 = vpop.eup %6246  ;;  %v8616_v18 = vadd.f32 1.0, %v6245_v57  ;;  %v2793_v11 = vand.u32 2147483648, %v8571_v15  ;;  %vm2772_vm7 = vweird.f32 %v8555_v30 }
 0x545   : > { %v2768_v14 = vmul.f32 %v8614_v3, %v8555_v30  ;;  %v2756_v6 = vadd.f32 %v8568_v25, %v2755_v32  ;;  %v2745_v36 = vsel %vm8633_vm15, %v8553_v10, %v2741_v20  ;;  %v2822_v53 = vadd.f32 %v2818_v1, %v8507_v35 }
 0x546   : > { %v6249_v2 = vpop.eup %6248  ;;  %6250 = vrcp.f32 %v8616_v18  ;;  %v2791_v10 = vand.u32 2147483647, %v8571_v15  ;;  %v2750_v57 = vsel %vm8622_vm13, %v2749_v44, %v2745_v36  ;;  %v2821_v50 = vadd.f32 %v2817_v12, %v8501_v7 }
 0x547   : > { %v2769_v29 = vsub.f32 1.0, %v2768_v14  ;;  %v2783_v31 = vmul.f32 %v6249_v2, %v8571_v15  ;;  %6252 = vtanh.f32 %v2820_v54  ;;  %v2764_v14 = vor.u32 1.1754944e-38, %v2763_v49 }
 0x548   : > { %v2649_v27 = vpop.f32.mrf.mxu2  ;;  %v2760_v35 = vsel %vm8651_vm3, %v8568_v25, %v2756_v6  ;;  %vm2788_vm4 = vweird.f32 %v6249_v2  ;;  %vm2773_vm5 = vweird.f32 %v8614_v3  ;;  %6254 = vtanh.f32 %v2822_v53 }
 0x549   : > { %v2784_v56 = vsub.f32 1.0, %v2783_v31  ;;  %v2815_v60 = vadd.f32 %v2649_v27, %v7017_v0  ;;  %v2770_v63 = vmul.f32 %v8614_v3, %v2769_v29  ;;  %v2765_v1 = vsel %vm8637_vm0, %v2764_v14, %v2760_v35  ;;  %vm2789_vm6 = vmor %vm2787_vm1, %vm2788_vm4  ;;  %v10173_v29 = vld [vmem:[#allocation23_spill] sm:$0xff] }
 0x54a   : > { %v2778_v20 = vand.u32 2147483648, %v8555_v30  ;;  %v2776_v7 = vand.u32 2147483647, %v8555_v30  ;;  %vm2792_vm8 = vcmp.eq.f32.partialorder %v2791_v10, 8.507059e+37  ;;  %v2794_v44 = vor.u32 1.1754944e-38, %v2793_v11  ;;  %vm8679_vm9 = vmor %vm2772_vm7, %vm2773_vm5 }
 0x54b   : > { %v2819_v49 = vmul.f32 %v2815_v60, %v2750_v57  ;;  %v2785_v32 = vmul.f32 %v6249_v2, %v2784_v56  ;;  %v2771_v25 = vadd.f32 %v8614_v3, %v2770_v63  ;;  %v2806_v61 = vand.u32 2147483647, %v8616_v18 }
 0x54c   : > { %v6251_v54 = vpop.eup %6250  ;;  %v2828_v12 = vsub.f32 1.0, %v2765_v1  ;;  %6256 = vtanh.f32 %v2821_v50  ;;  %v2779_v53 = vor.u32 1.1754944e-38, %v2778_v20  ;;  %vm2777_vm11 = vcmp.eq.f32.partialorder %v2776_v7, 8.507059e+37 }
 0x54d   : > { %v2798_v19 = vmul.f32 %v6251_v54, %v8616_v18  ;;  %v2786_v6 = vadd.f32 %v6249_v2, %v2785_v32  ;;  %v6253_v24 = vpop.eup %6252  ;;  %v2823_v4 = vadd.f32 %v2819_v49, %v8515_v59  ;;  %v2775_v30 = vsel %vm8679_vm9, %v8614_v3, %v2771_v25 }
 0x54e   : > { %v2808_v59 = vand.u32 2147483648, %v8616_v18  ;;  %vm2803_vm10 = vweird.f32 %v6251_v54  ;;  %v6255_v14 = vpop.eup %6254  ;;  %vm2802_vm12 = vweird.f32 %v8616_v18  ;;  %v2780_v56 = vsel %vm2777_vm11, %v2779_v53, %v2775_v30 }
 0x54f   : > { %v2799_v31 = vsub.f32 1.0, %v2798_v19  ;;  %v2790_v15 = vsel %vm2789_vm6, %v6249_v2, %v2786_v6  ;;  %6258 = vtanh.f32 %v2823_v4  ;;  %v2832_v10 = vmul.f32 %v6253_v24, %v2828_v12  ;;  %vm2804_vm13 = vmor %vm2802_vm12, %vm2803_vm10  ;;  %v10171_v4 = vld [vmem:[#allocation22_spill] sm:$0xff] }
 0x550   : > { %v2795_v36 = vsel %vm2792_vm8, %v2794_v44, %v2790_v15  ;;  %vm2807_vm14 = vcmp.eq.f32.partialorder %v2806_v61, 8.507059e+37  ;;  %v2809_v3 = vor.u32 1.1754944e-38, %v2808_v59  ;;  %v2836_v11 = vmul.f32 %v2765_v1, %v8404_v9  ;;  %v10170_v1 = vld [vmem:[#allocation19_spill] sm:$0xff]  ;;  %v10172_v61 = vld [vmem:[#allocation21_spill] sm:$0xff] }
 0x551   : > { %v2830_v27 = vsub.f32 1.0, %v2795_v36  ;;  %v2800_v43 = vmul.f32 %v6251_v54, %v2799_v31  ;;  %v2838_v60 = vmul.f32 %v2795_v36, %v8398_v33  ;;  %v2829_v50 = vsub.f32 1.0, %v2780_v56  ;;  %v10177_v15 = vld [vmem:[#allocation39_spill] sm:$0xff] }
 0x552   : > { %v6257_v49 = vpop.eup %6256  ;;  %v8693_v18 = vadd.f32 %v2836_v11, %v2832_v10  ;;  %v2837_v24 = vmul.f32 %v2780_v56, %v8409_v45  ;;  %v1000_v12 = vadd.f32 %v10177_v15, %v6993_v17  ;;  %v10178_v10 = vld [vmem:[#allocation14_spill] sm:$0xff] }
 0x553   : > { %v2834_v2 = vmul.f32 %v6255_v14, %v2830_v27  ;;  %v2801_v35 = vadd.f32 %v6251_v54, %v2800_v43  ;;  %v2833_v7 = vmul.f32 %v6257_v49, %v2829_v50 }
 0x555   : > { %v8689_v57 = vadd.f32 %v2838_v60, %v2834_v2  ;;  %v2805_v63 = vsel %vm2804_vm13, %v6251_v54, %v2801_v35  ;;  %v6259_v20 = vpop.eup %6258  ;;  %v8705_v44 = vadd.f32 %v2837_v24, %v2833_v7  ;;  %v968_v35 = vadd.f32 %v10178_v10, %v7013_v48  ;;  %v10180_v24 = vld [vmem:[#allocation15_spill] sm:$0xff] }
 0x556   : > { %v2810_v32 = vsel %vm2807_vm14, %v2809_v3, %v2805_v63  ;;  %v10179_v3 = vld [vmem:[#allocation41_spill] sm:$0xff] }
 0x557   : > { %2874 = vmatpush.msra.mxu3 %v8689_v57  ;;  %v2831_v25 = vsub.f32 1.0, %v2810_v32  ;;  %v2839_v6 = vmul.f32 %v2810_v32, %v8402_v55  ;;  %v1003_v11 = vadd.f32 %v10179_v3, %v7013_v48 }
 0x559   : > { %2875 = vmatpush.msra.mxu3 %v8693_v18  ;;  %v2835_v19 = vmul.f32 %v6259_v20, %v2831_v25 }
 0x55a   : > { %5822 = vmatmul.msk.f32.vlgmr.msra.gmra.mxu3 %vm1210_vm2, %v8414_v40 }
 0x55b   : > { %3480 = vmatpush.msrb.mxu3 %v10170_v1  ;;  %v8700_v54 = vadd.f32 %v2839_v6, %v2835_v19 }
 0x55d   : > { %3481 = vmatpush.msrb.mxu3 %v10171_v4  ;;  %2909 = vmatpush.msrb.mxu0 %v8700_v54  ;;  %v971_v4 = vadd.f32 %v10180_v24, %v7006_v28 }
 0x55f   : > { %3506 = vmatpush.msra.mxu3 %v10172_v61  ;;  %2910 = vmatpush.msrb.mxu0 %v8705_v44 }
 0x560   : > { %5828 = vmatmul.msk.f32.vlgmr.msrb.gmra.mxu0 %vm1210_vm2, %v8414_v40 }
 0x561   : > { %3507 = vmatpush.msra.mxu3 %v10173_v29  ;;  %3532 = vmatpush.msra.mxu0 %v7551_v8  ;;  %v8737_v8 = vld [vmem:[%s9954_s5] sm:$0xff] }
 0x562   : > { %5823 = vmatmul.msk.f32.gmra.mxu3 %vm1210_vm2, %v8424_v16 }
 0x563   : > { %3533 = vmatpush.msra.mxu0 %v7555_v23  ;;  %v8748_v23 = vld [vmem:[%s9954_s5 + $0x8] sm:$0xff] }
 0x565   : > { %3636 = vmatpush.msrb.mxu0 %v8133_v47 }
 0x567   : > { %3637 = vmatpush.msrb.mxu0 %v8137_v26  ;;  %v10175_v26 = vld [vmem:[#allocation37_spill] sm:$0xff] }
 0x568   : > { %5829 = vmatmul.msk.f32.gmra.mxu0 %vm1210_vm2, %v8424_v16 }
 0x56a   : > { %5824 = vmatmul.msk.f32.gmra.mxu3 %vm1210_vm2, %v8433_v13 }
 0x570   : > { %5830 = vmatmul.msk.f32.gmra.mxu0 %vm1210_vm2, %v8433_v13 }
 0x572   : > { %5825 = vmatmul.msk.f32.gmra.mxu3 %vm1210_vm2, %v8442_v41 }
 0x578   : > { %5831 = vmatmul.msk.f32.gmra.mxu0 %vm1210_vm2, %v8442_v41 }
 0x57a   : > { %5826 = vmatmul.msk.f32.gmra.mxu3 %vm1210_vm2, %v8451_v62 }
 0x580   : > { %5832 = vmatmul.msk.f32.gmra.mxu0 %vm1210_vm2, %v8451_v62 }
 0x582   : > { %5827 = vmatmul.msk.f32.gmra.mxu3 %vm1210_vm2, %v8460_v37 }
 0x588   : > { %5833 = vmatmul.msk.f32.gmra.mxu0 %vm1210_vm2, %v8460_v37  ;;  %v10176_v37 = vld [vmem:[#allocation13_spill] sm:$0xff] }
 0x589   : > { %v965_v31 = vadd.f32 %v10176_v37, %v6993_v17 }
 0x58a   : > { %5862 = vmatmul.msk.f32.vlgmr.msrb.gmra.mxu3 %vm1210_vm2, %v8737_v8 }
 0x58b   : > { %3610 = vmatpush.msrb.mxu3 %v7876_v58  ;;  %v8759_v58 = vld [vmem:[%s9954_s5 + $0x10] sm:$0xff] }
 0x58d   : > { %3611 = vmatpush.msrb.mxu3 %v7883_v22  ;;  %v10174_v22 = vld [vmem:[#allocation12_spill] sm:$0xff] }
 0x58e   : > { %v962_v47 = vadd.f32 %v10174_v22, %v6999_v21  ;;  %v10181_v22 = vld [vmem:[#allocation16_spill] sm:$0xff] }
 0x590   : > { %5868 = vmatmul.msk.f32.vlgmr.msra.gmra.mxu0 %vm1210_vm2, %v8737_v8 }
 0x591   : > { %3740 = vmatpush.msra.mxu0 %v8689_v57 }
 0x592   : > { %5863 = vmatmul.msk.f32.gmra.mxu3 %vm1210_vm2, %v8748_v23 }
 0x593   : > { %3741 = vmatpush.msra.mxu0 %v8693_v18 }
 0x598   : > { %5869 = vmatmul.msk.f32.gmra.mxu0 %vm1210_vm2, %v8748_v23 }
 0x59a   : > { %5864 = vmatmul.msk.f32.gmra.mxu3 %vm1210_vm2, %v8759_v58 }
 0x5a0   : > { %5870 = vmatmul.msk.f32.gmra.mxu0 %vm1210_vm2, %v8759_v58 }
 0x5a2   : > { %5865 = vmatmul.msk.f32.vlgmr.msra.gmra.mxu3 %vm1210_vm2, %v8737_v8 }
 0x5a3   : > { %3714 = vmatpush.msra.mxu3 %v8402_v55  ;;  %v997_v55 = vadd.f32 %v10175_v26, %v6999_v21  ;;  %v10182_v26 = vld [vmem:[#allocation43_spill] sm:$0xff] }
 0x5a5   : > { %3715 = vmatpush.msra.mxu3 %v8409_v45 }
 0x5a8   : > { %5880 = vmatmul.msk.f32.vlgmr.msrb.gmra.mxu0 %vm1210_vm2, %v8737_v8 }
 0x5aa   : > { %5866 = vmatmul.msk.f32.gmra.mxu3 %vm1210_vm2, %v8748_v23 }
 0x5b0   : > { %5881 = vmatmul.msk.f32.gmra.mxu0 %vm1210_vm2, %v8748_v23 }
 0x5b2   : > { %5867 = vmatmul.msk.f32.gmra.mxu3 %vm1210_vm2, %v8759_v58 }
 0x5b8   : > { %5882 = vmatmul.msk.f32.gmra.mxu0 %vm1210_vm2, %v8759_v58 }
 0x5ba   : > { %5877 = vmatmul.msk.f32.vlgmr.msrb.gmra.mxu3 %vm1210_vm2, %v8737_v8 }
 0x5c0   : > { %5892 = vmatmul.msk.f32.vlgmr.msra.gmra.mxu0 %vm1210_vm2, %v8737_v8 }
 0x5c2   : > { %5878 = vmatmul.msk.f32.gmra.mxu3 %vm1210_vm2, %v8748_v23 }
 0x5c8   : > { %5893 = vmatmul.msk.f32.gmra.mxu0 %vm1210_vm2, %v8748_v23 }
 0x5ca   : > { %5879 = vmatmul.msk.f32.gmra.mxu3 %vm1210_vm2, %v8759_v58 }
 0x5d0   : > { %5894 = vmatmul.msk.f32.gmra.mxu0 %vm1210_vm2, %v8759_v58 }
 0x5d2   : > { %5889 = vmatmul.msk.f32.vlgmr.msra.gmra.mxu3 %vm1210_vm2, %v8737_v8 }
 0x5da   : > { %5890 = vmatmul.msk.f32.gmra.mxu3 %vm1210_vm2, %v8748_v23 }
 0x5dd   : > { %v2877_v45 = vpop.f32.mrf.mxu3  ;;  %v2912_v40 = vpop.f32.mrf.mxu0 }
 0x5de   : > { %v2930_v16 = vadd.f32 %v2877_v45, %v962_v47  ;;  %v2931_v13 = vadd.f32 %v2912_v40, %v997_v55  ;;  %v8829_v47 = vadd.f32 %v10181_v22, %v7034_v34  ;;  %v1006_v55 = vadd.f32 %v10182_v26, %v7006_v28  ;;  %v10183_v40 = vld [vmem:[#allocation45_spill] sm:$0xff] }
 0x5e0   : > { %v5834_v41 = vmul.f32 -1.442695, %v2930_v16  ;;  %v5835_v62 = vmul.f32 -1.442695, %v2931_v13  ;;  %v8838_v16 = vadd.f32 %v10183_v40, %v7034_v34 }
 0x5e2   : > { %6260 = vpow2.f32 %v5834_v41  ;;  %5891 = vmatmul.msk.f32.gmra.mxu3 %vm1210_vm2, %v8759_v58 }
 0x5e3   : > { %6262 = vpow2.f32 %v5835_v62  ;;  %v10184_v62 = vld [vmem:[#allocation17_spill] sm:$0xff] }
 0x5e4   : > { %v8844_v37 = vadd.f32 %v10184_v62, %v7045_v46 }
 0x5e5   : > { %v2880_v30 = vpop.f32.mrf.mxu3  ;;  %v2915_v36 = vpop.f32.mrf.mxu0 }
 0x5e6   : > { %v2932_v59 = vadd.f32 %v2880_v30, %v965_v31  ;;  %v2933_v53 = vadd.f32 %v2915_v36, %v1000_v12  ;;  %v10185_v31 = vld [vmem:[#allocation47_spill] sm:$0xff] }
 0x5e7   : > { %v8848_v15 = vadd.f32 %v10185_v31, %v7045_v46 }
 0x5e8   : > { %v6261_v27 = vpop.eup %6260  ;;  %v5836_v43 = vmul.f32 -1.442695, %v2932_v59  ;;  %v5837_v2 = vmul.f32 -1.442695, %v2933_v53 }
 0x5e9   : > { %v6263_v14 = vpop.eup %6262  ;;  %v8807_v56 = vadd.f32 1.0, %v6261_v27 }
 0x5ea   : > { %v8809_v60 = vadd.f32 1.0, %v6263_v14  ;;  %6264 = vpow2.f32 %v5836_v43 }
 0x5eb   : > { %6266 = vrcp.f32 %v8807_v56  ;;  %v2979_v36 = vand.u32 2147483647, %v8807_v56  ;;  %vm2975_vm15 = vweird.f32 %v8807_v56  ;;  %v2981_v14 = vand.u32 2147483648, %v8807_v56 }
 0x5ec   : > { %6268 = vrcp.f32 %v8809_v60  ;;  %v2994_v10 = vand.u32 2147483647, %v8809_v60  ;;  %vm2990_vm0 = vweird.f32 %v8809_v60 }
 0x5ed   : > { %6270 = vpow2.f32 %v5837_v2  ;;  %v2883_v63 = vpop.f32.mrf.mxu3  ;;  %v2918_v50 = vpop.f32.mrf.mxu0  ;;  %vm8865_vm3 = vcmp.eq.f32.partialorder %v2979_v36, 8.507059e+37 }
 0x5ee   : > { %v2934_v49 = vadd.f32 %v2883_v63, %v968_v35  ;;  %v2935_v32 = vadd.f32 %v2918_v50, %v1003_v11  ;;  %v2996_v63 = vand.u32 2147483648, %v8809_v60  ;;  %vm8886_vm6 = vcmp.eq.f32.partialorder %v2994_v10, 8.507059e+37 }
 0x5f0   : > { %v6265_v25 = vpop.eup %6264  ;;  %v5838_v20 = vmul.f32 -1.442695, %v2934_v49  ;;  %v5839_v19 = vmul.f32 -1.442695, %v2935_v32 }
 0x5f1   : > { %v8817_v6 = vpop.eup %6266  ;;  %v8819_v7 = vadd.f32 1.0, %v6265_v25 }
 0x5f2   : > { %v8821_v1 = vpop.eup %6268  ;;  %6272 = vpow2.f32 %v5838_v20  ;;  %v2971_v61 = vmul.f32 %v8817_v6, %v8807_v56  ;;  %vm2976_vm1 = vweird.f32 %v8817_v6 }
 0x5f3   : > { %v6271_v29 = vpop.eup %6270  ;;  %6274 = vrcp.f32 %v8819_v7  ;;  %v2986_v45 = vmul.f32 %v8821_v1, %v8809_v60  ;;  %vm2991_vm4 = vweird.f32 %v8821_v1  ;;  %v3009_v24 = vand.u32 2147483647, %v8819_v7  ;;  %vm8882_vm5 = vmor %vm2975_vm15, %vm2976_vm1 }
 0x5f4   : > { %v8840_v13 = vadd.f32 1.0, %v6271_v29  ;;  %6276 = vpow2.f32 %v5839_v19  ;;  %v2972_v41 = vsub.f32 1.0, %v2971_v61  ;;  %v3011_v29 = vand.u32 2147483648, %v8819_v7  ;;  %vm8901_vm7 = vmor %vm2990_vm0, %vm2991_vm4 }
 0x5f5   : > { %v2886_v12 = vpop.f32.mrf.mxu3  ;;  %v2921_v30 = vpop.f32.mrf.mxu0  ;;  %v2987_v59 = vsub.f32 1.0, %v2986_v45  ;;  %vm3005_vm8 = vweird.f32 %v8819_v7  ;;  %vm8907_vm9 = vcmp.eq.f32.partialorder %v3009_v24, 8.507059e+37 }
 0x5f6   : > { %6278 = vrcp.f32 %v8840_v13  ;;  %v2936_v53 = vadd.f32 %v2886_v12, %v971_v4  ;;  %v2937_v27 = vadd.f32 %v2921_v30, %v1006_v55  ;;  %v2973_v43 = vmul.f32 %v8817_v6, %v2972_v41 }
 0x5f7   : > { %v2988_v2 = vmul.f32 %v8821_v1, %v2987_v59  ;;  %v2982_v55 = vor.u32 1.1754944e-38, %v2981_v14  ;;  %v2997_v12 = vor.u32 1.1754944e-38, %v2996_v63  ;;  %v3024_v60 = vand.u32 2147483647, %v8840_v13 }
 0x5f8   : > { %v6273_v35 = vpop.eup %6272  ;;  %v5840_v3 = vmul.f32 -1.442695, %v2936_v53  ;;  %v5841_v11 = vmul.f32 -1.442695, %v2937_v27  ;;  %v2974_v32 = vadd.f32 %v8817_v6, %v2973_v43  ;;  %v3012_v27 = vor.u32 1.1754944e-38, %v3011_v29 }
 0x5f9   : > { %v8859_v50 = vpop.eup %6274  ;;  %v8861_v49 = vadd.f32 1.0, %v6273_v35  ;;  %v2989_v61 = vadd.f32 %v8821_v1, %v2988_v2  ;;  %v3026_v35 = vand.u32 2147483648, %v8840_v13  ;;  %vm3020_vm12 = vweird.f32 %v8840_v13 }
 0x5fa   : > { %v6277_v20 = vpop.eup %6276  ;;  %6280 = vpow2.f32 %v5840_v3  ;;  %v3001_v19 = vmul.f32 %v8859_v50, %v8819_v7  ;;  %v2978_v62 = vsel %vm8882_vm5, %v8817_v6, %v2974_v32  ;;  %vm3006_vm10 = vweird.f32 %v8859_v50 }
 0x5fb   : > { %6282 = vrcp.f32 %v8861_v49  ;;  %v8874_v4 = vadd.f32 1.0, %v6277_v20  ;;  %v2993_v53 = vsel %vm8901_vm7, %v8821_v1, %v2989_v61  ;;  %v2983_v2 = vsel %vm8865_vm3, %v2982_v55, %v2978_v62  ;;  %vm8941_vm13 = vmor %vm3005_vm8, %vm3006_vm10 }
 0x5fc   : > { %v8878_v22 = vpop.eup %6278  ;;  %6284 = vpow2.f32 %v5841_v11  ;;  %v3002_v40 = vsub.f32 1.0, %v3001_v19  ;;  %v2998_v19 = vsel %vm8886_vm6, %v2997_v12, %v2993_v53  ;;  %vm8946_vm14 = vcmp.eq.f32.partialorder %v3024_v60, 8.507059e+37 }
 0x5fd   : > { %6286 = vrcp.f32 %v8874_v4  ;;  %v2889_v41 = vpop.f32.mrf.mxu3  ;;  %v2924_v31 = vpop.f32.mrf.mxu0  ;;  %v3016_v56 = vmul.f32 %v8878_v22, %v8840_v13  ;;  %vm3021_vm11 = vweird.f32 %v8878_v22  ;;  %v3041_v53 = vand.u32 2147483648, %v8861_v49 }
 0x5fe   : > { %v3090_v30 = vadd.f32 %v2889_v41, %v7106_v39  ;;  %v3003_v59 = vmul.f32 %v8859_v50, %v3002_v40  ;;  %v3091_v1 = vadd.f32 %v2924_v31, %v7106_v39  ;;  %vm8957_vm15 = vmor %vm3020_vm12, %vm3021_vm11  ;;  %v3027_v41 = vor.u32 1.1754944e-38, %v3026_v35 }
 0x5ff   : > { %v3017_v43 = vsub.f32 1.0, %v3016_v56  ;;  %vm3035_vm0 = vweird.f32 %v8861_v49  ;;  %vm3050_vm1 = vweird.f32 %v8874_v4 }
 0x600   : > { %v6281_v14 = vpop.eup %6280  ;;  %v3004_v10 = vadd.f32 %v8859_v50, %v3003_v59  ;;  %v3094_v20 = vmul.f32 %v3090_v30, %v2983_v2  ;;  %v3095_v62 = vmul.f32 %v3091_v1, %v2998_v19  ;;  %v3039_v30 = vand.u32 2147483647, %v8861_v49 }
 0x601   : > { %v8920_v3 = vpop.eup %6282  ;;  %v8922_v11 = vadd.f32 1.0, %v6281_v14  ;;  %v3018_v63 = vmul.f32 %v8878_v22, %v3017_v43 }
 0x602   : > { %v6285_v32 = vpop.eup %6284  ;;  %v3031_v25 = vmul.f32 %v8920_v3, %v8861_v49  ;;  %v3008_v40 = vsel %vm8941_vm13, %v8859_v50, %v3004_v10  ;;  %v3098_v50 = vadd.f32 %v3094_v20, %v8829_v47  ;;  %v3054_v47 = vand.u32 2147483647, %v8874_v4 }
 0x603   : > { %v8932_v24 = vpop.eup %6286  ;;  %6288 = vrcp.f32 %v8922_v11  ;;  %v8935_v61 = vadd.f32 1.0, %v6285_v32  ;;  %v3019_v26 = vadd.f32 %v8878_v22, %v3018_v63  ;;  %v3013_v43 = vsel %vm8907_vm9, %v3012_v27, %v3008_v40 }
 0x604   : > { %v3032_v13 = vsub.f32 1.0, %v3031_v25  ;;  %v3046_v45 = vmul.f32 %v8932_v24, %v8874_v4  ;;  %v3099_v35 = vadd.f32 %v3095_v62, %v8838_v16  ;;  %vm3036_vm3 = vweird.f32 %v8920_v3 }
 0x605   : > { %6290 = vrcp.f32 %v8935_v61  ;;  %v2892_v31 = vpop.f32.mrf.mxu3  ;;  %v2927_v12 = vpop.f32.mrf.mxu0  ;;  %v3023_v56 = vsel %vm8957_vm15, %v8878_v22, %v3019_v26  ;;  %vm8982_vm4 = vcmp.eq.f32.partialorder %v3039_v30, 8.507059e+37  ;;  %v3042_v32 = vor.u32 1.1754944e-38, %v3041_v53  ;;  %vm8993_vm6 = vmor %vm3035_vm0, %vm3036_vm3 }
 0x606   : > { %v3047_v36 = vsub.f32 1.0, %v3046_v45  ;;  %v3092_v59 = vadd.f32 %v2892_v31, %v7017_v0  ;;  %v3093_v60 = vadd.f32 %v2927_v12, %v7017_v0  ;;  %v3028_v22 = vsel %vm8946_vm14, %v3027_v41, %v3023_v56 }
 0x607   : > { %v3033_v2 = vmul.f32 %v8920_v3, %v3032_v13  ;;  %6292 = vtanh.f32 %v3098_v50  ;;  %vm3065_vm5 = vweird.f32 %v8922_v11  ;;  %v3069_v16 = vand.u32 2147483647, %v8922_v11 }
 0x608   : > { %v3096_v14 = vmul.f32 %v3092_v59, %v3013_v43  ;;  %v3097_v1 = vmul.f32 %v3093_v60, %v3028_v22  ;;  %v3048_v6 = vmul.f32 %v8932_v24, %v3047_v36  ;;  %vm3051_vm7 = vweird.f32 %v8932_v24 }
 0x609   : > { %v6289_v10 = vpop.eup %6288  ;;  %v3034_v19 = vadd.f32 %v8920_v3, %v3033_v2  ;;  %6294 = vtanh.f32 %v3099_v35  ;;  %v3071_v45 = vand.u32 2147483648, %v8922_v11  ;;  %v3084_v49 = vand.u32 2147483647, %v8935_v61  ;;  %vm9008_vm10 = vmor %vm3050_vm1, %vm3051_vm7 }
 0x60a   : > { %v3061_v27 = vmul.f32 %v6289_v10, %v8922_v11  ;;  %v3100_v20 = vadd.f32 %v3096_v14, %v8844_v37  ;;  %v3049_v13 = vadd.f32 %v8932_v24, %v3048_v6  ;;  %v3101_v37 = vadd.f32 %v3097_v1, %v8848_v15 }
 0x60b   : > { %v6291_v25 = vpop.eup %6290  ;;  %v3038_v40 = vsel %vm8993_vm6, %v8920_v3, %v3034_v19  ;;  %vm3066_vm8 = vweird.f32 %v6289_v10  ;;  %v3086_v62 = vand.u32 2147483648, %v8935_v61  ;;  %v3056_v15 = vand.u32 2147483648, %v8874_v4 }
 0x60c   : > { %v3062_v29 = vsub.f32 1.0, %v3061_v27  ;;  %v3076_v26 = vmul.f32 %v6291_v25, %v8935_v61  ;;  %6296 = vtanh.f32 %v3100_v20  ;;  %vm3081_vm9 = vweird.f32 %v6291_v25  ;;  %vm3067_vm11 = vmor %vm3065_vm5, %vm3066_vm8 }
 0x60d   : > { %v6293_v12 = vpop.eup %6292  ;;  %v3043_v30 = vsel %vm8982_vm4, %v3042_v32, %v3038_v40  ;;  %v3053_v36 = vsel %vm9008_vm10, %v8932_v24, %v3049_v13  ;;  %6298 = vtanh.f32 %v3101_v37  ;;  %vm3070_vm12 = vcmp.eq.f32.partialorder %v3069_v16, 8.507059e+37  ;;  %v10208_v13 = vld [vmem:[#allocation49_spill] sm:$0xff] }
 0x60e   : > { %v3077_v7 = vsub.f32 1.0, %v3076_v26  ;;  %v3063_v41 = vmul.f32 %v6289_v10, %v3062_v29  ;;  %v3072_v50 = vor.u32 1.1754944e-38, %v3071_v45  ;;  %v3057_v59 = vor.u32 1.1754944e-38, %v3056_v15  ;;  %v10211_v45 = vld [vmem:[#allocation52_spill] sm:$0xff]  ;;  %v9148_v15 = vld [vmem:[%s9955_s6 + $0x10] sm:$0xff] }
 0x60f   : > { %vm3080_vm13 = vweird.f32 %v8935_v61  ;;  %vm3055_vm14 = vcmp.eq.f32.partialorder %v3054_v47, 8.507059e+37  ;;  %v6295_v4 = vpop.eup %6294  ;;  %v3087_v14 = vor.u32 1.1754944e-38, %v3086_v62  ;;  %v3106_v22 = vsub.f32 1.0, %v3043_v30 }
 0x610   : > { %v3064_v56 = vadd.f32 %v6289_v10, %v3063_v41  ;;  %v3078_v3 = vmul.f32 %v6291_v25, %v3077_v7  ;;  %vm3082_vm15 = vmor %vm3080_vm13, %vm3081_vm9  ;;  %v3058_v2 = vsel %vm3055_vm14, %v3057_v59, %v3053_v36  ;;  %vm3085_vm0 = vcmp.eq.f32.partialorder %v3084_v49, 8.507059e+37  ;;  %v10212_v41 = vld [vmem:[#allocation40_spill] sm:$0xff]  ;;  %v10213_v36 = vld [vmem:[#allocation53_spill] sm:$0xff] }
 0x611   : > { %v3107_v6 = vsub.f32 1.0, %v3058_v2  ;;  %v3110_v61 = vmul.f32 %v6293_v12, %v3106_v22  ;;  %v3114_v29 = vmul.f32 %v3043_v30, %v8693_v18  ;;  %v3115_v26 = vmul.f32 %v3058_v2, %v8705_v44  ;;  %v6512_v18 = vld [vmem:[%s9951_s2] sm:$0xff] }
 0x612   : > { %v3068_v53 = vsel %vm3067_vm11, %v6289_v10, %v3064_v56  ;;  %v3079_v43 = vadd.f32 %v6291_v25, %v3078_v3  ;;  %v6297_v11 = vpop.eup %6296  ;;  %vm3945_vm1 = vcmask 64512   ;;  %v1067_v40 = vadd.f32 %v10211_v45, %v6999_v21 }
 0x613   : > { %v3073_v60 = vsel %vm3070_vm12, %v3072_v50, %v3068_v53  ;;  %v6299_v32 = vpop.eup %6298  ;;  %v3111_v19 = vmul.f32 %v6295_v4, %v3107_v6  ;;  %v9031_v55 = vadd.f32 %v3114_v29, %v3110_v61  ;;  %v1035_v49 = vadd.f32 %v10212_v41, %v6993_v17  ;;  %v10214_v53 = vld [vmem:[#allocation42_spill] sm:$0xff]  ;;  %v10221_v41 = vld [vmem:[#allocation57_spill] sm:$0xff] }
 0x614   : > { %v3108_v24 = vsub.f32 1.0, %v3073_v60  ;;  %v3083_v35 = vsel %vm3082_vm15, %v6291_v25, %v3079_v43  ;;  %v3116_v10 = vmul.f32 %v3073_v60, %v8689_v57  ;;  %v1070_v50 = vadd.f32 %v10213_v36, %v6993_v17  ;;  %v10215_v6 = vld [vmem:[#allocation54_spill] sm:$0xff] }
 0x615   : > { %v3088_v1 = vsel %vm3085_vm0, %v3087_v14, %v3083_v35  ;;  %v9035_v57 = vadd.f32 %v3115_v26, %v3111_v19  ;;  %v1038_v43 = vadd.f32 %v10214_v53, %v7013_v48  ;;  %v10217_v19 = vld [vmem:[#allocation55_spill] sm:$0xff]  ;;  %v10218_v26 = vld [vmem:[#allocation46_spill] sm:$0xff] }
 0x616   : > { %v3112_v27 = vmul.f32 %v6297_v11, %v3108_v24  ;;  %v3109_v63 = vsub.f32 1.0, %v3088_v1  ;;  %v3117_v16 = vmul.f32 %v3088_v1, %v8700_v54  ;;  %v1076_v29 = vadd.f32 %v10217_v19, %v7006_v28 }
 0x618   : > { %v9023_v47 = vadd.f32 %v3116_v10, %v3112_v27  ;;  %v3113_v20 = vmul.f32 %v6299_v32, %v3109_v63  ;;  %v1073_v27 = vadd.f32 %v10215_v6, %v7013_v48  ;;  %v10216_v32 = vld [vmem:[#allocation44_spill] sm:$0xff] }
 0x619   : > { %v1041_v61 = vadd.f32 %v10216_v32, %v7006_v28  ;;  %v10219_v48 = vld [vmem:[#allocation56_spill] sm:$0xff] }
 0x61a   : > { %3152 = vmatpush.msrb.mxu1 %v9023_v47  ;;  %v9028_v25 = vadd.f32 %v3117_v16, %v3113_v20 }
 0x61c   : > { %3187 = vmatpush.msrb.mxu2 %v9028_v25  ;;  %3818 = vmatpush.msrb.mxu3 %v9028_v25 }
 0x61d   : > { %3153 = vmatpush.msrb.mxu1 %v9031_v55 }
 0x61e   : > { %3188 = vmatpush.msrb.mxu2 %v9035_v57  ;;  %3819 = vmatpush.msrb.mxu3 %v9035_v57 }
 0x61f   : > { %5842 = vmatmul.msk.f32.vlgmr.msrb.gmra.mxu1 %vm1210_vm2, %v6512_v18  ;;  %5848 = vmatmul.msk.f32.vlgmr.msrb.gmra.mxu2 %vm1210_vm2, %v6512_v18  ;;  %v9170_v18 = vadd.f32 %v10218_v26, %v7034_v34 }
 0x620   : > { %3558 = vmatpush.msra.mxu1 %v7566_v52  ;;  %3584 = vmatpush.msra.mxu2 %v7872_v51  ;;  %v6513_v52 = vld [vmem:[%s9951_s2 + $0x8] sm:$0xff]  ;;  %v6515_v51 = vld [vmem:[%s9951_s2 + $0x18] sm:$0xff] }
 0x621   : > { %5901 = vmatmul.msk.f32.vlgmr.msrb.gmra.mxu3 %vm1210_vm2, %v8737_v8 }
 0x622   : > { %3559 = vmatpush.msra.mxu1 %v7570_v38  ;;  %3585 = vmatpush.msra.mxu2 %v7878_v5  ;;  %v6514_v38 = vld [vmem:[%s9951_s2 + $0x10] sm:$0xff]  ;;  %v6516_v5 = vld [vmem:[%s9951_s2 + $0x20] sm:$0xff] }
 0x624   : > { %3662 = vmatpush.msrb.mxu1 %v8143_v42  ;;  %3688 = vmatpush.msrb.mxu2 %v8398_v33  ;;  %v6517_v42 = vld [vmem:[%s9951_s2 + $0x28] sm:$0xff]  ;;  %v10209_v33 = vmov 0.0  }
 0x626   : > { %3663 = vmatpush.msrb.mxu1 %v10208_v13  ;;  %3689 = vmatpush.msrb.mxu2 %v8404_v9  ;;  %v9128_v9 = vld [vmem:[%s9955_s6] sm:$0xff] }
 0x627   : > { %5843 = vmatmul.msk.f32.gmra.mxu1 %vm1210_vm2, %v6513_v52  ;;  %5849 = vmatmul.msk.f32.gmra.mxu2 %vm1210_vm2, %v6513_v52 }
 0x629   : > { %5902 = vmatmul.msk.f32.gmra.mxu3 %vm1210_vm2, %v8748_v23 }
 0x62f   : > { %5844 = vmatmul.msk.f32.gmra.mxu1 %vm1210_vm2, %v6514_v38  ;;  %5850 = vmatmul.msk.f32.gmra.mxu2 %vm1210_vm2, %v6514_v38  ;;  %v9174_v38 = vadd.f32 %v10219_v48, %v7034_v34  ;;  %v10220_v34 = vld [vmem:[#allocation48_spill] sm:$0xff] }
 0x631   : > { %5903 = vmatmul.msk.f32.gmra.mxu3 %vm1210_vm2, %v8759_v58 }
 0x637   : > { %5845 = vmatmul.msk.f32.gmra.mxu1 %vm1210_vm2, %v6515_v51  ;;  %5851 = vmatmul.msk.f32.gmra.mxu2 %vm1210_vm2, %v6515_v51 }
 0x63f   : > { %5846 = vmatmul.msk.f32.gmra.mxu1 %vm1210_vm2, %v6516_v5  ;;  %5852 = vmatmul.msk.f32.gmra.mxu2 %vm1210_vm2, %v6516_v5 }
 0x647   : > { %5847 = vmatmul.msk.f32.gmra.mxu1 %vm1210_vm2, %v6517_v42  ;;  %5853 = vmatmul.msk.f32.gmra.mxu2 %vm1210_vm2, %v6517_v42 }
 0x64f   : > { %5871 = vmatmul.msk.f32.vlgmr.msra.gmra.mxu1 %vm1210_vm2, %v8737_v8  ;;  %5874 = vmatmul.msk.f32.vlgmr.msra.gmra.mxu2 %vm1210_vm2, %v8737_v8 }
 0x650   : > { %3766 = vmatpush.msra.mxu1 %v8700_v54  ;;  %3792 = vmatpush.msra.mxu2 %v9023_v47  ;;  %v10210_v54 = vld [vmem:[#allocation38_spill] sm:$0xff] }
 0x652   : > { %3767 = vmatpush.msra.mxu1 %v8705_v44  ;;  %3793 = vmatpush.msra.mxu2 %v9031_v55  ;;  %v1032_v44 = vadd.f32 %v10210_v54, %v6999_v21 }
 0x657   : > { %5872 = vmatmul.msk.f32.gmra.mxu1 %vm1210_vm2, %v8748_v23  ;;  %5875 = vmatmul.msk.f32.gmra.mxu2 %vm1210_vm2, %v8748_v23 }
 0x65f   : > { %5873 = vmatmul.msk.f32.gmra.mxu1 %vm1210_vm2, %v8759_v58  ;;  %5876 = vmatmul.msk.f32.gmra.mxu2 %vm1210_vm2, %v8759_v58 }
 0x667   : > { %5883 = vmatmul.msk.f32.vlgmr.msrb.gmra.mxu1 %vm1210_vm2, %v8737_v8  ;;  %5886 = vmatmul.msk.f32.vlgmr.msrb.gmra.mxu2 %vm1210_vm2, %v8737_v8 }
 0x668   : > { %3970 = vmatpush.msrb.mxu2 %v10209_v33 }
 0x66f   : > { %5884 = vmatmul.msk.f32.gmra.mxu1 %vm1210_vm2, %v8748_v23  ;;  %5887 = vmatmul.msk.f32.gmra.mxu2 %vm1210_vm2, %v8748_v23 }
 0x677   : > { %5885 = vmatmul.msk.f32.gmra.mxu1 %vm1210_vm2, %v8759_v58  ;;  %5888 = vmatmul.msk.f32.gmra.mxu2 %vm1210_vm2, %v8759_v58 }
 0x67f   : > { %5895 = vmatmul.msk.f32.vlgmr.msra.gmra.mxu1 %vm1210_vm2, %v8737_v8  ;;  %5898 = vmatmul.msk.f32.vlgmr.msra.gmra.mxu2 %vm1210_vm2, %v8737_v8 }
 0x687   : > { %5896 = vmatmul.msk.f32.gmra.mxu1 %vm1210_vm2, %v8748_v23  ;;  %5899 = vmatmul.msk.f32.gmra.mxu2 %vm1210_vm2, %v8748_v23  ;;  %v9137_v23 = vld [vmem:[%s9955_s6 + $0x8] sm:$0xff] }
 0x68f   : > { %5897 = vmatmul.msk.f32.gmra.mxu1 %vm1210_vm2, %v8759_v58  ;;  %5900 = vmatmul.msk.f32.gmra.mxu2 %vm1210_vm2, %v8759_v58 }
 0x697   : > { %5910 = vmatmul.msk.f32.vlgmr.msrb.gmra.mxu2 %vm3945_vm1, %v9128_v9 }
 0x69c   : > { %v3155_v8 = vpop.f32.mrf.mxu1 }
 0x69d   : > { %v3208_v37 = vadd.f32 %v3155_v8, %v1032_v44 }
 0x69f   : > { %v5854_v58 = vmul.f32 -1.442695, %v3208_v37  ;;  %5911 = vmatmul.msk.f32.gmra.mxu2 %vm3945_vm1, %v9137_v23 }
 0x6a1   : > { %6300 = vpow2.f32 %v5854_v58 }
 0x6a2   : > { %v3190_v7 = vpop.f32.mrf.mxu2 }
 0x6a3   : > { %v3209_v62 = vadd.f32 %v3190_v7, %v1067_v40  ;;  %v9186_v7 = vadd.f32 %v10220_v34, %v7045_v46 }
 0x6a4   : > { %v3158_v31 = vpop.f32.mrf.mxu1 }
 0x6a5   : > { %v5855_v12 = vmul.f32 -1.442695, %v3209_v62  ;;  %v3210_v56 = vadd.f32 %v3158_v31, %v1035_v49  ;;  %v9190_v49 = vadd.f32 %v10221_v41, %v7045_v46 }
 0x6a7   : > { %v6301_v3 = vpop.eup %6300  ;;  %6302 = vpow2.f32 %v5855_v12  ;;  %v5856_v30 = vmul.f32 -1.442695, %v3210_v56  ;;  %5912 = vmatmul.msk.f32.gmra.mxu2 %vm3945_vm1, %v9148_v15 }
 0x6a8   : > { %v3240_v21 = vadd.f32 1.0, %v6301_v3 }
 0x6a9   : > { %6304 = vpow2.f32 %v5856_v30 }
 0x6aa   : > { %6306 = vrcp.f32 %v3240_v21  ;;  %v3193_v59 = vpop.f32.mrf.mxu2  ;;  %v3257_v44 = vand.u32 2147483647, %v3240_v21  ;;  %v3259_v28 = vand.u32 2147483648, %v3240_v21  ;;  %vm3253_vm4 = vweird.f32 %v3240_v21 }
 0x6ab   : > { %v3211_v4 = vadd.f32 %v3193_v59, %v1070_v50 }
 0x6ac   : > { %v3161_v60 = vpop.f32.mrf.mxu1  ;;  %vm9203_vm6 = vcmp.eq.f32.partialorder %v3257_v44, 8.507059e+37  ;;  %v3260_v30 = vor.u32 1.1754944e-38, %v3259_v28 }
 0x6ad   : > { %v6303_v14 = vpop.eup %6302  ;;  %v5857_v22 = vmul.f32 -1.442695, %v3211_v4  ;;  %v3212_v2 = vadd.f32 %v3161_v60, %v1038_v43 }
 0x6ae   : > { %v9156_v24 = vadd.f32 1.0, %v6303_v14 }
 0x6af   : > { %v6305_v35 = vpop.eup %6304  ;;  %6308 = vpow2.f32 %v5857_v22  ;;  %v5858_v11 = vmul.f32 -1.442695, %v3212_v2 }
 0x6b0   : > { %v6307_v1 = vpop.eup %6306  ;;  %6310 = vrcp.f32 %v9156_v24  ;;  %v9159_v17 = vadd.f32 1.0, %v6305_v35  ;;  %v3274_v36 = vand.u32 2147483648, %v9156_v24  ;;  %vm3268_vm7 = vweird.f32 %v9156_v24 }
 0x6b1   : > { %6312 = vpow2.f32 %v5858_v11  ;;  %v3249_v10 = vmul.f32 %v6307_v1, %v3240_v21  ;;  %vm3254_vm3 = vweird.f32 %v6307_v1  ;;  %v3272_v4 = vand.u32 2147483647, %v9156_v24 }
 0x6b2   : > { %6314 = vrcp.f32 %v9159_v17  ;;  %v3196_v63 = vpop.f32.mrf.mxu2  ;;  %vm9199_vm5 = vmor %vm3253_vm4, %vm3254_vm3  ;;  %vm3283_vm8 = vweird.f32 %v9159_v17  ;;  %v3287_v60 = vand.u32 2147483647, %v9159_v17  ;;  %v3289_v11 = vand.u32 2147483648, %v9159_v17 }
 0x6b3   : > { %v3213_v20 = vadd.f32 %v3196_v63, %v1073_v27  ;;  %v3250_v16 = vsub.f32 1.0, %v3249_v10  ;;  %v3275_v10 = vor.u32 1.1754944e-38, %v3274_v36  ;;  %vm9234_vm11 = vcmp.eq.f32.partialorder %v3272_v4, 8.507059e+37 }
 0x6b4   : > { %v3164_v13 = vpop.f32.mrf.mxu1  ;;  %vm9242_vm12 = vcmp.eq.f32.partialorder %v3287_v60, 8.507059e+37 }
 0x6b5   : > { %v6309_v52 = vpop.eup %6308  ;;  %v5859_v51 = vmul.f32 -1.442695, %v3213_v20  ;;  %v3214_v5 = vadd.f32 %v3164_v13, %v1041_v61  ;;  %v3251_v42 = vmul.f32 %v6307_v1, %v3250_v16 }
 0x6b6   : > { %v9176_v33 = vpop.eup %6310  ;;  %v9178_v54 = vadd.f32 1.0, %v6309_v52 }
 0x6b7   : > { %v6313_v8 = vpop.eup %6312  ;;  %6316 = vpow2.f32 %v5859_v51  ;;  %v5860_v37 = vmul.f32 -1.442695, %v3214_v5  ;;  %v3252_v58 = vadd.f32 %v6307_v1, %v3251_v42  ;;  %v3264_v45 = vmul.f32 %v9176_v33, %v9156_v24 }
 0x6b8   : > { %v9182_v40 = vpop.eup %6314  ;;  %6318 = vrcp.f32 %v9178_v54  ;;  %v9193_v62 = vadd.f32 1.0, %v6313_v8  ;;  %vm3269_vm9 = vweird.f32 %v9176_v33  ;;  %v3302_v61 = vand.u32 2147483647, %v9178_v54 }
 0x6b9   : > { %6320 = vpow2.f32 %v5860_v37  ;;  %v3265_v31 = vsub.f32 1.0, %v3264_v45  ;;  %v3279_v12 = vmul.f32 %v9182_v40, %v9159_v17  ;;  %v3256_v50 = vsel %vm9199_vm5, %v6307_v1, %v3252_v58  ;;  %vm9259_vm15 = vmor %vm3268_vm7, %vm3269_vm9 }
 0x6ba   : > { %6322 = vrcp.f32 %v9193_v62  ;;  %v3199_v56 = vpop.f32.mrf.mxu2  ;;  %v3261_v27 = vsel %vm9203_vm6, %v3260_v30, %v3256_v50  ;;  %vm3284_vm10 = vweird.f32 %v9182_v40  ;;  %v3290_v51 = vor.u32 1.1754944e-38, %v3289_v11 }
 0x6bb   : > { %v3215_v21 = vadd.f32 %v3199_v56, %v1076_v29  ;;  %v3280_v59 = vsub.f32 1.0, %v3279_v12  ;;  %v3266_v43 = vmul.f32 %v9176_v33, %v3265_v31  ;;  %vm9249_vm13 = vmor %vm3283_vm8, %vm3284_vm10  ;;  %vm3298_vm14 = vweird.f32 %v9178_v54 }
 0x6bc   : > { %v3167_v53 = vpop.f32.mrf.mxu1  ;;  %v3304_v28 = vand.u32 2147483648, %v9178_v54  ;;  %vm9266_vm0 = vcmp.eq.f32.partialorder %v3302_v61, 8.507059e+37  ;;  %vm3313_vm3 = vweird.f32 %v9193_v62  ;;  %v3317_v41 = vand.u32 2147483647, %v9193_v62 }
 0x6bd   : > { %v6317_v14 = vpop.eup %6316  ;;  %v5861_v22 = vmul.f32 -1.442695, %v3215_v21  ;;  %v3368_v2 = vadd.f32 %v3167_v53, %v7106_v39  ;;  %v3281_v35 = vmul.f32 %v9182_v40, %v3280_v59  ;;  %v3267_v19 = vadd.f32 %v9176_v33, %v3266_v43 }
 0x6be   : > { %v9218_v1 = vpop.eup %6318  ;;  %v9220_v6 = vadd.f32 1.0, %v6317_v14  ;;  %v3319_v31 = vand.u32 2147483648, %v9193_v62  ;;  %v3305_v43 = vor.u32 1.1754944e-38, %v3304_v28  ;;  %vm9300_vm7 = vcmp.eq.f32.partialorder %v3317_v41, 8.507059e+37 }
 0x6bf   : > { %v6321_v63 = vpop.eup %6320  ;;  %6324 = vpow2.f32 %v5861_v22  ;;  %v3282_v32 = vadd.f32 %v9182_v40, %v3281_v35  ;;  %v3294_v26 = vmul.f32 %v9218_v1, %v9178_v54  ;;  %v3372_v52 = vmul.f32 %v3368_v2, %v3261_v27 }
 0x6c0   : > { %v9228_v20 = vpop.eup %6322  ;;  %6326 = vrcp.f32 %v9220_v6  ;;  %v9231_v16 = vadd.f32 1.0, %v6321_v63  ;;  %v3271_v45 = vsel %vm9259_vm15, %v9176_v33, %v3267_v19  ;;  %vm3299_vm4 = vweird.f32 %v9218_v1 }
 0x6c1   : > { %v3309_v13 = vmul.f32 %v9228_v20, %v9193_v62  ;;  %v3295_v44 = vsub.f32 1.0, %v3294_v26  ;;  %v3286_v17 = vsel %vm9249_vm13, %v9182_v40, %v3282_v32  ;;  %v3376_v40 = vadd.f32 %v3372_v52, %v9170_v18  ;;  %vm9296_vm6 = vmor %vm3298_vm14, %vm3299_vm4 }
 0x6c2   : > { %6328 = vrcp.f32 %v9231_v16  ;;  %v3202_v5 = vpop.f32.mrf.mxu2  ;;  %v3291_v36 = vsel %vm9242_vm12, %v3290_v51, %v3286_v17  ;;  %vm3314_vm5 = vweird.f32 %v9228_v20  ;;  %v3320_v60 = vor.u32 1.1754944e-38, %v3319_v31 }
 0x6c3   : > { %v3310_v8 = vsub.f32 1.0, %v3309_v13  ;;  %v3296_v24 = vmul.f32 %v9218_v1, %v3295_v44  ;;  %v3369_v33 = vadd.f32 %v3202_v5, %v7106_v39  ;;  %v3276_v2 = vsel %vm9234_vm11, %v3275_v10, %v3271_v45  ;;  %vm9316_vm9 = vmor %vm3313_vm3, %vm3314_vm5 }
 0x6c4   : > { %v3170_v34 = vpop.f32.mrf.mxu1  ;;  %vm3343_vm8 = vweird.f32 %v9231_v16  ;;  %v3349_v19 = vand.u32 2147483648, %v9231_v16  ;;  %vm3328_vm11 = vweird.f32 %v9220_v6  ;;  %v3332_v42 = vand.u32 2147483647, %v9220_v6 }
 0x6c5   : > { %v6325_v12 = vpop.eup %6324  ;;  %v3370_v56 = vadd.f32 %v3170_v34, %v7017_v0  ;;  %v3311_v3 = vmul.f32 %v9228_v20, %v3310_v8  ;;  %v3297_v21 = vadd.f32 %v9218_v1, %v3296_v24  ;;  %v3373_v35 = vmul.f32 %v3369_v33, %v3276_v2 }
 0x6c6   : > { %v9281_v46 = vpop.eup %6326  ;;  %v9283_v30 = vadd.f32 1.0, %v6325_v12  ;;  %v3350_v28 = vor.u32 1.1754944e-38, %v3349_v19  ;;  %vm3333_vm3 = vcmp.eq.f32.partialorder %v3332_v42, 8.507059e+37 }
 0x6c7   : > { %v3324_v18 = vmul.f32 %v9281_v46, %v9220_v6  ;;  %v3374_v50 = vmul.f32 %v3370_v56, %v3291_v36  ;;  %v3312_v59 = vadd.f32 %v9228_v20, %v3311_v3  ;;  %v3301_v54 = vsel %vm9296_vm6, %v9218_v1, %v3297_v21 }
 0x6c8   : > { %v6329_v53 = vpop.eup %6328  ;;  %6330 = vrcp.f32 %v9283_v30  ;;  %v3347_v1 = vand.u32 2147483647, %v9231_v16  ;;  %v3306_v61 = vsel %vm9266_vm0, %v3305_v43, %v3301_v54  ;;  %vm3329_vm12 = vweird.f32 %v9281_v46  ;;  %v6518_v54 = vld [vmem:[%s9954_s5] sm:$0xff] }
 0x6c9   : > { %v3325_v14 = vsub.f32 1.0, %v3324_v18  ;;  %v3339_v22 = vmul.f32 %v6329_v53, %v9231_v16  ;;  %6332 = vtanh.f32 %v3376_v40  ;;  %v3378_v11 = vadd.f32 %v3374_v50, %v9186_v7  ;;  %vm9349_vm15 = vmor %vm3328_vm11, %vm3329_vm12 }
 0x6ca   : > { %v3205_v27 = vpop.f32.mrf.mxu2  ;;  %v3316_v7 = vsel %vm9316_vm9, %v9228_v20, %v3312_v59  ;;  %vm3344_vm10 = vweird.f32 %v6329_v53  ;;  %v3377_v13 = vadd.f32 %v3373_v35, %v9174_v38  ;;  %vm3348_vm14 = vcmp.eq.f32.partialorder %v3347_v1, 8.507059e+37 }
 0x6cb   : > { %v3340_v10 = vsub.f32 1.0, %v3339_v22  ;;  %v3371_v32 = vadd.f32 %v3205_v27, %v7017_v0  ;;  %v3326_v62 = vmul.f32 %v9281_v46, %v3325_v14  ;;  %6334 = vtanh.f32 %v3378_v11  ;;  %vm9338_vm13 = vmor %vm3343_vm8, %vm3344_vm10 }
 0x6cc   : > { %v3321_v20 = vsel %vm9300_vm7, %v3320_v60, %v3316_v7  ;;  %v3362_v8 = vand.u32 2147483647, %v9283_v30  ;;  %v3334_v16 = vand.u32 2147483648, %v9220_v6  ;;  %6336 = vtanh.f32 %v3377_v13 }
 0x6cd   : > { %v3375_v29 = vmul.f32 %v3371_v32, %v3306_v61  ;;  %v3341_v26 = vmul.f32 %v6329_v53, %v3340_v10  ;;  %v3327_v52 = vadd.f32 %v9281_v46, %v3326_v62  ;;  %v3384_v45 = vsub.f32 1.0, %v3321_v20  ;;  %v3483_v32 = vpop.f32.mrf.mxu3 }
 0x6ce   : > { %v6331_v0 = vpop.eup %6330  ;;  %v3364_v41 = vand.u32 2147483648, %v9283_v30  ;;  %v3335_v31 = vor.u32 1.1754944e-38, %v3334_v16  ;;  %vm3358_vm4 = vweird.f32 %v9283_v30  ;;  %vm3363_vm6 = vcmp.eq.f32.partialorder %v3362_v8, 8.507059e+37 }
 0x6cf   : > { %v3354_v48 = vmul.f32 %v6331_v0, %v9283_v30  ;;  %v3342_v51 = vadd.f32 %v6329_v53, %v3341_v26  ;;  %v6333_v44 = vpop.eup %6332  ;;  %v3379_v38 = vadd.f32 %v3375_v29, %v9190_v49  ;;  %v3331_v49 = vsel %vm9349_vm15, %v9281_v46, %v3327_v52 }
 0x6d0   : > { %vm3359_vm0 = vweird.f32 %v6331_v0  ;;  %v3336_v56 = vsel %vm3333_vm3, %v3335_v31, %v3331_v49  ;;  %v3388_v46 = vmul.f32 %v6333_v44, %v3384_v45  ;;  %v3365_v21 = vor.u32 1.1754944e-38, %v3364_v41 }
 0x6d1   : > { %v3355_v17 = vsub.f32 1.0, %v3354_v48  ;;  %v3346_v58 = vsel %vm9338_vm13, %v6329_v53, %v3342_v51  ;;  %v6335_v6 = vpop.eup %6334  ;;  %6338 = vtanh.f32 %v3379_v38  ;;  %vm3360_vm5 = vmor %vm3358_vm4, %vm3359_vm0  ;;  %v3392_v50 = vmul.f32 %v3321_v20, %v9031_v55  ;;  %v9404_v38 = vpop.permute.xlu0 %3449 }
 0x6d2   : > { %v9359_v34 = vpop.f32.mrf.mxu2  ;;  %v3351_v24 = vsel %vm3348_vm14, %v3350_v28, %v3346_v58  ;;  %v3385_v53 = vsub.f32 1.0, %v3336_v56  ;;  %v6337_v39 = vpop.eup %6336  ;;  %v3393_v35 = vmul.f32 %v3336_v56, %v9035_v57  ;;  %v6520_v57 = vld [vmem:[%s9954_s5 + $0x10] sm:$0xff] }
 0x6d3   : > { %v3386_v12 = vsub.f32 1.0, %v3351_v24  ;;  %v3356_v40 = vmul.f32 %v6331_v0, %v3355_v17  ;;  %v3394_v33 = vmul.f32 %v3351_v24, %v9023_v47  ;;  %v3396_v4 = vadd.f32 %v3392_v50, %v3388_v46 }
 0x6d4   : > { %v3389_v2 = vmul.f32 %v6337_v39, %v3385_v53 }
 0x6d5   : > { %v3390_v3 = vmul.f32 %v6335_v6, %v3386_v12  ;;  %v3357_v36 = vadd.f32 %v6331_v0, %v3356_v40  ;;  %v3486_v7 = vpop.f32.mrf.mxu3 }
 0x6d6   : > { %v3397_v11 = vadd.f32 %v3393_v35, %v3389_v2  ;;  %v3487_v28 = vadd.f32 %v3486_v7, %v9404_v38 }
 0x6d7   : > { %v3398_v18 = vadd.f32 %v3394_v33, %v3390_v3  ;;  %v3361_v59 = vsel %vm3360_vm5, %v6331_v0, %v3357_v36  ;;  %v6339_v30 = vpop.eup %6338  ;;  %v9400_v0 = vpop.permute.xlu2 %3444 }
 0x6d8   : > { %v3366_v43 = vsel %vm3363_vm6, %v3365_v21, %v3361_v59  ;;  %v3484_v13 = vadd.f32 %v3483_v32, %v9400_v0 }
 0x6d9   : > { %3844 = vmatpush.msrb.mxu0 %v3398_v18  ;;  %v3387_v60 = vsub.f32 1.0, %v3366_v43  ;;  %v3395_v22 = vmul.f32 %v3366_v43, %v9028_v25  ;;  %v6519_v25 = vld [vmem:[%s9954_s5 + $0x8] sm:$0xff] }
 0x6da   : > { %v9365_v14 = vpop.f32.mrf.mxu2 }
 0x6db   : > { %3845 = vmatpush.msrb.mxu0 %v3396_v4  ;;  %v3391_v47 = vmul.f32 %v6339_v30, %v3387_v60 }
 0x6dc   : > { %5904 = vmatmul.msk.f32.vlgmr.msrb.gmra.mxu0 %vm1210_vm2, %v6518_v54 }
 0x6dd   : > { %v3399_v55 = vadd.f32 %v3395_v22, %v3391_v47  ;;  %v9394_v19 = vpop.f32.mrf.mxu3  ;;  %v9414_v22 = vpop.permute.xlu1 %3936 }
 0x6df   : > { %3870 = vmatpush.msrb.mxu1 %v3399_v55  ;;  %v9416_v55 = vpop.permute.xlu2 %3454 }
 0x6e0   : > { %v3490_v7 = vadd.f32 %v9394_v19, %v9416_v55 }
 0x6e1   : > { %3871 = vmatpush.msrb.mxu1 %v3397_v11 }
 0x6e2   : > { %v9373_v27 = vpop.f32.mrf.mxu2  ;;  %5907 = vmatmul.msk.f32.vlgmr.msrb.gmra.mxu1 %vm1210_vm2, %v6518_v54 }
 0x6e4   : > { %5905 = vmatmul.msk.f32.gmra.mxu0 %vm1210_vm2, %v6519_v25 }
 0x6e5   : > { %v3509_v26 = vpop.f32.mrf.mxu3 }
 0x6e6   : > { %v3510_v20 = vadd.f32 %v3509_v26, %v9400_v0 }
 0x6ea   : > { %v9380_v63 = vpop.f32.mrf.mxu2  ;;  %5908 = vmatmul.msk.f32.gmra.mxu1 %vm1210_vm2, %v6519_v25 }
 0x6ec   : > { %5906 = vmatmul.msk.f32.gmra.mxu0 %vm1210_vm2, %v6520_v57 }
 0x6ed   : > { %v3512_v44 = vpop.f32.mrf.mxu3 }
 0x6ee   : > { %v3513_v8 = vadd.f32 %v3512_v44, %v9404_v38 }
 0x6f2   : > { %v9387_v10 = vpop.f32.mrf.mxu2  ;;  %5909 = vmatmul.msk.f32.gmra.mxu1 %vm1210_vm2, %v6520_v57 }
 0x6f5   : > { %v3515_v35 = vpop.f32.mrf.mxu3 }
 0x6fa   : > { %v9390_v1 = vpop.f32.mrf.mxu2 }
 0x702   : > { %v9392_v61 = vpop.f32.mrf.mxu2 }
 0x70a   : > { %v9396_v62 = vpop.f32.mrf.mxu2 }
 0x712   : > { %v9398_v29 = vpop.f32.mrf.mxu2 }
 0x71a   : > { %v3972_v52 = vpop.f32.mrf.mxu2 }
 0x71b   : > { %v3981_v48 = vadd.f32 %v3972_v52, %v3484_v13  ;;  %v3982_v51 = vadd.f32 %v3972_v52, %v3510_v20 }
 0x71d   : > { %v5913_v5 = vmul.f32 -1.442695, %v3981_v48  ;;  %v5914_v42 = vmul.f32 -1.442695, %v3982_v51 }
 0x71f   : > { %6340 = vpow2.f32 %v5913_v5 }
 0x720   : > { %6342 = vpow2.f32 %v5914_v42  ;;  %v3516_v42 = vadd.f32 %v3515_v35, %v9416_v55 }
 0x722   : > { %v3975_v37 = vpop.f32.mrf.mxu2 }
 0x723   : > { %v3983_v16 = vadd.f32 %v3975_v37, %v3487_v28  ;;  %v3984_v17 = vadd.f32 %v3975_v37, %v3513_v8 }
 0x725   : > { %v6341_v58 = vpop.eup %6340  ;;  %v5915_v45 = vmul.f32 -1.442695, %v3983_v16  ;;  %v5916_v41 = vmul.f32 -1.442695, %v3984_v17 }
 0x726   : > { %v6343_v49 = vpop.eup %6342  ;;  %v3997_v24 = vadd.f32 1.0, %v6341_v58 }
 0x727   : > { %v3998_v31 = vadd.f32 1.0, %v6343_v49  ;;  %6344 = vpow2.f32 %v5915_v45 }
 0x728   : > { %6346 = vrcp.f32 %v3997_v24  ;;  %v4010_v18 = vand.u32 2147483647, %v3997_v24  ;;  %v4012_v50 = vand.u32 2147483648, %v3997_v24  ;;  %vm4006_vm8 = vweird.f32 %v3997_v24 }
 0x729   : > { %6348 = vrcp.f32 %v3998_v31  ;;  %v4027_v39 = vand.u32 2147483648, %v3998_v31  ;;  %v4025_v60 = vand.u32 2147483647, %v3998_v31  ;;  %vm4021_vm11 = vweird.f32 %v3998_v31 }
 0x72a   : > { %6350 = vpow2.f32 %v5916_v41  ;;  %v3978_v43 = vpop.f32.mrf.mxu2  ;;  %vm4011_vm10 = vcmp.eq.f32.partialorder %v4010_v18, 8.507059e+37  ;;  %v4013_v2 = vor.u32 1.1754944e-38, %v4012_v50 }
 0x72b   : > { %v4028_v57 = vor.u32 1.1754944e-38, %v4027_v39  ;;  %v4061_v32 = vadd.f32 %v3978_v43, %v9414_v22  ;;  %vm4026_vm13 = vcmp.eq.f32.partialorder %v4025_v60, 8.507059e+37 }
 0x72d   : > { %v6345_v12 = vpop.eup %6344 }
 0x72e   : > { %v6347_v40 = vpop.eup %6346  ;;  %v9408_v6 = vadd.f32 1.0, %v6345_v12 }
 0x72f   : > { %v6349_v56 = vpop.eup %6348  ;;  %v4002_v3 = vmul.f32 %v6347_v40, %v3997_v24  ;;  %vm4007_vm2 = vweird.f32 %v6347_v40 }
 0x730   : > { %v6351_v33 = vpop.eup %6350  ;;  %6352 = vrcp.f32 %v9408_v6  ;;  %v4017_v46 = vmul.f32 %v6349_v56, %v3998_v31  ;;  %vm4022_vm7 = vweird.f32 %v6349_v56  ;;  %vm4008_vm9 = vmor %vm4006_vm8, %vm4007_vm2  ;;  %v4042_v5 = vand.u32 2147483648, %v9408_v6 }
 0x731   : > { %v9411_v36 = vadd.f32 1.0, %v6351_v33  ;;  %v4003_v21 = vsub.f32 1.0, %v4002_v3  ;;  %vm4023_vm12 = vmor %vm4021_vm11, %vm4022_vm7  ;;  %v4040_v16 = vand.u32 2147483647, %v9408_v6  ;;  %vm4036_vm15 = vweird.f32 %v9408_v6 }
 0x732   : > { %v4018_v59 = vsub.f32 1.0, %v4017_v46  ;;  %v4043_v45 = vor.u32 1.1754944e-38, %v4042_v5 }
 0x733   : > { %6354 = vrcp.f32 %v9411_v36  ;;  %v4004_v53 = vmul.f32 %v6347_v40, %v4003_v21  ;;  %v4057_v49 = vand.u32 2147483648, %v9411_v36  ;;  %v4055_v41 = vand.u32 2147483647, %v9411_v36 }
 0x734   : > { %v4019_v4 = vmul.f32 %v6349_v56, %v4018_v59  ;;  %vm4041_vm4 = vcmp.eq.f32.partialorder %v4040_v16, 8.507059e+37  ;;  %vm4051_vm5 = vweird.f32 %v9411_v36 }
 0x735   : > { %v4005_v30 = vadd.f32 %v6347_v40, %v4004_v53  ;;  %vm4056_vm2 = vcmp.eq.f32.partialorder %v4055_v41, 8.507059e+37 }
 0x736   : > { %v6353_v47 = vpop.eup %6352  ;;  %v4020_v54 = vadd.f32 %v6349_v56, %v4019_v4 }
 0x737   : > { %v4032_v11 = vmul.f32 %v6353_v47, %v9408_v6  ;;  %v4009_v25 = vsel %vm4008_vm9, %v6347_v40, %v4005_v30  ;;  %vm4037_vm14 = vweird.f32 %v6353_v47  ;;  %v4058_v6 = vor.u32 1.1754944e-38, %v4057_v49 }
 0x738   : > { %v4014_v26 = vsel %vm4011_vm10, %v4013_v2, %v4009_v25  ;;  %v4024_v13 = vsel %vm4023_vm12, %v6349_v56, %v4020_v54  ;;  %vm4038_vm0 = vmor %vm4036_vm15, %vm4037_vm14  ;;  %v9453_v2 = vpop.f32.mrf.mxu3 }
 0x739   : > { %v6355_v20 = vpop.eup %6354  ;;  %v4033_v52 = vsub.f32 1.0, %v4032_v11  ;;  %v4029_v48 = vsel %vm4026_vm13, %v4028_v57, %v4024_v13  ;;  %v4062_v51 = vmul.f32 %v4061_v32, %v4014_v26 }
 0x73a   : > { %v4047_v44 = vmul.f32 %v6355_v20, %v9411_v36  ;;  %v4063_v28 = vmul.f32 %v4061_v32, %v4029_v48  ;;  %vm4052_vm3 = vweird.f32 %v6355_v20  ;;  %v3535_v36 = vpop.f32.mrf.mxu0 }
 0x73b   : > { %v4064_v8 = vadd.f32 %v4062_v51, %v3490_v7  ;;  %v4034_v37 = vmul.f32 %v6353_v47, %v4033_v52  ;;  %vm4053_vm6 = vmor %vm4051_vm5, %vm4052_vm3 }
 0x73c   : > { %v4048_v19 = vsub.f32 1.0, %v4047_v44  ;;  %v4065_v17 = vadd.f32 %v4063_v28, %v3516_v42  ;;  %v3561_v44 = vpop.f32.mrf.mxu1 }
 0x73d   : > { %6356 = vtanh.f32 %v4064_v8  ;;  %v4035_v58 = vadd.f32 %v6353_v47, %v4034_v37  ;;  %v3562_v8 = vadd.f32 %v3561_v44, %v9400_v0 }
 0x73e   : > { %6358 = vtanh.f32 %v4065_v17  ;;  %v4049_v24 = vmul.f32 %v6355_v20, %v4048_v19  ;;  %v3536_v19 = vadd.f32 %v3535_v36, %v9400_v0 }
 0x73f   : > { %v4039_v31 = vsel %vm4038_vm0, %v6353_v47, %v4035_v58 }
 0x740   : > { %v4044_v12 = vsel %vm4041_vm4, %v4043_v45, %v4039_v31  ;;  %v4050_v40 = vadd.f32 %v6355_v20, %v4049_v24  ;;  %v9457_v35 = vpop.f32.mrf.mxu3 }
 0x741   : > { %v4068_v56 = vsub.f32 1.0, %v4044_v12  ;;  %v4072_v50 = vmul.f32 0.0, %v4044_v12 }
 0x742   : > { %v4054_v3 = vsel %vm4053_vm6, %v6355_v20, %v4050_v40  ;;  %v3538_v60 = vpop.f32.mrf.mxu0 }
 0x743   : > { %v6357_v33 = vpop.eup %6356  ;;  %v4059_v46 = vsel %vm4056_vm2, %v4058_v6, %v4054_v3 }
 0x744   : > { %v6359_v21 = vpop.eup %6358  ;;  %v4070_v18 = vmul.f32 %v6357_v33, %v4068_v56  ;;  %v4069_v59 = vsub.f32 1.0, %v4059_v46  ;;  %v4073_v43 = vmul.f32 0.0, %v4059_v46  ;;  %v3564_v58 = vpop.f32.mrf.mxu1  ;;  %v3539_v56 = vadd.f32 %v3538_v60, %v9404_v38 }
 0x745   : > { %v3565_v24 = vadd.f32 %v3564_v58, %v9404_v38 }
 0x746   : > { %v9431_v53 = vadd.f32 %v4072_v50, %v4070_v18  ;;  %v4071_v39 = vmul.f32 %v6359_v21, %v4069_v59 }
 0x748   : > { %4099 = vmatpush.msra.mxu3 %v9431_v53  ;;  %v9434_v4 = vadd.f32 %v4073_v43, %v4071_v39  ;;  %v9461_v25 = vpop.f32.mrf.mxu3 }
 0x749   : > { %5917 = vmatmul.msk.f32.vlgmr.msra.gmra.mxu3 %vm3945_vm1, %v9128_v9 }
 0x74a   : > { %4125 = vmatpush.msra.mxu0 %v9434_v4  ;;  %v9449_v30 = vpop.f32.mrf.mxu0 }
 0x74b   : > { %5920 = vmatmul.msk.f32.vlgmr.msra.gmra.mxu0 %vm3945_vm1, %v9128_v9 }
 0x750   : > { %v9465_v32 = vpop.f32.mrf.mxu3 }
 0x751   : > { %5918 = vmatmul.msk.f32.gmra.mxu3 %vm3945_vm1, %v9137_v23 }
 0x752   : > { %v9451_v47 = vpop.f32.mrf.mxu0 }
 0x753   : > { %5921 = vmatmul.msk.f32.gmra.mxu0 %vm3945_vm1, %v9137_v23 }
 0x758   : > { %v9469_v26 = vpop.f32.mrf.mxu3 }
 0x759   : > { %5919 = vmatmul.msk.f32.gmra.mxu3 %vm3945_vm1, %v9148_v15 }
 0x75a   : > { %v9455_v54 = vpop.f32.mrf.mxu0 }
 0x75b   : > { %5922 = vmatmul.msk.f32.gmra.mxu0 %vm3945_vm1, %v9148_v15 }
 0x760   : > { %v9473_v20 = vpop.f32.mrf.mxu3 }
 0x762   : > { %v9459_v11 = vpop.f32.mrf.mxu0 }
 0x768   : > { %v9477_v48 = vpop.f32.mrf.mxu3 }
 0x76a   : > { %v9463_v57 = vpop.f32.mrf.mxu0 }
 0x770   : > { %v9481_v5 = vpop.f32.mrf.mxu3 }
 0x772   : > { %v9467_v7 = vpop.f32.mrf.mxu0 }
 0x778   : > { %v9485_v28 = vpop.f32.mrf.mxu3 }
 0x77a   : > { %v9471_v13 = vpop.f32.mrf.mxu0 }
 0x782   : > { %v9475_v52 = vpop.f32.mrf.mxu0 }
 0x78a   : > { %v9479_v51 = vpop.f32.mrf.mxu0 }
 0x792   : > { %v9483_v42 = vpop.f32.mrf.mxu0 }
 0x793   : > { %10246 = vst [vmem:[#allocation18_spill] sm:$0xff] %v9483_v42 }
 0x7c8   : > { %v4127_v37 = vpop.f32.mrf.mxu0 }
 0x7c9   : > { %v4137_v16 = vadd.f32 %v4127_v37, %v3562_v8 }
 0x7cb   : > { %v5924_v17 = vmul.f32 -1.442695, %v4137_v16 }
 0x7cc   : > { %v4101_v45 = vpop.f32.mrf.mxu3 }
 0x7cd   : > { %6360 = vpow2.f32 %v5924_v17  ;;  %v4136_v49 = vadd.f32 %v4101_v45, %v3536_v19 }
 0x7cf   : > { %v5923_v41 = vmul.f32 -1.442695, %v4136_v49 }
 0x7d0   : > { %v4130_v31 = vpop.f32.mrf.mxu0 }
 0x7d1   : > { %6362 = vpow2.f32 %v5923_v41  ;;  %v4139_v12 = vadd.f32 %v4130_v31, %v3565_v24  ;;  %v3567_v24 = vpop.f32.mrf.mxu1 }
 0x7d3   : > { %v6361_v40 = vpop.eup %6360  ;;  %v5926_v6 = vmul.f32 -1.442695, %v4139_v12 }
 0x7d4   : > { %v4153_v3 = vadd.f32 1.0, %v6361_v40  ;;  %v4104_v33 = vpop.f32.mrf.mxu3 }
 0x7d5   : > { %6364 = vpow2.f32 %v5926_v6  ;;  %v4138_v46 = vadd.f32 %v4104_v33, %v3539_v56 }
 0x7d6   : > { %6366 = vrcp.f32 %v4153_v3  ;;  %v4180_v16 = vand.u32 2147483647, %v4153_v3  ;;  %v4182_v19 = vand.u32 2147483648, %v4153_v3  ;;  %vm4176_vm8 = vweird.f32 %v4153_v3 }
 0x7d7   : > { %v6363_v21 = vpop.eup %6362  ;;  %v5925_v18 = vmul.f32 -1.442695, %v4138_v46 }
 0x7d8   : > { %v4152_v50 = vadd.f32 1.0, %v6363_v21  ;;  %v4133_v17 = vpop.f32.mrf.mxu0  ;;  %vm4181_vm10 = vcmp.eq.f32.partialorder %v4180_v16, 8.507059e+37  ;;  %v4183_v56 = vor.u32 1.1754944e-38, %v4182_v19 }
 0x7d9   : > { %6368 = vpow2.f32 %v5925_v18  ;;  %v4217_v6 = vadd.f32 %v4133_v17, %v9414_v22 }
 0x7da   : > { %6370 = vrcp.f32 %v4152_v50  ;;  %v4165_v49 = vand.u32 2147483647, %v4152_v50  ;;  %v4167_v12 = vand.u32 2147483648, %v4152_v50  ;;  %vm4161_vm12 = vweird.f32 %v4152_v50 }
 0x7db   : > { %v6365_v59 = vpop.eup %6364 }
 0x7dc   : > { %v6367_v39 = vpop.eup %6366  ;;  %v4155_v43 = vadd.f32 1.0, %v6365_v59  ;;  %v4107_v21 = vpop.f32.mrf.mxu3  ;;  %v3568_v59 = vadd.f32 %v3567_v24, %v9416_v55  ;;  %vm9496_vm13 = vcmp.eq.f32.partialorder %v4165_v49, 8.507059e+37  ;;  %v4168_v16 = vor.u32 1.1754944e-38, %v4167_v12 }
 0x7dd   : > { %v4172_v36 = vmul.f32 %v6367_v39, %v4153_v3  ;;  %vm4177_vm7 = vweird.f32 %v6367_v39  ;;  %v4216_v17 = vadd.f32 %v4107_v21, %v9414_v22  ;;  %v3542_v49 = vadd.f32 %v9449_v30, %v9416_v55 }
 0x7de   : > { %6372 = vrcp.f32 %v4155_v43  ;;  %vm4178_vm9 = vmor %vm4176_vm8, %vm4177_vm7  ;;  %vm4206_vm0 = vweird.f32 %v4155_v43 }
 0x7df   : > { %v6369_v44 = vpop.eup %6368  ;;  %v4173_v8 = vsub.f32 1.0, %v4172_v36 }
 0x7e0   : > { %v6371_v37 = vpop.eup %6370  ;;  %v9491_v60 = vadd.f32 1.0, %v6369_v44 }
 0x7e1   : > { %v4174_v58 = vmul.f32 %v6367_v39, %v4173_v8  ;;  %v4157_v45 = vmul.f32 %v6371_v37, %v4152_v50  ;;  %vm4162_vm11 = vweird.f32 %v6371_v37 }
 0x7e2   : > { %6374 = vrcp.f32 %v9491_v60  ;;  %vm4163_vm14 = vmor %vm4161_vm12, %vm4162_vm11  ;;  %v4195_v21 = vand.u32 2147483647, %v9491_v60  ;;  %vm4191_vm6 = vweird.f32 %v9491_v60 }
 0x7e3   : > { %v4175_v41 = vadd.f32 %v6367_v39, %v4174_v58  ;;  %v4158_v31 = vsub.f32 1.0, %v4157_v45  ;;  %v4212_v45 = vand.u32 2147483648, %v4155_v43 }
 0x7e4   : > { %v6373_v40 = vpop.eup %6372  ;;  %vm4196_vm7 = vcmp.eq.f32.partialorder %v4195_v21, 8.507059e+37  ;;  %v3614_v21 = vadd.f32 %v9453_v2, %v9400_v0 }
 0x7e5   : > { %v4202_v33 = vmul.f32 %v6373_v40, %v4155_v43  ;;  %v4179_v46 = vsel %vm4178_vm9, %v6367_v39, %v4175_v41  ;;  %v4159_v18 = vmul.f32 %v6371_v37, %v4158_v31  ;;  %vm4207_vm15 = vweird.f32 %v6373_v40 }
 0x7e6   : > { %v4184_v36 = vsel %vm4181_vm10, %v4183_v56, %v4179_v46  ;;  %v4210_v39 = vand.u32 2147483647, %v4155_v43  ;;  %vm4208_vm3 = vmor %vm4206_vm0, %vm4207_vm15  ;;  %v4213_v46 = vor.u32 1.1754944e-38, %v4212_v45 }
 0x7e7   : > { %v4203_v3 = vsub.f32 1.0, %v4202_v33  ;;  %v4219_v8 = vmul.f32 %v4217_v6, %v4184_v36  ;;  %v4160_v58 = vadd.f32 %v6371_v37, %v4159_v18  ;;  %v4197_v18 = vand.u32 2147483648, %v9491_v60 }
 0x7e8   : > { %v6375_v19 = vpop.eup %6374  ;;  %vm4211_vm4 = vcmp.eq.f32.partialorder %v4210_v39, 8.507059e+37 }
 0x7e9   : > { %v4204_v41 = vmul.f32 %v6373_v40, %v4203_v3  ;;  %v4187_v24 = vmul.f32 %v6375_v19, %v9491_v60  ;;  %v4221_v31 = vadd.f32 %v4219_v8, %v3568_v59  ;;  %v4164_v50 = vsel %vm4163_vm14, %v6371_v37, %v4160_v58 }
 0x7ea   : > { %v4169_v56 = vsel %vm9496_vm13, %v4168_v16, %v4164_v50  ;;  %vm4192_vm5 = vweird.f32 %v6375_v19  ;;  %v4198_v3 = vor.u32 1.1754944e-38, %v4197_v18 }
 0x7eb   : > { %v4188_v12 = vsub.f32 1.0, %v4187_v24  ;;  %6376 = vtanh.f32 %v4221_v31  ;;  %v4218_v6 = vmul.f32 %v4216_v17, %v4169_v56  ;;  %v4205_v33 = vadd.f32 %v6373_v40, %v4204_v41  ;;  %vm4193_vm2 = vmor %vm4191_vm6, %vm4192_vm5 }
 0x7ed   : > { %v4189_v59 = vmul.f32 %v6375_v19, %v4188_v12  ;;  %v4220_v37 = vadd.f32 %v4218_v6, %v3542_v49  ;;  %v4209_v36 = vsel %vm4208_vm3, %v6373_v40, %v4205_v33 }
 0x7ee   : > { %v4214_v30 = vsel %vm4211_vm4, %v4213_v46, %v4209_v36 }
 0x7ef   : > { %6378 = vtanh.f32 %v4220_v37  ;;  %v4225_v43 = vsub.f32 1.0, %v4214_v30  ;;  %v4190_v44 = vadd.f32 %v6375_v19, %v4189_v59  ;;  %v4229_v17 = vmul.f32 %v4214_v30, %v9434_v4 }
 0x7f1   : > { %v6377_v8 = vpop.eup %6376  ;;  %v4194_v58 = vsel %vm4193_vm2, %v6375_v19, %v4190_v44  ;;  %v9529_v19 = vpop.f32.mrf.mxu1 }
 0x7f2   : > { %v4227_v16 = vmul.f32 %v6377_v8, %v4225_v43  ;;  %v4199_v39 = vsel %vm4196_vm7, %v4198_v3, %v4194_v58  ;;  %v3591_v43 = vadd.f32 %v9365_v14, %v9404_v38  ;;  %v3617_v3 = vadd.f32 %v9457_v35, %v9404_v38 }
 0x7f3   : > { %v4224_v45 = vsub.f32 1.0, %v4199_v39  ;;  %v4228_v60 = vmul.f32 %v4199_v39, %v9431_v53 }
 0x7f4   : > { %v9510_v41 = vadd.f32 %v4229_v17, %v4227_v16 }
 0x7f5   : > { %v6379_v40 = vpop.eup %6378 }
 0x7f6   : > { %4281 = vmatpush.msra.mxu2 %v9510_v41  ;;  %v4226_v24 = vmul.f32 %v6379_v40, %v4224_v45 }
 0x7f7   : > { %5930 = vmatmul.msk.f32.vlgmr.msra.gmra.mxu2 %vm3945_vm1, %v9128_v9 }
 0x7f8   : > { %v9516_v31 = vadd.f32 %v4228_v60, %v4226_v24 }
 0x7f9   : > { %v9531_v50 = vpop.f32.mrf.mxu1 }
 0x7fa   : > { %4255 = vmatpush.msra.mxu1 %v9516_v31 }
 0x7fb   : > { %5927 = vmatmul.msk.f32.vlgmr.msra.gmra.mxu1 %vm3945_vm1, %v9128_v9 }
 0x7ff   : > { %5931 = vmatmul.msk.f32.gmra.mxu2 %vm3945_vm1, %v9137_v23 }
 0x801   : > { %v9533_v49 = vpop.f32.mrf.mxu1 }
 0x803   : > { %5928 = vmatmul.msk.f32.gmra.mxu1 %vm3945_vm1, %v9137_v23 }
 0x807   : > { %5932 = vmatmul.msk.f32.gmra.mxu2 %vm3945_vm1, %v9148_v15 }
 0x809   : > { %v9535_v56 = vpop.f32.mrf.mxu1 }
 0x80b   : > { %5929 = vmatmul.msk.f32.gmra.mxu1 %vm3945_vm1, %v9148_v15  ;;  %v3588_v15 = vadd.f32 %v9359_v34, %v9400_v0 }
 0x811   : > { %v9537_v9 = vpop.f32.mrf.mxu1 }
 0x819   : > { %v9539_v12 = vpop.f32.mrf.mxu1 }
 0x821   : > { %v9541_v6 = vpop.f32.mrf.mxu1 }
 0x829   : > { %v9543_v23 = vpop.f32.mrf.mxu1 }
 0x831   : > { %v9545_v33 = vpop.f32.mrf.mxu1 }
 0x832   : > { %10249 = vst [vmem:[#allocation20_spill] sm:$0xff] %v9545_v33 }
 0x878   : > { %v4257_v46 = vpop.f32.mrf.mxu1 }
 0x879   : > { %v4292_v18 = vadd.f32 %v4257_v46, %v3588_v15 }
 0x87a   : > { %v4283_v59 = vpop.f32.mrf.mxu2 }
 0x87b   : > { %v5933_v37 = vmul.f32 -1.442695, %v4292_v18  ;;  %v4293_v36 = vadd.f32 %v4283_v59, %v3614_v21 }
 0x87d   : > { %6380 = vpow2.f32 %v5933_v37  ;;  %v5934_v30 = vmul.f32 -1.442695, %v4293_v36 }
 0x87f   : > { %6382 = vpow2.f32 %v5934_v30 }
 0x880   : > { %v4260_v44 = vpop.f32.mrf.mxu1 }
 0x881   : > { %v4294_v8 = vadd.f32 %v4260_v44, %v3591_v43  ;;  %v3620_v44 = vadd.f32 %v9461_v25, %v9416_v55 }
 0x882   : > { %v4286_v34 = vpop.f32.mrf.mxu2 }
 0x883   : > { %v6381_v58 = vpop.eup %6380  ;;  %v5935_v16 = vmul.f32 -1.442695, %v4294_v8  ;;  %v4295_v17 = vadd.f32 %v4286_v34, %v3617_v3 }
 0x884   : > { %v4308_v2 = vadd.f32 1.0, %v6381_v58 }
 0x885   : > { %v6383_v39 = vpop.eup %6382  ;;  %6384 = vpow2.f32 %v5935_v16  ;;  %v5936_v45 = vmul.f32 -1.442695, %v4295_v17 }
 0x886   : > { %6386 = vrcp.f32 %v4308_v2  ;;  %v4309_v40 = vadd.f32 1.0, %v6383_v39  ;;  %v4321_v37 = vand.u32 2147483647, %v4308_v2  ;;  %v4323_v36 = vand.u32 2147483648, %v4308_v2 }
 0x887   : > { %6388 = vpow2.f32 %v5936_v45  ;;  %vm4317_vm9 = vweird.f32 %v4308_v2  ;;  %v3594_v45 = vadd.f32 %v9373_v27, %v9416_v55 }
 0x888   : > { %6390 = vrcp.f32 %v4309_v40  ;;  %v4263_v3 = vpop.f32.mrf.mxu1  ;;  %v4336_v8 = vand.u32 2147483647, %v4309_v40  ;;  %v4338_v34 = vand.u32 2147483648, %v4309_v40  ;;  %vm4322_vm12 = vcmp.eq.f32.partialorder %v4321_v37, 8.507059e+37 }
 0x889   : > { %vm4332_vm13 = vweird.f32 %v4309_v40  ;;  %v4372_v25 = vadd.f32 %v4263_v3, %v9414_v22 }
 0x88a   : > { %v4289_v16 = vpop.f32.mrf.mxu2  ;;  %vm4337_vm15 = vcmp.eq.f32.partialorder %v4336_v8, 8.507059e+37 }
 0x88b   : > { %v6385_v24 = vpop.eup %6384 }
 0x88c   : > { %v6387_v14 = vpop.eup %6386  ;;  %v9555_v60 = vadd.f32 1.0, %v6385_v24  ;;  %v4324_v24 = vor.u32 1.1754944e-38, %v4323_v36 }
 0x88d   : > { %v6389_v15 = vpop.eup %6388  ;;  %v4313_v46 = vmul.f32 %v6387_v14, %v4308_v2  ;;  %vm4318_vm8 = vweird.f32 %v6387_v14  ;;  %v4339_v2 = vor.u32 1.1754944e-38, %v4338_v34 }
 0x88e   : > { %v6391_v35 = vpop.eup %6390  ;;  %6392 = vrcp.f32 %v9555_v60  ;;  %v9558_v21 = vadd.f32 1.0, %v6389_v15  ;;  %vm4319_vm11 = vmor %vm4317_vm9, %vm4318_vm8  ;;  %vm4347_vm3 = vweird.f32 %v9555_v60 }
 0x88f   : > { %v4314_v18 = vsub.f32 1.0, %v4313_v46  ;;  %v4328_v59 = vmul.f32 %v6391_v35, %v4309_v40  ;;  %vm4333_vm10 = vweird.f32 %v6391_v35  ;;  %v4351_v40 = vand.u32 2147483647, %v9555_v60 }
 0x890   : > { %6394 = vrcp.f32 %v9558_v21  ;;  %vm4334_vm14 = vmor %vm4332_vm13, %vm4333_vm10  ;;  %v4366_v8 = vand.u32 2147483647, %v9558_v21  ;;  %v4368_v34 = vand.u32 2147483648, %v9558_v21  ;;  %vm4362_vm5 = vweird.f32 %v9558_v21 }
 0x891   : > { %v4315_v30 = vmul.f32 %v6387_v14, %v4314_v18  ;;  %v4329_v43 = vsub.f32 1.0, %v4328_v59  ;;  %vm4352_vm2 = vcmp.eq.f32.partialorder %v4351_v40, 8.507059e+37 }
 0x892   : > { %vm4367_vm8 = vcmp.eq.f32.partialorder %v4366_v8, 8.507059e+37  ;;  %v3640_v8 = vadd.f32 %v9451_v47, %v9400_v0 }
 0x893   : > { %v4316_v58 = vadd.f32 %v6387_v14, %v4315_v30  ;;  %v4330_v17 = vmul.f32 %v6391_v35, %v4329_v43  ;;  %v4373_v43 = vadd.f32 %v4289_v16, %v9414_v22 }
 0x894   : > { %v6393_v39 = vpop.eup %6392 }
 0x895   : > { %v4343_v15 = vmul.f32 %v6393_v39, %v9555_v60  ;;  %v4320_v46 = vsel %vm4319_vm11, %v6387_v14, %v4316_v58  ;;  %v4331_v18 = vadd.f32 %v6391_v35, %v4330_v17  ;;  %vm4348_vm0 = vweird.f32 %v6393_v39 }
 0x896   : > { %v6395_v59 = vpop.eup %6394  ;;  %v4325_v30 = vsel %vm4322_vm12, %v4324_v24, %v4320_v46  ;;  %v4353_v14 = vand.u32 2147483648, %v9555_v60  ;;  %vm4349_vm6 = vmor %vm4347_vm3, %vm4348_vm0  ;;  %v4369_v60 = vor.u32 1.1754944e-38, %v4368_v34 }
 0x897   : > { %v4344_v33 = vsub.f32 1.0, %v4343_v15  ;;  %v4358_v27 = vmul.f32 %v6395_v59, %v9558_v21  ;;  %v4374_v42 = vmul.f32 %v4372_v25, %v4325_v30  ;;  %v4335_v37 = vsel %vm4334_vm14, %v6391_v35, %v4331_v18 }
 0x898   : > { %v4340_v36 = vsel %vm4337_vm15, %v4339_v2, %v4335_v37  ;;  %vm4363_vm4 = vweird.f32 %v6395_v59  ;;  %v4354_v46 = vor.u32 1.1754944e-38, %v4353_v14  ;;  %v9597_v14 = vld [vmem:[%s9955_s6 + $0x8] sm:$0xff] }
 0x899   : > { %v4345_v3 = vmul.f32 %v6393_v39, %v4344_v33  ;;  %v4359_v58 = vsub.f32 1.0, %v4358_v27  ;;  %v4376_v17 = vadd.f32 %v4374_v42, %v3594_v45  ;;  %v4375_v24 = vmul.f32 %v4373_v43, %v4340_v36  ;;  %vm4364_vm7 = vmor %vm4362_vm5, %vm4363_vm4 }
 0x89b   : > { %v4360_v16 = vmul.f32 %v6395_v59, %v4359_v58  ;;  %6396 = vtanh.f32 %v4376_v17  ;;  %v4377_v35 = vadd.f32 %v4375_v24, %v3620_v44  ;;  %v4346_v15 = vadd.f32 %v6393_v39, %v4345_v3  ;;  %v9606_v3 = vld [vmem:[%s9955_s6 + $0x10] sm:$0xff] }
 0x89c   : > { %v3666_v58 = vadd.f32 %v9529_v19, %v9400_v0  ;;  %v3643_v19 = vadd.f32 %v9455_v54, %v9404_v38 }
 0x89d   : > { %6398 = vtanh.f32 %v4377_v35  ;;  %v4350_v33 = vsel %vm4349_vm6, %v6393_v39, %v4346_v15  ;;  %v4361_v42 = vadd.f32 %v6395_v59, %v4360_v16  ;;  %v3669_v15 = vadd.f32 %v9531_v50, %v9404_v38 }
 0x89e   : > { %v4355_v45 = vsel %vm4352_vm2, %v4354_v46, %v4350_v33 }
 0x89f   : > { %v4380_v25 = vsub.f32 1.0, %v4355_v45  ;;  %v4365_v18 = vsel %vm4364_vm7, %v6395_v59, %v4361_v42  ;;  %v4384_v21 = vmul.f32 %v4355_v45, %v9516_v31  ;;  %v9587_v59 = vld [vmem:[%s9955_s6] sm:$0xff] }
 0x8a0   : > { %v4370_v30 = vsel %vm4367_vm8, %v4369_v60, %v4365_v18 }
 0x8a1   : > { %v6397_v2 = vpop.eup %6396  ;;  %v4381_v44 = vsub.f32 1.0, %v4370_v30  ;;  %v4385_v39 = vmul.f32 %v4370_v30, %v9510_v41 }
 0x8a2   : > { %v4382_v43 = vmul.f32 %v6397_v2, %v4380_v25 }
 0x8a3   : > { %v6399_v27 = vpop.eup %6398 }
 0x8a4   : > { %v9578_v37 = vadd.f32 %v4384_v21, %v4382_v43  ;;  %v4383_v36 = vmul.f32 %v6399_v27, %v4381_v44 }
 0x8a6   : > { %4411 = vmatpush.msrb.mxu3 %v9578_v37  ;;  %v9582_v40 = vadd.f32 %v4385_v39, %v4383_v36 }
 0x8a7   : > { %5937 = vmatmul.msk.f32.vlgmr.msrb.gmra.mxu3 %vm3945_vm1, %v9587_v59 }
 0x8a8   : > { %4437 = vmatpush.msrb.mxu0 %v9582_v40 }
 0x8a9   : > { %5940 = vmatmul.msk.f32.vlgmr.msrb.gmra.mxu0 %vm3945_vm1, %v9587_v59 }
 0x8af   : > { %5938 = vmatmul.msk.f32.gmra.mxu3 %vm3945_vm1, %v9597_v14 }
 0x8b1   : > { %5941 = vmatmul.msk.f32.gmra.mxu0 %vm3945_vm1, %v9597_v14 }
 0x8b7   : > { %5939 = vmatmul.msk.f32.gmra.mxu3 %vm3945_vm1, %v9606_v3 }
 0x8b9   : > { %5942 = vmatmul.msk.f32.gmra.mxu0 %vm3945_vm1, %v9606_v3 }
 0x926   : > { %v4439_v17 = vpop.f32.mrf.mxu0 }
 0x927   : > { %v4449_v24 = vadd.f32 %v4439_v17, %v3666_v58 }
 0x929   : > { %v5944_v34 = vmul.f32 -1.442695, %v4449_v24 }
 0x92a   : > { %v4413_v16 = vpop.f32.mrf.mxu3 }
 0x92b   : > { %6400 = vpow2.f32 %v5944_v34  ;;  %v4448_v35 = vadd.f32 %v4413_v16, %v3640_v8 }
 0x92d   : > { %v5943_v46 = vmul.f32 -1.442695, %v4448_v35 }
 0x92e   : > { %v4442_v33 = vpop.f32.mrf.mxu0 }
 0x92f   : > { %6402 = vpow2.f32 %v5943_v46  ;;  %v4451_v42 = vadd.f32 %v4442_v33, %v3669_v15 }
 0x931   : > { %v6401_v45 = vpop.eup %6400  ;;  %v5946_v60 = vmul.f32 -1.442695, %v4451_v42 }
 0x932   : > { %v4465_v25 = vadd.f32 1.0, %v6401_v45  ;;  %v4416_v18 = vpop.f32.mrf.mxu3 }
 0x933   : > { %6404 = vpow2.f32 %v5946_v60  ;;  %v4450_v47 = vadd.f32 %v4416_v18, %v3643_v19 }
 0x934   : > { %6406 = vrcp.f32 %v4465_v25  ;;  %v4492_v17 = vand.u32 2147483647, %v4465_v25  ;;  %v4494_v24 = vand.u32 2147483648, %v4465_v25  ;;  %vm4488_vm10 = vweird.f32 %v4465_v25 }
 0x935   : > { %v6403_v30 = vpop.eup %6402  ;;  %v5945_v2 = vmul.f32 -1.442695, %v4450_v47 }
 0x936   : > { %v4464_v44 = vadd.f32 1.0, %v6403_v30  ;;  %v4445_v8 = vpop.f32.mrf.mxu0  ;;  %vm4493_vm12 = vcmp.eq.f32.partialorder %v4492_v17, 8.507059e+37  ;;  %v4495_v45 = vor.u32 1.1754944e-38, %v4494_v24 }
 0x937   : > { %6408 = vpow2.f32 %v5945_v2  ;;  %v4529_v19 = vadd.f32 %v4445_v8, %v9414_v22  ;;  %v3672_v2 = vadd.f32 %v9533_v49, %v9416_v55 }
 0x938   : > { %6410 = vrcp.f32 %v4464_v44  ;;  %v4477_v35 = vand.u32 2147483647, %v4464_v44  ;;  %v4479_v33 = vand.u32 2147483648, %v4464_v44  ;;  %vm4473_vm14 = vweird.f32 %v4464_v44 }
 0x939   : > { %v6405_v50 = vpop.eup %6404 }
 0x93a   : > { %v6407_v43 = vpop.eup %6406  ;;  %v4467_v21 = vadd.f32 1.0, %v6405_v50  ;;  %v4419_v47 = vpop.f32.mrf.mxu3  ;;  %vm9626_vm15 = vcmp.eq.f32.partialorder %v4477_v35, 8.507059e+37  ;;  %v4480_v17 = vor.u32 1.1754944e-38, %v4479_v33  ;;  %v3646_v35 = vadd.f32 %v9459_v11, %v9416_v55 }
 0x93b   : > { %v4484_v27 = vmul.f32 %v6407_v43, %v4465_v25  ;;  %vm4489_vm9 = vweird.f32 %v6407_v43 }
 0x93c   : > { %6412 = vrcp.f32 %v4467_v21  ;;  %vm4490_vm11 = vmor %vm4488_vm10, %vm4489_vm9  ;;  %v4522_v8 = vand.u32 2147483647, %v4467_v21  ;;  %vm4518_vm4 = vweird.f32 %v4467_v21 }
 0x93d   : > { %v6409_v36 = vpop.eup %6408  ;;  %v4485_v39 = vsub.f32 1.0, %v4484_v27 }
 0x93e   : > { %v6411_v58 = vpop.eup %6410  ;;  %v9620_v54 = vadd.f32 1.0, %v6409_v36  ;;  %vm4523_vm6 = vcmp.eq.f32.partialorder %v4522_v8, 8.507059e+37 }
 0x93f   : > { %v4486_v34 = vmul.f32 %v6407_v43, %v4485_v39  ;;  %v4469_v16 = vmul.f32 %v6411_v58, %v4464_v44  ;;  %vm4474_vm13 = vweird.f32 %v6411_v58 }
 0x940   : > { %6414 = vrcp.f32 %v9620_v54  ;;  %vm4475_vm0 = vmor %vm4473_vm14, %vm4474_vm13  ;;  %vm4503_vm7 = vweird.f32 %v9620_v54 }
 0x941   : > { %v4487_v15 = vadd.f32 %v6407_v43, %v4486_v34  ;;  %v4470_v46 = vsub.f32 1.0, %v4469_v16  ;;  %v4524_v34 = vand.u32 2147483648, %v4467_v21 }
 0x942   : > { %v6413_v42 = vpop.eup %6412 }
 0x943   : > { %v4514_v60 = vmul.f32 %v6413_v42, %v4467_v21  ;;  %v4491_v18 = vsel %vm4490_vm11, %v6407_v43, %v4487_v15  ;;  %v4471_v30 = vmul.f32 %v6411_v58, %v4470_v46  ;;  %v4528_v43 = vadd.f32 %v4419_v47, %v9414_v22 }
 0x944   : > { %v4496_v50 = vsel %vm4493_vm12, %v4495_v45, %v4491_v18  ;;  %vm4519_vm3 = vweird.f32 %v6413_v42  ;;  %v4507_v18 = vand.u32 2147483647, %v9620_v54  ;;  %v4509_v47 = vand.u32 2147483648, %v9620_v54 }
 0x945   : > { %v4515_v27 = vsub.f32 1.0, %v4514_v60  ;;  %v4531_v36 = vmul.f32 %v4529_v19, %v4496_v50  ;;  %v4472_v39 = vadd.f32 %v6411_v58, %v4471_v30  ;;  %vm4520_vm5 = vmor %vm4518_vm4, %vm4519_vm3  ;;  %v4525_v60 = vor.u32 1.1754944e-38, %v4524_v34 }
 0x946   : > { %v6415_v24 = vpop.eup %6414  ;;  %v4510_v25 = vor.u32 1.1754944e-38, %v4509_v47  ;;  %vm4508_vm9 = vcmp.eq.f32.partialorder %v4507_v18, 8.507059e+37  ;;  %v3721_v47 = vadd.f32 %v9469_v26, %v9404_v38 }
 0x947   : > { %v4516_v16 = vmul.f32 %v6413_v42, %v4515_v27  ;;  %v4499_v49 = vmul.f32 %v6415_v24, %v9620_v54  ;;  %v4533_v15 = vadd.f32 %v4531_v36, %v3672_v2  ;;  %v4476_v44 = vsel %vm4475_vm0, %v6411_v58, %v4472_v39 }
 0x948   : > { %v4481_v46 = vsel %vm9626_vm15, %v4480_v17, %v4476_v44  ;;  %vm4504_vm2 = vweird.f32 %v6415_v24  ;;  %v3718_v44 = vadd.f32 %v9465_v32, %v9400_v0 }
 0x949   : > { %v4500_v33 = vsub.f32 1.0, %v4499_v49  ;;  %6416 = vtanh.f32 %v4533_v15  ;;  %v4530_v45 = vmul.f32 %v4528_v43, %v4481_v46  ;;  %v4517_v19 = vadd.f32 %v6413_v42, %v4516_v16  ;;  %vm4505_vm8 = vmor %vm4503_vm7, %vm4504_vm2 }
 0x94b   : > { %v4501_v30 = vmul.f32 %v6415_v24, %v4500_v33  ;;  %v4532_v58 = vadd.f32 %v4530_v45, %v3646_v35  ;;  %v4521_v2 = vsel %vm4520_vm5, %v6413_v42, %v4517_v19 }
 0x94c   : > { %v4526_v11 = vsel %vm4523_vm6, %v4525_v60, %v4521_v2  ;;  %v3695_v60 = vadd.f32 %v9387_v10, %v9404_v38 }
 0x94d   : > { %6418 = vtanh.f32 %v4532_v58  ;;  %v4537_v21 = vsub.f32 1.0, %v4526_v11  ;;  %v4502_v50 = vadd.f32 %v6415_v24, %v4501_v30  ;;  %v4541_v17 = vmul.f32 %v4526_v11, %v9582_v40 }
 0x94f   : > { %v6417_v27 = vpop.eup %6416  ;;  %v4506_v36 = vsel %vm4505_vm8, %v6415_v24, %v4502_v50  ;;  %v3692_v24 = vadd.f32 %v9380_v63, %v9400_v0 }
 0x950   : > { %v4539_v39 = vmul.f32 %v6417_v27, %v4537_v21  ;;  %v4511_v43 = vsel %vm4508_vm9, %v4510_v25, %v4506_v36 }
 0x951   : > { %v4536_v8 = vsub.f32 1.0, %v4511_v43  ;;  %v4540_v54 = vmul.f32 %v4511_v43, %v9578_v37 }
 0x952   : > { %v9640_v34 = vadd.f32 %v4541_v17, %v4539_v39 }
 0x953   : > { %v6419_v42 = vpop.eup %6418 }
 0x954   : > { %4593 = vmatpush.msrb.mxu2 %v9640_v34  ;;  %v4538_v16 = vmul.f32 %v6419_v42, %v4536_v8 }
 0x955   : > { %5950 = vmatmul.msk.f32.vlgmr.msrb.gmra.mxu2 %vm3945_vm1, %v9587_v59 }
 0x956   : > { %v9646_v49 = vadd.f32 %v4540_v54, %v4538_v16 }
 0x958   : > { %4567 = vmatpush.msrb.mxu1 %v9646_v49 }
 0x959   : > { %5947 = vmatmul.msk.f32.vlgmr.msrb.gmra.mxu1 %vm3945_vm1, %v9587_v59 }
 0x95d   : > { %5951 = vmatmul.msk.f32.gmra.mxu2 %vm3945_vm1, %v9597_v14 }
 0x961   : > { %5948 = vmatmul.msk.f32.gmra.mxu1 %vm3945_vm1, %v9597_v14 }
 0x965   : > { %5952 = vmatmul.msk.f32.gmra.mxu2 %vm3945_vm1, %v9606_v3 }
 0x969   : > { %5949 = vmatmul.msk.f32.gmra.mxu1 %vm3945_vm1, %v9606_v3 }
 0x9d6   : > { %v4569_v15 = vpop.f32.mrf.mxu1 }
 0x9d7   : > { %v4604_v35 = vadd.f32 %v4569_v15, %v3692_v24 }
 0x9d8   : > { %v4595_v46 = vpop.f32.mrf.mxu2 }
 0x9d9   : > { %v5953_v33 = vmul.f32 -1.442695, %v4604_v35  ;;  %v4605_v45 = vadd.f32 %v4595_v46, %v3718_v44  ;;  %v3724_v44 = vadd.f32 %v9473_v20, %v9416_v55 }
 0x9db   : > { %6420 = vpow2.f32 %v5953_v33  ;;  %v5954_v19 = vmul.f32 -1.442695, %v4605_v45 }
 0x9dd   : > { %6422 = vpow2.f32 %v5954_v19 }
 0x9de   : > { %v4572_v18 = vpop.f32.mrf.mxu1 }
 0x9df   : > { %v4606_v30 = vadd.f32 %v4572_v18, %v3695_v60 }
 0x9e0   : > { %v4598_v63 = vpop.f32.mrf.mxu2 }
 0x9e1   : > { %v6421_v58 = vpop.eup %6420  ;;  %v5955_v2 = vmul.f32 -1.442695, %v4606_v30  ;;  %v4607_v11 = vadd.f32 %v4598_v63, %v3721_v47  ;;  %v3698_v47 = vadd.f32 %v9390_v1, %v9416_v55 }
 0x9e2   : > { %v4620_v32 = vadd.f32 1.0, %v6421_v58 }
 0x9e3   : > { %v6423_v21 = vpop.eup %6422  ;;  %6424 = vpow2.f32 %v5955_v2  ;;  %v5956_v50 = vmul.f32 -1.442695, %v4607_v11 }
 0x9e4   : > { %6426 = vrcp.f32 %v4620_v32  ;;  %v4621_v25 = vadd.f32 1.0, %v6423_v21  ;;  %v4633_v16 = vand.u32 2147483647, %v4620_v32  ;;  %v4635_v54 = vand.u32 2147483648, %v4620_v32 }
 0x9e5   : > { %6428 = vpow2.f32 %v5956_v50  ;;  %vm4629_vm11 = vweird.f32 %v4620_v32 }
 0x9e6   : > { %6430 = vrcp.f32 %v4621_v25  ;;  %v4575_v35 = vpop.f32.mrf.mxu1  ;;  %v4648_v46 = vand.u32 2147483647, %v4621_v25  ;;  %v4650_v33 = vand.u32 2147483648, %v4621_v25  ;;  %vm4634_vm14 = vcmp.eq.f32.partialorder %v4633_v16, 8.507059e+37 }
 0x9e7   : > { %v4636_v30 = vor.u32 1.1754944e-38, %v4635_v54  ;;  %vm4644_vm15 = vweird.f32 %v4621_v25  ;;  %v4684_v20 = vadd.f32 %v4575_v35, %v9414_v22 }
 0x9e8   : > { %v4601_v19 = vpop.f32.mrf.mxu2  ;;  %vm4649_vm3 = vcmp.eq.f32.partialorder %v4648_v46, 8.507059e+37 }
 0x9e9   : > { %v6425_v27 = vpop.eup %6424  ;;  %v4685_v50 = vadd.f32 %v4601_v19, %v9414_v22 }
 0x9ea   : > { %v6427_v10 = vpop.eup %6426  ;;  %v9667_v36 = vadd.f32 1.0, %v6425_v27 }
 0x9eb   : > { %v6429_v39 = vpop.eup %6428  ;;  %v4625_v17 = vmul.f32 %v6427_v10, %v4620_v32  ;;  %vm4630_vm10 = vweird.f32 %v6427_v10  ;;  %v4651_v32 = vor.u32 1.1754944e-38, %v4650_v33 }
 0x9ec   : > { %v6431_v26 = vpop.eup %6430  ;;  %6432 = vrcp.f32 %v9667_v36  ;;  %v9670_v43 = vadd.f32 1.0, %v6429_v39  ;;  %vm4631_vm13 = vmor %vm4629_vm11, %vm4630_vm10  ;;  %vm4659_vm5 = vweird.f32 %v9667_v36 }
 0x9ed   : > { %v4626_v8 = vsub.f32 1.0, %v4625_v17  ;;  %v4640_v42 = vmul.f32 %v6431_v26, %v4621_v25  ;;  %vm4645_vm12 = vweird.f32 %v6431_v26  ;;  %v4663_v25 = vand.u32 2147483647, %v9667_v36 }
 0x9ee   : > { %6434 = vrcp.f32 %v9670_v43  ;;  %vm4646_vm0 = vmor %vm4644_vm15, %vm4645_vm12  ;;  %v4680_v35 = vand.u32 2147483648, %v9670_v43  ;;  %vm4674_vm2 = vweird.f32 %v9670_v43 }
 0x9ef   : > { %v4627_v24 = vmul.f32 %v6427_v10, %v4626_v8  ;;  %v4641_v15 = vsub.f32 1.0, %v4640_v42  ;;  %vm4664_vm8 = vcmp.eq.f32.partialorder %v4663_v25, 8.507059e+37 }
 0x9f1   : > { %v4628_v45 = vadd.f32 %v6427_v10, %v4627_v24  ;;  %v4642_v60 = vmul.f32 %v6431_v26, %v4641_v15  ;;  %v4678_v15 = vand.u32 2147483647, %v9670_v43 }
 0x9f2   : > { %v6433_v18 = vpop.eup %6432 }
 0x9f3   : > { %v4655_v63 = vmul.f32 %v6433_v18, %v9667_v36  ;;  %v4632_v58 = vsel %vm4631_vm13, %v6427_v10, %v4628_v45  ;;  %v4643_v2 = vadd.f32 %v6431_v26, %v4642_v60  ;;  %vm4660_vm4 = vweird.f32 %v6433_v18 }
 0x9f4   : > { %v6435_v11 = vpop.eup %6434  ;;  %v4637_v21 = vsel %vm4634_vm14, %v4636_v30, %v4632_v58  ;;  %v4665_v10 = vand.u32 2147483648, %v9667_v36  ;;  %vm4661_vm7 = vmor %vm4659_vm5, %vm4660_vm4  ;;  %v4681_v36 = vor.u32 1.1754944e-38, %v4680_v35  ;;  %vm4679_vm10 = vcmp.eq.f32.partialorder %v4678_v15, 8.507059e+37 }
 0x9f5   : > { %v4656_v27 = vsub.f32 1.0, %v4655_v63  ;;  %v4670_v1 = vmul.f32 %v6435_v11, %v9670_v43  ;;  %v4686_v39 = vmul.f32 %v4684_v20, %v4637_v21  ;;  %v4647_v17 = vsel %vm4646_vm0, %v6431_v26, %v4643_v2 }
 0x9f6   : > { %v4652_v8 = vsel %vm4649_vm3, %v4651_v32, %v4647_v17  ;;  %vm4675_vm6 = vweird.f32 %v6435_v11  ;;  %v4666_v45 = vor.u32 1.1754944e-38, %v4665_v10  ;;  %v3744_v17 = vadd.f32 %v9463_v57, %v9400_v0 }
 0x9f7   : > { %v4657_v42 = vmul.f32 %v6433_v18, %v4656_v27  ;;  %v4671_v16 = vsub.f32 1.0, %v4670_v1  ;;  %v4688_v54 = vadd.f32 %v4686_v39, %v3698_v47  ;;  %v4687_v24 = vmul.f32 %v4685_v50, %v4652_v8  ;;  %vm4676_vm9 = vmor %vm4674_vm2, %vm4675_vm6 }
 0x9f9   : > { %v4672_v46 = vmul.f32 %v6435_v11, %v4671_v16  ;;  %6436 = vtanh.f32 %v4688_v54  ;;  %v4689_v26 = vadd.f32 %v4687_v24, %v3724_v44  ;;  %v4658_v33 = vadd.f32 %v6433_v18, %v4657_v42 }
 0x9fa   : > { %v3773_v42 = vadd.f32 %v9537_v9, %v9404_v38 }
 0x9fb   : > { %6438 = vtanh.f32 %v4689_v26  ;;  %v4662_v19 = vsel %vm4661_vm7, %v6433_v18, %v4658_v33  ;;  %v4673_v60 = vadd.f32 %v6435_v11, %v4672_v46 }
 0x9fc   : > { %v4667_v47 = vsel %vm4664_vm8, %v4666_v45, %v4662_v19 }
 0x9fd   : > { %v4692_v30 = vsub.f32 1.0, %v4667_v47  ;;  %v4677_v63 = vsel %vm4676_vm9, %v6435_v11, %v4673_v60  ;;  %v4696_v43 = vmul.f32 %v4667_v47, %v9646_v49  ;;  %v3770_v11 = vadd.f32 %v9535_v56, %v9400_v0 }
 0x9fe   : > { %v4682_v58 = vsel %vm4679_vm10, %v4681_v36, %v4677_v63  ;;  %v3747_v56 = vadd.f32 %v9467_v7, %v9404_v38 }
 0x9ff   : > { %v6437_v20 = vpop.eup %6436  ;;  %v4693_v44 = vsub.f32 1.0, %v4682_v58  ;;  %v4697_v18 = vmul.f32 %v4682_v58, %v9640_v34 }
 0xa00   : > { %v4694_v2 = vmul.f32 %v6437_v20, %v4692_v30 }
 0xa01   : > { %v6439_v21 = vpop.eup %6438 }
 0xa02   : > { %v9690_v32 = vadd.f32 %v4696_v43, %v4694_v2  ;;  %v4695_v50 = vmul.f32 %v6439_v21, %v4693_v44 }
 0xa04   : > { %4723 = vmatpush.msra.mxu3 %v9690_v32  ;;  %v9694_v27 = vadd.f32 %v4697_v18, %v4695_v50 }
 0xa05   : > { %5957 = vmatmul.msk.f32.vlgmr.msra.gmra.mxu3 %vm3945_vm1, %v9587_v59 }
 0xa06   : > { %4749 = vmatpush.msra.mxu0 %v9694_v27 }
 0xa07   : > { %5960 = vmatmul.msk.f32.vlgmr.msra.gmra.mxu0 %vm3945_vm1, %v9587_v59 }
 0xa0d   : > { %5958 = vmatmul.msk.f32.gmra.mxu3 %vm3945_vm1, %v9597_v14 }
 0xa0f   : > { %5961 = vmatmul.msk.f32.gmra.mxu0 %vm3945_vm1, %v9597_v14 }
 0xa15   : > { %5959 = vmatmul.msk.f32.gmra.mxu3 %vm3945_vm1, %v9606_v3 }
 0xa17   : > { %5962 = vmatmul.msk.f32.gmra.mxu0 %vm3945_vm1, %v9606_v3 }
 0xa84   : > { %v4751_v1 = vpop.f32.mrf.mxu0 }
 0xa85   : > { %v4761_v39 = vadd.f32 %v4751_v1, %v3770_v11 }
 0xa87   : > { %v5964_v8 = vmul.f32 -1.442695, %v4761_v39 }
 0xa88   : > { %v4725_v25 = vpop.f32.mrf.mxu3 }
 0xa89   : > { %6440 = vpow2.f32 %v5964_v8  ;;  %v4760_v10 = vadd.f32 %v4725_v25, %v3744_v17 }
 0xa8b   : > { %v5963_v16 = vmul.f32 -1.442695, %v4760_v10 }
 0xa8c   : > { %v4754_v54 = vpop.f32.mrf.mxu0 }
 0xa8d   : > { %6442 = vpow2.f32 %v5963_v16  ;;  %v4763_v24 = vadd.f32 %v4754_v54, %v3773_v42  ;;  %v3776_v54 = vadd.f32 %v9539_v12, %v9416_v55 }
 0xa8f   : > { %v6441_v15 = vpop.eup %6440  ;;  %v5966_v35 = vmul.f32 -1.442695, %v4763_v24 }
 0xa90   : > { %v4777_v46 = vadd.f32 1.0, %v6441_v15  ;;  %v4728_v26 = vpop.f32.mrf.mxu3 }
 0xa91   : > { %6444 = vpow2.f32 %v5966_v35  ;;  %v4762_v57 = vadd.f32 %v4728_v26, %v3747_v56 }
 0xa92   : > { %6446 = vrcp.f32 %v4777_v46  ;;  %v4804_v20 = vand.u32 2147483647, %v4777_v46  ;;  %v4806_v44 = vand.u32 2147483648, %v4777_v46  ;;  %vm4800_vm12 = vweird.f32 %v4777_v46 }
 0xa93   : > { %v6443_v33 = vpop.eup %6442  ;;  %v5965_v45 = vmul.f32 -1.442695, %v4762_v57 }
 0xa94   : > { %v4776_v19 = vadd.f32 1.0, %v6443_v33  ;;  %v4757_v2 = vpop.f32.mrf.mxu0  ;;  %vm4805_vm14 = vcmp.eq.f32.partialorder %v4804_v20, 8.507059e+37  ;;  %v4807_v17 = vor.u32 1.1754944e-38, %v4806_v44 }
 0xa95   : > { %6448 = vpow2.f32 %v5965_v45  ;;  %v4841_v8 = vadd.f32 %v4757_v2, %v9414_v22 }
 0xa96   : > { %6450 = vrcp.f32 %v4776_v19  ;;  %v4789_v50 = vand.u32 2147483647, %v4776_v19  ;;  %v4791_v1 = vand.u32 2147483648, %v4776_v19  ;;  %vm4785_vm0 = vweird.f32 %v4776_v19 }
 0xa97   : > { %v6445_v9 = vpop.eup %6444 }
 0xa98   : > { %v6447_v60 = vpop.eup %6446  ;;  %v4779_v47 = vadd.f32 1.0, %v6445_v9  ;;  %v4731_v42 = vpop.f32.mrf.mxu3  ;;  %vm9723_vm3 = vcmp.eq.f32.partialorder %v4789_v50, 8.507059e+37  ;;  %v4792_v26 = vor.u32 1.1754944e-38, %v4791_v1 }
 0xa99   : > { %v4796_v36 = vmul.f32 %v6447_v60, %v4777_v46  ;;  %vm4801_vm11 = vweird.f32 %v6447_v60  ;;  %v4840_v33 = vadd.f32 %v4731_v42, %v9414_v22 }
 0xa9a   : > { %6452 = vrcp.f32 %v4779_v47  ;;  %vm4802_vm13 = vmor %vm4800_vm12, %vm4801_vm11  ;;  %v4834_v45 = vand.u32 2147483647, %v4779_v47  ;;  %v4836_v9 = vand.u32 2147483648, %v4779_v47  ;;  %vm4830_vm6 = vweird.f32 %v4779_v47 }
 0xa9b   : > { %v6449_v30 = vpop.eup %6448  ;;  %v4797_v63 = vsub.f32 1.0, %v4796_v36 }
 0xa9c   : > { %v6451_v58 = vpop.eup %6450  ;;  %v9717_v7 = vadd.f32 1.0, %v6449_v30  ;;  %v3750_v30 = vadd.f32 %v9471_v13, %v9416_v55  ;;  %vm4835_vm7 = vcmp.eq.f32.partialorder %v4834_v45, 8.507059e+37 }
 0xa9d   : > { %v4798_v43 = vmul.f32 %v6447_v60, %v4797_v63  ;;  %v4781_v21 = vmul.f32 %v6451_v58, %v4776_v19  ;;  %vm4786_vm15 = vweird.f32 %v6451_v58 }
 0xa9e   : > { %6454 = vrcp.f32 %v9717_v7  ;;  %vm4787_vm4 = vmor %vm4785_vm0, %vm4786_vm15  ;;  %v4821_v50 = vand.u32 2147483648, %v9717_v7  ;;  %vm4815_vm9 = vweird.f32 %v9717_v7 }
 0xa9f   : > { %v4799_v18 = vadd.f32 %v6447_v60, %v4798_v43  ;;  %v4782_v11 = vsub.f32 1.0, %v4781_v21  ;;  %v4837_v43 = vor.u32 1.1754944e-38, %v4836_v9  ;;  %v4819_v21 = vand.u32 2147483647, %v9717_v7 }
 0xaa0   : > { %v6453_v39 = vpop.eup %6452 }
 0xaa1   : > { %v4826_v25 = vmul.f32 %v6453_v39, %v4779_v47  ;;  %v4803_v10 = vsel %vm4802_vm13, %v6447_v60, %v4799_v18  ;;  %v4783_v16 = vmul.f32 %v6451_v58, %v4782_v11  ;;  %vm4831_vm5 = vweird.f32 %v6453_v39 }
 0xaa2   : > { %v4808_v24 = vsel %vm4805_vm14, %v4807_v17, %v4803_v10  ;;  %vm4832_vm2 = vmor %vm4830_vm6, %vm4831_vm5  ;;  %v4822_v17 = vor.u32 1.1754944e-38, %v4821_v50  ;;  %vm4820_vm11 = vcmp.eq.f32.partialorder %v4819_v21, 8.507059e+37 }
 0xaa3   : > { %v4827_v56 = vsub.f32 1.0, %v4826_v25  ;;  %v4843_v35 = vmul.f32 %v4841_v8, %v4808_v24  ;;  %v4784_v46 = vadd.f32 %v6451_v58, %v4783_v16 }
 0xaa4   : > { %v6455_v57 = vpop.eup %6454 }
 0xaa5   : > { %v4828_v60 = vmul.f32 %v6453_v39, %v4827_v56  ;;  %v4811_v12 = vmul.f32 %v6455_v57, %v9717_v7  ;;  %v4845_v36 = vadd.f32 %v4843_v35, %v3776_v54  ;;  %v4788_v19 = vsel %vm4787_vm4, %v6451_v58, %v4784_v46 }
 0xaa6   : > { %v4793_v63 = vsel %vm9723_vm3, %v4792_v26, %v4788_v19  ;;  %vm4816_vm8 = vweird.f32 %v6455_v57  ;;  %v3799_v46 = vadd.f32 %v9396_v62, %v9404_v38 }
 0xaa7   : > { %v4812_v20 = vsub.f32 1.0, %v4811_v12  ;;  %6456 = vtanh.f32 %v4845_v36  ;;  %v4842_v44 = vmul.f32 %v4840_v33, %v4793_v63  ;;  %v4829_v2 = vadd.f32 %v6453_v39, %v4828_v60  ;;  %vm4817_vm10 = vmor %vm4815_vm9, %vm4816_vm8 }
 0xaa9   : > { %v4813_v18 = vmul.f32 %v6455_v57, %v4812_v20  ;;  %v4844_v58 = vadd.f32 %v4842_v44, %v3750_v30  ;;  %v4833_v11 = vsel %vm4832_vm2, %v6453_v39, %v4829_v2 }
 0xaaa   : > { %v4838_v13 = vsel %vm4835_vm7, %v4837_v43, %v4833_v11 }
 0xaab   : > { %6458 = vtanh.f32 %v4844_v58  ;;  %v4849_v47 = vsub.f32 1.0, %v4838_v13  ;;  %v4814_v1 = vadd.f32 %v6455_v57, %v4813_v18  ;;  %v4853_v42 = vmul.f32 %v4838_v13, %v9694_v27  ;;  %v9804_v58 = vpop.permute.xlu0 %5190 }
 0xaad   : > { %v6457_v8 = vpop.eup %6456  ;;  %v4818_v25 = vsel %vm4817_vm10, %v6455_v57, %v4814_v1  ;;  %v3825_v57 = vadd.f32 %v9481_v5, %v9404_v38 }
 0xaae   : > { %v4851_v10 = vmul.f32 %v6457_v8, %v4849_v47  ;;  %v4823_v16 = vsel %vm4820_vm11, %v4822_v17, %v4818_v25  ;;  %v3828_v25 = vadd.f32 %v9485_v28, %v9416_v55 }
 0xaaf   : > { %v4848_v54 = vsub.f32 1.0, %v4823_v16  ;;  %v4852_v7 = vmul.f32 %v4823_v16, %v9690_v32 }
 0xab0   : > { %v9737_v24 = vadd.f32 %v4853_v42, %v4851_v10 }
 0xab1   : > { %v6459_v39 = vpop.eup %6458 }
 0xab2   : > { %4905 = vmatpush.msra.mxu2 %v9737_v24  ;;  %v4850_v15 = vmul.f32 %v6459_v39, %v4848_v54 }
 0xab3   : > { %5970 = vmatmul.msk.f32.vlgmr.msra.gmra.mxu2 %vm3945_vm1, %v9587_v59 }
 0xab4   : > { %5231 = vmatpush.msrb.mxu2 %v9434_v4  ;;  %v9744_v56 = vadd.f32 %v4852_v7, %v4850_v15  ;;  %v9763_v4 = vld [vmem:[%s9958_s9] sm:$0xff] }
 0xab6   : > { %5291 = vmatpush.msra.mxu2 %v9578_v37  ;;  %4879 = vmatpush.msra.mxu1 %v9744_v56  ;;  %v3822_v37 = vadd.f32 %v9477_v48, %v9400_v0 }
 0xab7   : > { %5967 = vmatmul.msk.f32.vlgmr.msra.gmra.mxu1 %vm3945_vm1, %v9587_v59 }
 0xab8   : > { %5211 = vmatpush.msrb.mxu1 %v9431_v53  ;;  %v3796_v53 = vadd.f32 %v9392_v61, %v9400_v0 }
 0xaba   : > { %5271 = vmatpush.msra.mxu1 %v9510_v41 }
 0xabb   : > { %5971 = vmatmul.msk.f32.gmra.mxu2 %vm3945_vm1, %v9597_v14 }
 0xabf   : > { %5968 = vmatmul.msk.f32.gmra.mxu1 %vm3945_vm1, %v9597_v14 }
 0xac3   : > { %5972 = vmatmul.msk.f32.gmra.mxu2 %vm3945_vm1, %v9606_v3 }
 0xac7   : > { %5969 = vmatmul.msk.f32.gmra.mxu1 %vm3945_vm1, %v9606_v3 }
 0xacb   : > { %5988 = vmatmul.msk.f32.vlgmr.msrb.gmra.mxu2 %vm3945_vm1, %v9763_v4 }
 0xacc   : > { %5351 = vmatpush.msrb.mxu2 %v9640_v34 }
 0xacf   : > { %5987 = vmatmul.msk.f32.vlgmr.msrb.gmra.mxu1 %vm3945_vm1, %v9763_v4 }
 0xad0   : > { %5331 = vmatpush.msrb.mxu1 %v9646_v49 }
 0xad3   : > { %5991 = vmatmul.msk.f32.vlgmr.msra.gmra.mxu2 %vm3945_vm1, %v9763_v4 }
 0xad4   : > { %5431 = vmatpush.msra.mxu2 %v9737_v24 }
 0xad7   : > { %5990 = vmatmul.msk.f32.vlgmr.msra.gmra.mxu1 %vm3945_vm1, %v9763_v4 }
 0xad8   : > { %5411 = vmatpush.msra.mxu1 %v9744_v56 }
 0xadb   : > { %5994 = vmatmul.msk.f32.vlgmr.msrb.gmra.mxu2 %vm3945_vm1, %v9763_v4 }
 0xadf   : > { %5993 = vmatmul.msk.f32.vlgmr.msrb.gmra.mxu1 %vm3945_vm1, %v9763_v4 }
 0xae3   : > { %5998 = vmatmul.msk.f32.vlgmr.msra.gmra.mxu2 %vm3945_vm1, %v9763_v4 }
 0xae7   : > { %5997 = vmatmul.msk.f32.vlgmr.msra.gmra.mxu1 %vm3945_vm1, %v9763_v4 }
 0xb34   : > { %v4881_v41 = vpop.f32.mrf.mxu1 }
 0xb35   : > { %v4916_v14 = vadd.f32 %v4881_v41, %v3796_v53  ;;  %v3802_v53 = vadd.f32 %v9398_v29, %v9416_v55 }
 0xb36   : > { %v4907_v3 = vpop.f32.mrf.mxu2 }
 0xb37   : > { %v5973_v34 = vmul.f32 -1.442695, %v4916_v14  ;;  %v4917_v49 = vadd.f32 %v4907_v3, %v3822_v37 }
 0xb39   : > { %6460 = vpow2.f32 %v5973_v34  ;;  %v5974_v35 = vmul.f32 -1.442695, %v4917_v49 }
 0xb3b   : > { %6462 = vpow2.f32 %v5974_v35 }
 0xb3c   : > { %v4884_v26 = vpop.f32.mrf.mxu1 }
 0xb3d   : > { %v4918_v33 = vadd.f32 %v4884_v26, %v3799_v46 }
 0xb3e   : > { %v4910_v61 = vpop.f32.mrf.mxu2 }
 0xb3f   : > { %v6461_v45 = vpop.eup %6460  ;;  %v5975_v9 = vmul.f32 -1.442695, %v4918_v33  ;;  %v4919_v48 = vadd.f32 %v4910_v61, %v3825_v57 }
 0xb40   : > { %v4932_v60 = vadd.f32 1.0, %v6461_v45 }
 0xb41   : > { %v6463_v12 = vpop.eup %6462  ;;  %6464 = vpow2.f32 %v5975_v9  ;;  %v5976_v36 = vmul.f32 -1.442695, %v4919_v48 }
 0xb42   : > { %6466 = vrcp.f32 %v4932_v60  ;;  %v4933_v19 = vadd.f32 1.0, %v6463_v12  ;;  %v4945_v11 = vand.u32 2147483647, %v4932_v60  ;;  %v4947_v13 = vand.u32 2147483648, %v4932_v60 }
 0xb43   : > { %6468 = vpow2.f32 %v5976_v36  ;;  %vm4941_vm13 = vweird.f32 %v4932_v60 }
 0xb44   : > { %6470 = vrcp.f32 %v4933_v19  ;;  %v4887_v62 = vpop.f32.mrf.mxu1  ;;  %v4960_v10 = vand.u32 2147483647, %v4933_v19  ;;  %v4962_v42 = vand.u32 2147483648, %v4933_v19  ;;  %vm4946_vm0 = vcmp.eq.f32.partialorder %v4945_v11, 8.507059e+37 }
 0xb45   : > { %v4948_v41 = vor.u32 1.1754944e-38, %v4947_v13  ;;  %vm4956_vm3 = vweird.f32 %v4933_v19  ;;  %v4996_v14 = vadd.f32 %v4887_v62, %v9414_v22 }
 0xb46   : > { %v4913_v30 = vpop.f32.mrf.mxu2  ;;  %vm4961_vm5 = vcmp.eq.f32.partialorder %v4960_v10, 8.507059e+37  ;;  %v4963_v35 = vor.u32 1.1754944e-38, %v4962_v42 }
 0xb47   : > { %v6465_v63 = vpop.eup %6464  ;;  %v4997_v29 = vadd.f32 %v4913_v30, %v9414_v22 }
 0xb48   : > { %v6467_v20 = vpop.eup %6466  ;;  %v9793_v44 = vadd.f32 1.0, %v6465_v63 }
 0xb49   : > { %v6469_v5 = vpop.eup %6468  ;;  %v4937_v2 = vmul.f32 %v6467_v20, %v4932_v60  ;;  %vm4942_vm12 = vweird.f32 %v6467_v20 }
 0xb4a   : > { %v6471_v43 = vpop.eup %6470  ;;  %6472 = vrcp.f32 %v9793_v44  ;;  %v9797_v21 = vadd.f32 1.0, %v6469_v5  ;;  %vm4943_vm15 = vmor %vm4941_vm13, %vm4942_vm12  ;;  %v4975_v9 = vand.u32 2147483647, %v9793_v44  ;;  %v4977_v48 = vand.u32 2147483648, %v9793_v44 }
 0xb4b   : > { %v4938_v50 = vsub.f32 1.0, %v4937_v2  ;;  %v4952_v18 = vmul.f32 %v6471_v43, %v4933_v19  ;;  %vm4957_vm14 = vweird.f32 %v6471_v43  ;;  %vm4971_vm7 = vweird.f32 %v9793_v44 }
 0xb4c   : > { %6474 = vrcp.f32 %v9797_v21  ;;  %v5213_v47 = vpop.f32.mrf.mxu1  ;;  %vm4958_vm4 = vmor %vm4956_vm3, %vm4957_vm14  ;;  %v4990_v60 = vand.u32 2147483647, %v9797_v21  ;;  %vm4986_vm8 = vweird.f32 %v9797_v21  ;;  %vm4976_vm10 = vcmp.eq.f32.partialorder %v4975_v9, 8.507059e+37 }
 0xb4d   : > { %v4939_v1 = vmul.f32 %v6467_v20, %v4938_v50  ;;  %v4953_v17 = vsub.f32 1.0, %v4952_v18  ;;  %v5214_v8 = vadd.f32 %v5213_v47, %v9804_v58  ;;  %v4978_v18 = vor.u32 1.1754944e-38, %v4977_v48 }
 0xb4e   : > { %v5233_v16 = vpop.f32.mrf.mxu2  ;;  %vm4991_vm12 = vcmp.eq.f32.partialorder %v4990_v60, 8.507059e+37 }
 0xb4f   : > { %v4940_v54 = vadd.f32 %v6467_v20, %v4939_v1  ;;  %v4954_v39 = vmul.f32 %v6471_v43, %v4953_v17  ;;  %5516 = vst [vmem:[%s9802_s19] sm:$0xff] %v5214_v8  ;;  %v5234_v15 = vadd.f32 %v5233_v16, %v9804_v58 }
 0xb50   : > { %v6473_v7 = vpop.eup %6472 }
 0xb51   : > { %v4967_v28 = vmul.f32 %v6473_v7, %v9793_v44  ;;  %v4944_v37 = vsel %vm4943_vm15, %v6467_v20, %v4940_v54  ;;  %v4955_v3 = vadd.f32 %v6471_v43, %v4954_v39  ;;  %5517 = vst [vmem:[%s9802_s19 + $0x8] sm:$0xff] %v5234_v15  ;;  %vm4972_vm6 = vweird.f32 %v6473_v7 }
 0xb52   : > { %v6475_v34 = vpop.eup %6474  ;;  %v4949_v49 = vsel %vm4946_vm0, %v4948_v41, %v4944_v37  ;;  %v4992_v20 = vand.u32 2147483648, %v9797_v21  ;;  %vm4973_vm9 = vmor %vm4971_vm7, %vm4972_vm6 }
 0xb53   : > { %v4968_v46 = vsub.f32 1.0, %v4967_v28  ;;  %v4982_v26 = vmul.f32 %v6475_v34, %v9797_v21  ;;  %v4998_v57 = vmul.f32 %v4996_v14, %v4949_v49  ;;  %v4959_v33 = vsel %vm4958_vm4, %v6471_v43, %v4955_v3  ;;  %v6524_v14 = vld [vmem:[%s9955_s6] sm:$0xff] }
 0xb54   : > { %v4964_v61 = vsel %vm4961_vm5, %v4963_v35, %v4959_v33  ;;  %v5273_v45 = vpop.f32.mrf.mxu1  ;;  %vm4987_vm2 = vweird.f32 %v6475_v34  ;;  %v4993_v47 = vor.u32 1.1754944e-38, %v4992_v20  ;;  %v3848_v49 = vadd.f32 %v9475_v52, %v9400_v0 }
 0xb55   : > { %v4969_v12 = vmul.f32 %v6473_v7, %v4968_v46  ;;  %v4983_v36 = vsub.f32 1.0, %v4982_v26  ;;  %v5000_v19 = vadd.f32 %v4998_v57, %v3802_v53  ;;  %v4999_v62 = vmul.f32 %v4997_v29, %v4964_v61  ;;  %vm4988_vm11 = vmor %vm4986_vm8, %vm4987_vm2 }
 0xb56   : > { %v5274_v30 = vadd.f32 %v5273_v45, %v9804_v58  ;;  %v5293_v63 = vpop.f32.mrf.mxu2  ;;  %v3877_v26 = vadd.f32 %v9543_v23, %v9404_v38 }
 0xb57   : > { %v4984_v5 = vmul.f32 %v6475_v34, %v4983_v36  ;;  %6476 = vtanh.f32 %v5000_v19  ;;  %v5001_v2 = vadd.f32 %v4999_v62, %v3828_v25  ;;  %v5294_v43 = vadd.f32 %v5293_v63, %v9804_v58 }
 0xb58   : > { %5519 = vst [vmem:[%s9802_s19 + $0x18] sm:$0xff] %v5274_v30  ;;  %v4970_v50 = vadd.f32 %v6473_v7, %v4969_v12 }
 0xb59   : > { %6478 = vtanh.f32 %v5001_v2  ;;  %5520 = vst [vmem:[%s9802_s19 + $0x20] sm:$0xff] %v5294_v43  ;;  %v4985_v11 = vadd.f32 %v6475_v34, %v4984_v5 }
 0xb5a   : > { %v4974_v13 = vsel %vm4973_vm9, %v6473_v7, %v4970_v50 }
 0xb5b   : > { %v4979_v1 = vsel %vm4976_vm10, %v4978_v18, %v4974_v13  ;;  %v4989_v17 = vsel %vm4988_vm11, %v6475_v34, %v4985_v11 }
 0xb5c   : > { %v5333_v44 = vpop.f32.mrf.mxu1  ;;  %v5004_v8 = vsub.f32 1.0, %v4979_v1  ;;  %v4994_v25 = vsel %vm4991_vm12, %v4993_v47, %v4989_v17  ;;  %v5008_v39 = vmul.f32 %v4979_v1, %v9744_v56  ;;  %v10254_v1 = vld [vmem:[#allocation18_spill] sm:$0xff] }
 0xb5d   : > { %v6477_v10 = vpop.eup %6476  ;;  %v5334_v21 = vadd.f32 %v5333_v44, %v9804_v58  ;;  %v5005_v42 = vsub.f32 1.0, %v4994_v25  ;;  %v5009_v28 = vmul.f32 %v4994_v25, %v9737_v24  ;;  %v3854_v17 = vadd.f32 %v10254_v1, %v9416_v55 }
 0xb5e   : > { %v5353_v16 = vpop.f32.mrf.mxu2  ;;  %v5006_v54 = vmul.f32 %v6477_v10, %v5004_v8 }
 0xb5f   : > { %v6479_v15 = vpop.eup %6478  ;;  %5522 = vst [vmem:[%s9802_s19 + $0x30] sm:$0xff] %v5334_v21  ;;  %v5354_v7 = vadd.f32 %v5353_v16, %v9804_v58 }
 0xb60   : > { %v9836_v53 = vadd.f32 %v5008_v39, %v5006_v54  ;;  %v5007_v41 = vmul.f32 %v6479_v15, %v5005_v42 }
 0xb61   : > { %5523 = vst [vmem:[%s9802_s19 + $0x38] sm:$0xff] %v5354_v7 }
 0xb62   : > { %5035 = vmatpush.msrb.mxu3 %v9836_v53  ;;  %v9841_v37 = vadd.f32 %v5009_v28, %v5007_v41 }
 0xb63   : > { %5977 = vmatmul.msk.f32.vlgmr.msrb.gmra.mxu3 %vm3945_vm1, %v9587_v59 }
 0xb64   : > { %5061 = vmatpush.msrb.mxu0 %v9841_v37  ;;  %5251 = vmatpush.msra.mxu3 %v9516_v31  ;;  %v5413_v56 = vpop.f32.mrf.mxu1  ;;  %v6525_v31 = vld [vmem:[%s9955_s6 + $0x8] sm:$0xff] }
 0xb65   : > { %5980 = vmatmul.msk.f32.vlgmr.msrb.gmra.mxu0 %vm3945_vm1, %v6524_v14  ;;  %v5414_v24 = vadd.f32 %v5413_v56, %v9804_v58  ;;  %v10257_v56 = vld [vmem:[#allocation20_spill] sm:$0xff] }
 0xb66   : > { %5311 = vmatpush.msrb.mxu3 %v9582_v40  ;;  %5391 = vmatpush.msra.mxu0 %v9694_v27  ;;  %v5433_v3 = vpop.f32.mrf.mxu2  ;;  %v6526_v40 = vld [vmem:[%s9955_s6 + $0x10] sm:$0xff]  ;;  %v3880_v14 = vadd.f32 %v10257_v56, %v9416_v55 }
 0xb67   : > { %5526 = vst [vmem:[%s9802_s19 + $0x50] sm:$0xff] %v5414_v24  ;;  %v5434_v59 = vadd.f32 %v5433_v3, %v9804_v58 }
 0xb68   : > { %5471 = vmatpush.msrb.mxu0 %v9841_v37 }
 0xb69   : > { %5527 = vst [vmem:[%s9802_s19 + $0x58] sm:$0xff] %v5434_v59 }
 0xb6b   : > { %5978 = vmatmul.msk.f32.gmra.mxu3 %vm3945_vm1, %v6525_v31 }
 0xb6d   : > { %5981 = vmatmul.msk.f32.gmra.mxu0 %vm3945_vm1, %v6525_v31 }
 0xb73   : > { %5979 = vmatmul.msk.f32.gmra.mxu3 %vm3945_vm1, %v6526_v40 }
 0xb75   : > { %5982 = vmatmul.msk.f32.gmra.mxu0 %vm3945_vm1, %v6526_v40 }
 0xb7b   : > { %5989 = vmatmul.msk.f32.vlgmr.msra.gmra.mxu3 %vm3945_vm1, %v9763_v4 }
 0xb7c   : > { %5371 = vmatpush.msra.mxu3 %v9690_v32  ;;  %v3874_v32 = vadd.f32 %v9541_v6, %v9400_v0  ;;  %v3851_v6 = vadd.f32 %v9479_v51, %v9404_v38 }
 0xb7d   : > { %5996 = vmatmul.msk.f32.vlgmr.msra.gmra.mxu0 %vm3945_vm1, %v9763_v4 }
 0xb83   : > { %5992 = vmatmul.msk.f32.vlgmr.msrb.gmra.mxu3 %vm3945_vm1, %v9763_v4 }
 0xb84   : > { %5451 = vmatpush.msrb.mxu3 %v9836_v53 }
 0xb85   : > { %6000 = vmatmul.msk.f32.vlgmr.msrb.gmra.mxu0 %vm3945_vm1, %v9763_v4 }
 0xb8b   : > { %5995 = vmatmul.msk.f32.vlgmr.msra.gmra.mxu3 %vm3945_vm1, %v9763_v4 }
 0xb93   : > { %5999 = vmatmul.msk.f32.vlgmr.msrb.gmra.mxu3 %vm3945_vm1, %v9763_v4 }
 0xbe2   : > { %v5063_v27 = vpop.f32.mrf.mxu0 }
 0xbe3   : > { %v5073_v34 = vadd.f32 %v5063_v27, %v3874_v32 }
 0xbe5   : > { %v5984_v35 = vmul.f32 -1.442695, %v5073_v34 }
 0xbe6   : > { %v5037_v29 = vpop.f32.mrf.mxu3 }
 0xbe7   : > { %6480 = vpow2.f32 %v5984_v35  ;;  %v5072_v46 = vadd.f32 %v5037_v29, %v3848_v49 }
 0xbe9   : > { %v5983_v57 = vmul.f32 -1.442695, %v5072_v46 }
 0xbea   : > { %v5066_v33 = vpop.f32.mrf.mxu0 }
 0xbeb   : > { %6482 = vpow2.f32 %v5983_v57  ;;  %v5075_v61 = vadd.f32 %v5066_v33, %v3877_v26 }
 0xbed   : > { %v6481_v45 = vpop.eup %6480  ;;  %v5986_v9 = vmul.f32 -1.442695, %v5075_v61 }
 0xbee   : > { %v5089_v48 = vadd.f32 1.0, %v6481_v45  ;;  %v5040_v60 = vpop.f32.mrf.mxu3 }
 0xbef   : > { %6484 = vpow2.f32 %v5986_v9  ;;  %v5074_v0 = vadd.f32 %v5040_v60, %v3851_v6 }
 0xbf0   : > { %6486 = vrcp.f32 %v5089_v48  ;;  %v5116_v5 = vand.u32 2147483647, %v5089_v48  ;;  %v5118_v50 = vand.u32 2147483648, %v5089_v48  ;;  %vm5112_vm14 = vweird.f32 %v5089_v48 }
 0xbf1   : > { %v6483_v52 = vpop.eup %6482  ;;  %v5985_v12 = vmul.f32 -1.442695, %v5074_v0 }
 0xbf2   : > { %v5088_v36 = vadd.f32 1.0, %v6483_v52  ;;  %v5069_v19 = vpop.f32.mrf.mxu0  ;;  %vm9899_vm15 = vcmp.eq.f32.partialorder %v5116_v5, 8.507059e+37  ;;  %v5119_v42 = vor.u32 1.1754944e-38, %v5118_v50 }
 0xbf3   : > { %6488 = vpow2.f32 %v5985_v12  ;;  %v5153_v16 = vadd.f32 %v5069_v19, %v9414_v22 }
 0xbf4   : > { %6490 = vrcp.f32 %v5088_v36  ;;  %v5101_v10 = vand.u32 2147483647, %v5088_v36  ;;  %v5103_v54 = vand.u32 2147483648, %v5088_v36  ;;  %vm5097_vm4 = vweird.f32 %v5088_v36 }
 0xbf5   : > { %v6485_v23 = vpop.eup %6484 }
 0xbf6   : > { %v6487_v62 = vpop.eup %6486  ;;  %v9890_v30 = vadd.f32 1.0, %v6485_v23  ;;  %v5043_v63 = vpop.f32.mrf.mxu3  ;;  %vm5102_vm5 = vcmp.eq.f32.partialorder %v5101_v10, 8.507059e+37  ;;  %v5104_v27 = vor.u32 1.1754944e-38, %v5103_v54 }
 0xbf7   : > { %v5108_v20 = vmul.f32 %v6487_v62, %v5089_v48  ;;  %vm5113_vm13 = vweird.f32 %v6487_v62  ;;  %v5152_v34 = vadd.f32 %v5043_v63, %v9414_v22 }
 0xbf8   : > { %6492 = vrcp.f32 %v9890_v30  ;;  %vm5114_vm0 = vmor %vm5112_vm14, %vm5113_vm13  ;;  %v5146_v3 = vand.u32 2147483647, %v9890_v30  ;;  %v5148_v55 = vand.u32 2147483648, %v9890_v30  ;;  %vm5142_vm7 = vweird.f32 %v9890_v30 }
 0xbf9   : > { %v6489_v38 = vpop.eup %6488  ;;  %v5109_v51 = vsub.f32 1.0, %v5108_v20 }
 0xbfa   : > { %v6491_v2 = vpop.eup %6490  ;;  %v9893_v43 = vadd.f32 1.0, %v6489_v38  ;;  %v5393_v18 = vpop.f32.mrf.mxu0  ;;  %vm9919_vm8 = vcmp.eq.f32.partialorder %v5146_v3, 8.507059e+37  ;;  %v5149_v48 = vor.u32 1.1754944e-38, %v5148_v55 }
 0xbfb   : > { %v5110_v11 = vmul.f32 %v6487_v62, %v5109_v51  ;;  %v5093_v13 = vmul.f32 %v6491_v2, %v5088_v36  ;;  %v5394_v47 = vadd.f32 %v5393_v18, %v9804_v58  ;;  %vm5098_vm3 = vweird.f32 %v6491_v2 }
 0xbfc   : > { %6494 = vrcp.f32 %v9893_v43  ;;  %vm5099_vm6 = vmor %vm5097_vm4, %vm5098_vm3  ;;  %v5131_v60 = vand.u32 2147483647, %v9893_v43  ;;  %v5133_v0 = vand.u32 2147483648, %v9893_v43  ;;  %vm5127_vm11 = vweird.f32 %v9893_v43 }
 0xbfd   : > { %v5111_v44 = vadd.f32 %v6487_v62, %v5110_v11  ;;  %v5094_v25 = vsub.f32 1.0, %v5093_v13  ;;  %5525 = vst [vmem:[%s9802_s19 + $0x48] sm:$0xff] %v5394_v47 }
 0xbfe   : > { %v6493_v21 = vpop.eup %6492  ;;  %v5253_v39 = vpop.f32.mrf.mxu3  ;;  %v5134_v63 = vor.u32 1.1754944e-38, %v5133_v0  ;;  %vm5132_vm13 = vcmp.eq.f32.partialorder %v5131_v60, 8.507059e+37 }
 0xbff   : > { %v5138_v15 = vmul.f32 %v6493_v21, %v9890_v30  ;;  %v5115_v7 = vsel %vm5114_vm0, %v6487_v62, %v5111_v44  ;;  %v5095_v41 = vmul.f32 %v6491_v2, %v5094_v25  ;;  %v5254_v28 = vadd.f32 %v5253_v39, %v9804_v58 }
 0xc00   : > { %v5120_v24 = vsel %vm9899_vm15, %v5119_v42, %v5115_v7  ;;  %vm5143_vm2 = vweird.f32 %v6493_v21 }
 0xc01   : > { %v5139_v59 = vsub.f32 1.0, %v5138_v15  ;;  %v5155_v31 = vmul.f32 %v5153_v16, %v5120_v24  ;;  %v5096_v40 = vadd.f32 %v6491_v2, %v5095_v41  ;;  %5518 = vst [vmem:[%s9802_s19 + $0x10] sm:$0xff] %v5254_v28  ;;  %vm5144_vm9 = vmor %vm5142_vm7, %vm5143_vm2 }
 0xc02   : > { %v6495_v32 = vpop.eup %6494  ;;  %v5473_v49 = vpop.f32.mrf.mxu0 }
 0xc03   : > { %v5140_v35 = vmul.f32 %v6493_v21, %v5139_v59  ;;  %v5123_v29 = vmul.f32 %v6495_v32, %v9893_v43  ;;  %v5157_v46 = vadd.f32 %v5155_v31, %v3880_v14  ;;  %v5100_v26 = vsel %vm5099_vm6, %v6491_v2, %v5096_v40 }
 0xc04   : > { %v5105_v57 = vsel %vm5102_vm5, %v5104_v27, %v5100_v26  ;;  %v5474_v33 = vadd.f32 %v5473_v49, %v9804_v58  ;;  %vm5128_vm10 = vweird.f32 %v6495_v32 }
 0xc05   : > { %v5124_v22 = vsub.f32 1.0, %v5123_v29  ;;  %6496 = vtanh.f32 %v5157_v46  ;;  %v5154_v45 = vmul.f32 %v5152_v34, %v5105_v57  ;;  %v5141_v6 = vadd.f32 %v6493_v21, %v5140_v35  ;;  %vm5129_vm12 = vmor %vm5127_vm11, %vm5128_vm10 }
 0xc06   : > { %5529 = vst [vmem:[%s9802_s19 + $0x68] sm:$0xff] %v5474_v33  ;;  %v5313_v9 = vpop.f32.mrf.mxu3 }
 0xc07   : > { %v5125_v52 = vmul.f32 %v6495_v32, %v5124_v22  ;;  %v5156_v12 = vadd.f32 %v5154_v45, %v3854_v17  ;;  %v5314_v36 = vadd.f32 %v5313_v9, %v9804_v58  ;;  %v5145_v19 = vsel %vm5144_vm9, %v6493_v21, %v5141_v6 }
 0xc08   : > { %v5150_v23 = vsel %vm9919_vm8, %v5149_v48, %v5145_v19 }
 0xc09   : > { %6498 = vtanh.f32 %v5156_v12  ;;  %5521 = vst [vmem:[%s9802_s19 + $0x28] sm:$0xff] %v5314_v36  ;;  %v5161_v62 = vsub.f32 1.0, %v5150_v23  ;;  %v5126_v30 = vadd.f32 %v6495_v32, %v5125_v52  ;;  %v5165_v5 = vmul.f32 %v5150_v23, %v9841_v37 }
 0xc0b   : > { %v6497_v20 = vpop.eup %6496  ;;  %v5130_v38 = vsel %vm5129_vm12, %v6495_v32, %v5126_v30 }
 0xc0c   : > { %v5163_v51 = vmul.f32 %v6497_v20, %v5161_v62  ;;  %v5135_v2 = vsel %vm5132_vm13, %v5134_v63, %v5130_v38 }
 0xc0d   : > { %v5160_v50 = vsub.f32 1.0, %v5135_v2  ;;  %v5164_v1 = vmul.f32 %v5135_v2, %v9836_v53 }
 0xc0e   : > { %v5373_v18 = vpop.f32.mrf.mxu3  ;;  %v5167_v11 = vadd.f32 %v5165_v5, %v5163_v51 }
 0xc0f   : > { %v6499_v13 = vpop.eup %6498  ;;  %v5374_v43 = vadd.f32 %v5373_v18, %v9804_v58 }
 0xc10   : > { %5511 = vmatpush.msrb.mxu2 %v5167_v11  ;;  %v5162_v47 = vmul.f32 %v6499_v13, %v5160_v50 }
 0xc11   : > { %5524 = vst [vmem:[%s9802_s19 + $0x40] sm:$0xff] %v5374_v43  ;;  %6002 = vmatmul.msk.f32.vlgmr.msrb.gmra.mxu2 %vm3945_vm1, %v9763_v4 }
 0xc12   : > { %v5166_v17 = vadd.f32 %v5164_v1, %v5162_v47 }
 0xc14   : > { %5491 = vmatpush.msrb.mxu1 %v5166_v17 }
 0xc15   : > { %6001 = vmatmul.msk.f32.vlgmr.msrb.gmra.mxu1 %vm3945_vm1, %v9763_v4 }
 0xc16   : > { %v5453_v37 = vpop.f32.mrf.mxu3 }
 0xc17   : > { %v5454_v44 = vadd.f32 %v5453_v37, %v9804_v58 }
 0xc19   : > { %5528 = vst [vmem:[%s9802_s19 + $0x60] sm:$0xff] %v5454_v44 }
 0xc92   : > { %v5493_v8 = vpop.f32.mrf.mxu1 }
 0xc93   : > { %v5494_v25 = vadd.f32 %v5493_v8, %v9804_v58 }
 0xc94   : > { %v5513_v10 = vpop.f32.mrf.mxu2 }
 0xc95   : > { %5530 = vst [vmem:[%s9802_s19 + $0x70] sm:$0xff] %v5494_v25  ;;  %v5514_v53 = vadd.f32 %v5513_v10, %v9804_v58 }
 0xc97   : > { %5531 = vst [vmem:[%s9802_s19 + $0x78] sm:$0xff] %v5514_v53 }
 0xc98 PF: > { %s21_s17 = sadd.s32 1, %s6533_s17  }
 0xc99   : > { %p18_p4 = scmp.ge.s32.totalorder %s21_s17, 6  }
 0xc9b   :  { %20 = sbr.rel (!%p18_p4) target bundleno = 1 (0x1), region = 97 }

</bundles_post_ra>
